<compile_context>
chip_gen: v7x
topology: tpu7x:2x2x1
jax: 0.10.0
libtpu: 0.0.40
codegen_flags: <defaults>
</compile_context>

<pallas_src>
import functools

import jax
import jax.numpy as jnp
from jax.experimental import pallas as pl
from jax.experimental.pallas import tpu as pltpu

N_COLORS = 3
N_FEATS = 256
N_RESBLOCK = 32
RES_SCALE = 0.1
SCALE = 4
RGB_RANGE = 255.0
RGB_MEAN = jnp.array([0.4488, 0.4371, 0.404], dtype=jnp.float32)

_VMEM_LIMIT = 32 * 1024 * 1024   # safe on v5e/v6e (128 MiB) and v7x (64 MiB)
_CIN_PAD = 8                     # head conv input channels padded 3 -> 8
_COUT_PAD = 8                    # final conv output channels padded 3 -> 8
_UP_COUT_TILE = 256              # Cout tile for the 256 -> 1024 upsampler convs


# ----------------------------------------------------------------------------
# Kernel helpers
# ----------------------------------------------------------------------------
def _row_chunk(H, W):
    """Rows per chunk so the (m*W, Cout) f32 accumulator stays ~256 KiB."""
    return min(H, max(1, 256 // W))


def _accum_chunk(read_slab, w_ref, r0, m, W, Cin, Cout):
    """3x3 conv for `m` output rows as 3 deep-K (K=3*Cin) bf16 matmuls."""
    acc = jnp.zeros((m * W, Cout), jnp.float32)
    for dy in range(3):
        slab = read_slab(r0 + dy, m)                        # (m, W+2, Cin) bf16
        patch = jnp.concatenate(
            [slab[:, 0:W, :], slab[:, 1:W + 1, :], slab[:, 2:W + 2, :]],
            axis=-1)                                        # (m, W, 3*Cin)
        acc = acc + jnp.dot(patch.reshape(m * W, 3 * Cin), w_ref[dy],
                            preferred_element_type=jnp.float32)
    return acc


# ----------------------------------------------------------------------------
# Pallas kernels
# ----------------------------------------------------------------------------
def _conv_kernel(x_ref, w_ref, b_ref, o_ref, *, rh, relu):
    """3x3 conv (input pre-padded).  x:(1,H+2,W+2,Cin) w:(3,3Cin,Ct) b:(1,Ct)."""
    _, H, W, Cout = o_ref.shape
    Cin = x_ref.shape[-1]
    bias = b_ref[...]
    read = lambda r, m: x_ref[0, r:r + m, :, :]
    for r0 in range(0, H, rh):
        m = min(rh, H - r0)
        acc = _accum_chunk(read, w_ref, r0, m, W, Cin, Cout) + bias
        if relu:
            acc = jnp.maximum(acc, 0.0)
        o_ref[0, r0:r0 + m] = acc.reshape(m, W, Cout).astype(o_ref.dtype)


def _conv_res_kernel(x_ref, w_ref, b_ref, skip_ref, o_ref, *, rh, res_scale):
    """out = conv3x3(x) * res_scale + skip   (fused)."""
    _, H, W, Cout = o_ref.shape
    Cin = x_ref.shape[-1]
    bias = b_ref[...]
    read = lambda r, m: x_ref[0, r:r + m, :, :]
    for r0 in range(0, H, rh):
        m = min(rh, H - r0)
        acc = _accum_chunk(read, w_ref, r0, m, W, Cin, Cout) + bias
        if res_scale != 1.0:
            acc = acc * res_scale
        skip = skip_ref[0, r0:r0 + m].astype(jnp.float32)
        o_ref[0, r0:r0 + m] = (acc.reshape(m, W, Cout) + skip).astype(o_ref.dtype)


def _resblock_kernel(x_ref, w1_ref, b1_ref, w2_ref, b2_ref, o_ref, mid_ref,
                     *, rh, res_scale):
    """Fused EDSR ResBlock:  out = x + res_scale * conv2(relu(conv1(x))).

    x_ref: (1,H+2,W+2,C) padded input.  mid_ref: (H+2,W+2,C) VMEM scratch that
    holds the zero-padded ReLU intermediate (never written to HBM).
    """
    _, H, W, C = o_ref.shape
    b1 = b1_ref[...]
    b2 = b2_ref[...]
    mid_ref[...] = jnp.zeros_like(mid_ref)          # zero halo of intermediate
    read_x = lambda r, m: x_ref[0, r:r + m, :, :]
    for r0 in range(0, H, rh):
        m = min(rh, H - r0)
        acc = jnp.maximum(_accum_chunk(read_x, w1_ref, r0, m, W, C, C) + b1, 0.0)
        mid_ref[r0 + 1:r0 + 1 + m, 1:1 + W, :] = acc.reshape(m, W, C).astype(mid_ref.dtype)
    read_m = lambda r, m: mid_ref[r:r + m, :, :]
    for r0 in range(0, H, rh):
        m = min(rh, H - r0)
        acc = (_accum_chunk(read_m, w2_ref, r0, m, W, C, C) + b2) * res_scale
        skip = x_ref[0, r0 + 1:r0 + 1 + m, 1:1 + W, :].astype(jnp.float32)
        o_ref[0, r0:r0 + m] = (acc.reshape(m, W, C) + skip).astype(o_ref.dtype)


def _conv_taps_kernel(x_ref, w_ref, b_ref, o_ref, *, rh, relu):
    """Per-tap 3x3 conv for tiny Cin (head layer).  w:(3,3,Cin,Cout)."""
    _, H, W, Cout = o_ref.shape
    Cin = x_ref.shape[-1]
    bias = b_ref[...]
    for r0 in range(0, H, rh):
        m = min(rh, H - r0)
        acc = jnp.zeros((m * W, Cout), jnp.float32)
        for dy in range(3):
            for dx in range(3):
                p = x_ref[0, r0 + dy:r0 + dy + m, dx:dx + W, :].reshape(m * W, Cin)
                acc = acc + jnp.dot(p, w_ref[dy, dx],
                                    preferred_element_type=jnp.float32)
        acc = acc + bias
        if relu:
            acc = jnp.maximum(acc, 0.0)
        o_ref[0, r0:r0 + m] = acc.reshape(m, W, Cout).astype(o_ref.dtype)


# ----------------------------------------------------------------------------
# pallas_call builders (cached so the 32 identical ResBlocks share one build)
# ----------------------------------------------------------------------------
@functools.lru_cache(maxsize=None)
def _build_conv(N, H, W, Cin, Cout, ct, relu, out_dtype):
    rh = _row_chunk(H, W)
    kern = functools.partial(_conv_kernel, rh=rh, relu=relu)
    n_ct = Cout // ct
    return pl.pallas_call(
        kern,
        out_shape=jax.ShapeDtypeStruct((N, H, W, Cout), out_dtype),
        grid=(N, n_ct),
        in_specs=[
            pl.BlockSpec((1, H + 2, W + 2, Cin), lambda n, j: (n, 0, 0, 0)),
            pl.BlockSpec((3, 3 * Cin, ct), lambda n, j: (0, 0, j)),
            pl.BlockSpec((1, ct), lambda n, j: (0, j)),
        ],
        out_specs=pl.BlockSpec((1, H, W, ct), lambda n, j: (n, 0, 0, j)),
        compiler_params=pltpu.CompilerParams(
            dimension_semantics=("parallel", "parallel"),
            vmem_limit_bytes=_VMEM_LIMIT),
    )


@functools.lru_cache(maxsize=None)
def _build_conv_taps(N, H, W, Cin, Cout, relu, out_dtype):
    rh = _row_chunk(H, W)
    kern = functools.partial(_conv_taps_kernel, rh=rh, relu=relu)
    return pl.pallas_call(
        kern,
        out_shape=jax.ShapeDtypeStruct((N, H, W, Cout), out_dtype),
        grid=(N,),
        in_specs=[
            pl.BlockSpec((1, H + 2, W + 2, Cin), lambda n: (n, 0, 0, 0)),
            pl.BlockSpec((3, 3, Cin, Cout), lambda n: (0, 0, 0, 0)),
            pl.BlockSpec((1, Cout), lambda n: (0, 0)),
        ],
        out_specs=pl.BlockSpec((1, H, W, Cout), lambda n: (n, 0, 0, 0)),
        compiler_params=pltpu.CompilerParams(
            dimension_semantics=("parallel",),
            vmem_limit_bytes=_VMEM_LIMIT),
    )


@functools.lru_cache(maxsize=None)
def _build_conv_res(N, H, W, C, res_scale, out_dtype):
    rh = _row_chunk(H, W)
    kern = functools.partial(_conv_res_kernel, rh=rh, res_scale=res_scale)
    return pl.pallas_call(
        kern,
        out_shape=jax.ShapeDtypeStruct((N, H, W, C), out_dtype),
        grid=(N,),
        in_specs=[
            pl.BlockSpec((1, H + 2, W + 2, C), lambda n: (n, 0, 0, 0)),
            pl.BlockSpec((3, 3 * C, C), lambda n: (0, 0, 0)),
            pl.BlockSpec((1, C), lambda n: (0, 0)),
            pl.BlockSpec((1, H, W, C), lambda n: (n, 0, 0, 0)),
        ],
        out_specs=pl.BlockSpec((1, H, W, C), lambda n: (n, 0, 0, 0)),
        compiler_params=pltpu.CompilerParams(
            dimension_semantics=("parallel",),
            vmem_limit_bytes=_VMEM_LIMIT),
    )


@functools.lru_cache(maxsize=None)
def _build_resblock(N, H, W, C, res_scale, dtype):
    rh = _row_chunk(H, W)
    kern = functools.partial(_resblock_kernel, rh=rh, res_scale=res_scale)
    return pl.pallas_call(
        kern,
        out_shape=jax.ShapeDtypeStruct((N, H, W, C), dtype),
        grid=(N,),
        in_specs=[
            pl.BlockSpec((1, H + 2, W + 2, C), lambda n: (n, 0, 0, 0)),
            pl.BlockSpec((3, 3 * C, C), lambda n: (0, 0, 0)),
            pl.BlockSpec((1, C), lambda n: (0, 0)),
            pl.BlockSpec((3, 3 * C, C), lambda n: (0, 0, 0)),
            pl.BlockSpec((1, C), lambda n: (0, 0)),
        ],
        out_specs=pl.BlockSpec((1, H, W, C), lambda n: (n, 0, 0, 0)),
        scratch_shapes=[pltpu.VMEM((H + 2, W + 2, C), dtype)],
        compiler_params=pltpu.CompilerParams(
            dimension_semantics=("parallel",),
            vmem_limit_bytes=_VMEM_LIMIT),
    )


# ----------------------------------------------------------------------------
# Thin wrappers (padding + dispatch)
# ----------------------------------------------------------------------------
def _pad_hw(x):
    return jnp.pad(x, ((0, 0), (1, 1), (1, 1), (0, 0)))


def conv3x3(x, w, b, *, relu=False, cout_tile=None, out_dtype=None):
    N, H, W, Cin = x.shape
    Cout = w.shape[-1]
    ct = cout_tile or Cout
    out_dtype = out_dtype or x.dtype
    fn = _build_conv(N, H, W, Cin, Cout, ct, bool(relu), out_dtype)
    return fn(_pad_hw(x), w, b)


def conv3x3_small(x, w4, b, *, relu=False):
    N, H, W, Cin = x.shape
    Cout = w4.shape[-1]
    fn = _build_conv_taps(N, H, W, Cin, Cout, bool(relu), x.dtype)
    return fn(_pad_hw(x), w4, b)


def conv3x3_res(x, w, b, skip, res_scale):
    N, H, W, C = x.shape
    fn = _build_conv_res(N, H, W, C, float(res_scale), skip.dtype)
    return fn(_pad_hw(x), w, b, skip)


def resblock(x, w1, b1, w2, b2, res_scale):
    N, H, W, C = x.shape
    fn = _build_resblock(N, H, W, C, float(res_scale), x.dtype)
    return fn(_pad_hw(x), w1, b1, w2, b2)


def pixel_shuffle_nhwc(x, r):
    """torch.nn.PixelShuffle semantics, NHWC layout (plain-JAX glue)."""
    N, H, W, C = x.shape
    c = C // (r * r)
    x = x.reshape(N, H, W, c, r, r)
    x = jnp.transpose(x, (0, 1, 4, 2, 5, 3))
    return x.reshape(N, H * r, W * r, c)


# ----------------------------------------------------------------------------
# Parameters (deterministic synthetic init; shapes from the module __init__)
# ----------------------------------------------------------------------------
def init_params(key):
    def conv_raw(k, cin, cout):
        kw, kb = jax.random.split(k)
        w = jax.random.normal(kw, (3, 3, cin, cout), jnp.float32) * 0.02
        b = jax.random.normal(kb, (cout,), jnp.float32) * 0.01
        return w, b

    def pack(w, b):
        cin, cout = w.shape[2], w.shape[3]
        return (w.reshape(3, 3 * cin, cout).astype(jnp.bfloat16),
                b.reshape(1, cout).astype(jnp.float32))

    n_keys = 1 + 2 * N_RESBLOCK + 1 + 2 + 1
    keys = iter(jax.random.split(key, n_keys))

    # head (Cin padded 3 -> 8, kept in (3,3,Cin,Cout) layout for the tap kernel)
    wh, bh = conv_raw(next(keys), N_COLORS, N_FEATS)
    wh = jnp.pad(wh, ((0, 0), (0, 0), (0, _CIN_PAD - N_COLORS), (0, 0)))
    head = (wh.astype(jnp.bfloat16), bh.reshape(1, N_FEATS).astype(jnp.float32))

    body = []
    for _ in range(N_RESBLOCK):
        w1, b1 = conv_raw(next(keys), N_FEATS, N_FEATS)
        w2, b2 = conv_raw(next(keys), N_FEATS, N_FEATS)
        body.append(pack(w1, b1) + pack(w2, b2))

    body_last = pack(*conv_raw(next(keys), N_FEATS, N_FEATS))
    up = [pack(*conv_raw(next(keys), N_FEATS, 4 * N_FEATS)) for _ in range(2)]

    # final conv: fold add_mean (+255*mean) and /255 exactly into weights/bias,
    # pad Cout 3 -> 8 for denser stores (sliced back in the wrapper).
    wf, bf = conv_raw(next(keys), N_FEATS, N_COLORS)
    wf = wf / RGB_RANGE
    bf = bf / RGB_RANGE + RGB_MEAN
    wf = jnp.pad(wf, ((0, 0), (0, 0), (0, 0), (0, _COUT_PAD - N_COLORS)))
    bf = jnp.pad(bf, ((0, _COUT_PAD - N_COLORS),))
    final = pack(wf, bf)

    return {"head": head, "body": body, "body_last": body_last,
            "up": up, "final": final}


# ----------------------------------------------------------------------------
# Forward (matches EDSR.forward semantics; NCHW in / NCHW out)
# ----------------------------------------------------------------------------
def edsr_forward(params, x_nchw):
    x = jnp.transpose(x_nchw, (0, 2, 3, 1)).astype(jnp.float32)   # -> NHWC

    # x = x*255 ; x = sub_mean(x)  (MeanShift folded into boundary preprocessing;
    # kept outside the conv so zero padding still matches the reference).
    z = x * RGB_RANGE - RGB_RANGE * RGB_MEAN
    z = jnp.pad(z, ((0, 0), (0, 0), (0, 0), (0, _CIN_PAD - N_COLORS)))
    z = z.astype(jnp.bfloat16)

    # head
    xh = conv3x3_small(z, *params["head"])                        # (N,H,W,256)

    # body: 32 fused ResBlocks + trailing conv, then global skip
    t = xh
    for (w1, b1, w2, b2) in params["body"]:
        t = resblock(t, w1, b1, w2, b2, RES_SCALE)
    res = conv3x3_res(t, *params["body_last"], xh, 1.0)

    # tail: Upsampler(scale=4) = 2 x [conv(256->1024), PixelShuffle(2)], conv->3
    h = res
    for (w, b) in params["up"]:
        h = conv3x3(h, w, b, cout_tile=_UP_COUT_TILE)
        h = pixel_shuffle_nhwc(h, 2)

    # final conv (add_mean and /255 already folded into its weights/bias)
    h = conv3x3(h, *params["final"], out_dtype=jnp.float32)
    h = h[..., :N_COLORS]

    return jnp.transpose(h, (0, 3, 1, 2))                         # -> NCHW
    # TODO(synk): the reference's `print(x.shape)` debug statement is omitted.


if __name__ == "__main__":
    key = jax.random.PRNGKey(0)
    kp, kx = jax.random.split(key)
    params = init_params(kp)

    # small input consistent with the module: NCHW, 3 color channels
    x = jax.random.uniform(kx, (2, N_COLORS, 16, 16), dtype=jnp.float32)

    out = edsr_forward(params, x)
    out = jax.block_until_ready(out)
    assert out.shape == (2, N_COLORS, 16 * SCALE, 16 * SCALE), out.shape
    assert out.dtype == jnp.float32
    print("KERNEL_OK")
</pallas_src>

<mosaic_0001>
module attributes {stable_mosaic.version = 11 : i64} {
  func.func @_conv_taps_kernel(%arg0: i32, %arg1: memref<1x18x18x8xbf16, #tpu.memory_space<vmem>>, %arg2: memref<3x3x8x256xbf16, #tpu.memory_space<vmem>>, %arg3: memref<1x256xf32, #tpu.memory_space<vmem>>, %arg4: memref<1x16x16x256xbf16, #tpu.memory_space<vmem>>) attributes {dimension_semantics = [#tpu.dimension_semantics<parallel>], iteration_bounds = array<i64: 2>, scalar_prefetch = 0 : i64, scratch_operands = 0 : i64, tpu.core_type = #tpu.core_type<tc>, window_params = [{transform_indices = @transform_0, window_bounds = array<i64: 1, 18, 18, 8>}, {pipeline_mode = #tpu.pipeline_mode<synchronous>, transform_indices = @transform_1, window_bounds = array<i64: 3, 3, 8, 256>}, {pipeline_mode = #tpu.pipeline_mode<synchronous>, transform_indices = @transform_2, window_bounds = array<i64: 1, 256>}, {transform_indices = @transform_3, window_bounds = array<i64: 1, 16, 16, 256>}]} {
    %c0 = arith.constant 0 : index
    %c0_0 = arith.constant 0 : index
    %0 = vector.load %arg3[%c0, %c0_0] : memref<1x256xf32, #tpu.memory_space<vmem>>, vector<1x256xf32>
    %cst = arith.constant 0.000000e+00 : f32
    %1 = vector.broadcast %cst : f32 to vector<256x256xf32>
    %c0_1 = arith.constant 0 : index
    %c0_2 = arith.constant 0 : index
    %c0_3 = arith.constant 0 : index
    %c0_4 = arith.constant 0 : index
    %2 = vector.load %arg1[%c0_1, %c0_2, %c0_3, %c0_4] : memref<1x18x18x8xbf16, #tpu.memory_space<vmem>>, vector<1x16x16x8xbf16>
    %3 = vector.shape_cast %2 : vector<1x16x16x8xbf16> to vector<16x16x8xbf16>
    %4 = vector.shape_cast %3 : vector<16x16x8xbf16> to vector<256x8xbf16>
    %c0_5 = arith.constant 0 : index
    %c0_6 = arith.constant 0 : index
    %c0_7 = arith.constant 0 : index
    %c0_8 = arith.constant 0 : index
    %5 = vector.load %arg2[%c0_5, %c0_6, %c0_7, %c0_8] : memref<3x3x8x256xbf16, #tpu.memory_space<vmem>>, vector<1x1x8x256xbf16>
    %6 = vector.shape_cast %5 : vector<1x1x8x256xbf16> to vector<8x256xbf16>
    %cst_9 = arith.constant dense<0.000000e+00> : vector<256x256xf32>
    %7 = tpu.matmul %4, %6, %cst_9 {dimension_numbers = #tpu.dot_dimension_numbers<[1], [0], [0], [1], [0, 0, 1, 1], [], []>} : vector<256x8xbf16>, vector<8x256xbf16>, vector<256x256xf32> -> vector<256x256xf32>
    %8 = arith.addf %1, %7 : vector<256x256xf32>
    %c0_10 = arith.constant 0 : index
    %c0_11 = arith.constant 0 : index
    %c1 = arith.constant 1 : index
    %c0_12 = arith.constant 0 : index
    %9 = vector.load %arg1[%c0_10, %c0_11, %c1, %c0_12] : memref<1x18x18x8xbf16, #tpu.memory_space<vmem>>, vector<1x16x16x8xbf16>
    %10 = vector.shape_cast %9 : vector<1x16x16x8xbf16> to vector<16x16x8xbf16>
    %11 = vector.shape_cast %10 : vector<16x16x8xbf16> to vector<256x8xbf16>
    %c0_13 = arith.constant 0 : index
    %c1_14 = arith.constant 1 : index
    %c0_15 = arith.constant 0 : index
    %c0_16 = arith.constant 0 : index
    %12 = vector.load %arg2[%c0_13, %c1_14, %c0_15, %c0_16] : memref<3x3x8x256xbf16, #tpu.memory_space<vmem>>, vector<1x1x8x256xbf16>
    %13 = vector.shape_cast %12 : vector<1x1x8x256xbf16> to vector<8x256xbf16>
    %cst_17 = arith.constant dense<0.000000e+00> : vector<256x256xf32>
    %14 = tpu.matmul %11, %13, %cst_17 {dimension_numbers = #tpu.dot_dimension_numbers<[1], [0], [0], [1], [0, 0, 1, 1], [], []>} : vector<256x8xbf16>, vector<8x256xbf16>, vector<256x256xf32> -> vector<256x256xf32>
    %15 = arith.addf %8, %14 : vector<256x256xf32>
    %c0_18 = arith.constant 0 : index
    %c0_19 = arith.constant 0 : index
    %c2 = arith.constant 2 : index
    %c0_20 = arith.constant 0 : index
    %16 = vector.load %arg1[%c0_18, %c0_19, %c2, %c0_20] : memref<1x18x18x8xbf16, #tpu.memory_space<vmem>>, vector<1x16x16x8xbf16>
    %17 = vector.shape_cast %16 : vector<1x16x16x8xbf16> to vector<16x16x8xbf16>
    %18 = vector.shape_cast %17 : vector<16x16x8xbf16> to vector<256x8xbf16>
    %c0_21 = arith.constant 0 : index
    %c2_22 = arith.constant 2 : index
    %c0_23 = arith.constant 0 : index
    %c0_24 = arith.constant 0 : index
    %19 = vector.load %arg2[%c0_21, %c2_22, %c0_23, %c0_24] : memref<3x3x8x256xbf16, #tpu.memory_space<vmem>>, vector<1x1x8x256xbf16>
    %20 = vector.shape_cast %19 : vector<1x1x8x256xbf16> to vector<8x256xbf16>
    %cst_25 = arith.constant dense<0.000000e+00> : vector<256x256xf32>
    %21 = tpu.matmul %18, %20, %cst_25 {dimension_numbers = #tpu.dot_dimension_numbers<[1], [0], [0], [1], [0, 0, 1, 1], [], []>} : vector<256x8xbf16>, vector<8x256xbf16>, vector<256x256xf32> -> vector<256x256xf32>
    %22 = arith.addf %15, %21 : vector<256x256xf32>
    %c0_26 = arith.constant 0 : index
    %c1_27 = arith.constant 1 : index
    %c0_28 = arith.constant 0 : index
    %c0_29 = arith.constant 0 : index
    %23 = vector.load %arg1[%c0_26, %c1_27, %c0_28, %c0_29] : memref<1x18x18x8xbf16, #tpu.memory_space<vmem>>, vector<1x16x16x8xbf16>
    %24 = vector.shape_cast %23 : vector<1x16x16x8xbf16> to vector<16x16x8xbf16>
    %25 = vector.shape_cast %24 : vector<16x16x8xbf16> to vector<256x8xbf16>
    %c1_30 = arith.constant 1 : index
    %c0_31 = arith.constant 0 : index
    %c0_32 = arith.constant 0 : index
    %c0_33 = arith.constant 0 : index
    %26 = vector.load %arg2[%c1_30, %c0_31, %c0_32, %c0_33] : memref<3x3x8x256xbf16, #tpu.memory_space<vmem>>, vector<1x1x8x256xbf16>
    %27 = vector.shape_cast %26 : vector<1x1x8x256xbf16> to vector<8x256xbf16>
    %cst_34 = arith.constant dense<0.000000e+00> : vector<256x256xf32>
    %28 = tpu.matmul %25, %27, %cst_34 {dimension_numbers = #tpu.dot_dimension_numbers<[1], [0], [0], [1], [0, 0, 1, 1], [], []>} : vector<256x8xbf16>, vector<8x256xbf16>, vector<256x256xf32> -> vector<256x256xf32>
    %29 = arith.addf %22, %28 : vector<256x256xf32>
    %c0_35 = arith.constant 0 : index
    %c1_36 = arith.constant 1 : index
    %c1_37 = arith.constant 1 : index
    %c0_38 = arith.constant 0 : index
    %30 = vector.load %arg1[%c0_35, %c1_36, %c1_37, %c0_38] : memref<1x18x18x8xbf16, #tpu.memory_space<vmem>>, vector<1x16x16x8xbf16>
    %31 = vector.shape_cast %30 : vector<1x16x16x8xbf16> to vector<16x16x8xbf16>
    %32 = vector.shape_cast %31 : vector<16x16x8xbf16> to vector<256x8xbf16>
    %c1_39 = arith.constant 1 : index
    %c1_40 = arith.constant 1 : index
    %c0_41 = arith.constant 0 : index
    %c0_42 = arith.constant 0 : index
    %33 = vector.load %arg2[%c1_39, %c1_40, %c0_41, %c0_42] : memref<3x3x8x256xbf16, #tpu.memory_space<vmem>>, vector<1x1x8x256xbf16>
    %34 = vector.shape_cast %33 : vector<1x1x8x256xbf16> to vector<8x256xbf16>
    %cst_43 = arith.constant dense<0.000000e+00> : vector<256x256xf32>
    %35 = tpu.matmul %32, %34, %cst_43 {dimension_numbers = #tpu.dot_dimension_numbers<[1], [0], [0], [1], [0, 0, 1, 1], [], []>} : vector<256x8xbf16>, vector<8x256xbf16>, vector<256x256xf32> -> vector<256x256xf32>
    %36 = arith.addf %29, %35 : vector<256x256xf32>
    %c0_44 = arith.constant 0 : index
    %c1_45 = arith.constant 1 : index
    %c2_46 = arith.constant 2 : index
    %c0_47 = arith.constant 0 : index
    %37 = vector.load %arg1[%c0_44, %c1_45, %c2_46, %c0_47] : memref<1x18x18x8xbf16, #tpu.memory_space<vmem>>, vector<1x16x16x8xbf16>
    %38 = vector.shape_cast %37 : vector<1x16x16x8xbf16> to vector<16x16x8xbf16>
    %39 = vector.shape_cast %38 : vector<16x16x8xbf16> to vector<256x8xbf16>
    %c1_48 = arith.constant 1 : index
    %c2_49 = arith.constant 2 : index
    %c0_50 = arith.constant 0 : index
    %c0_51 = arith.constant 0 : index
    %40 = vector.load %arg2[%c1_48, %c2_49, %c0_50, %c0_51] : memref<3x3x8x256xbf16, #tpu.memory_space<vmem>>, vector<1x1x8x256xbf16>
    %41 = vector.shape_cast %40 : vector<1x1x8x256xbf16> to vector<8x256xbf16>
    %cst_52 = arith.constant dense<0.000000e+00> : vector<256x256xf32>
    %42 = tpu.matmul %39, %41, %cst_52 {dimension_numbers = #tpu.dot_dimension_numbers<[1], [0], [0], [1], [0, 0, 1, 1], [], []>} : vector<256x8xbf16>, vector<8x256xbf16>, vector<256x256xf32> -> vector<256x256xf32>
    %43 = arith.addf %36, %42 : vector<256x256xf32>
    %c0_53 = arith.constant 0 : index
    %c2_54 = arith.constant 2 : index
    %c0_55 = arith.constant 0 : index
    %c0_56 = arith.constant 0 : index
    %44 = vector.load %arg1[%c0_53, %c2_54, %c0_55, %c0_56] : memref<1x18x18x8xbf16, #tpu.memory_space<vmem>>, vector<1x16x16x8xbf16>
    %45 = vector.shape_cast %44 : vector<1x16x16x8xbf16> to vector<16x16x8xbf16>
    %46 = vector.shape_cast %45 : vector<16x16x8xbf16> to vector<256x8xbf16>
    %c2_57 = arith.constant 2 : index
    %c0_58 = arith.constant 0 : index
    %c0_59 = arith.constant 0 : index
    %c0_60 = arith.constant 0 : index
    %47 = vector.load %arg2[%c2_57, %c0_58, %c0_59, %c0_60] : memref<3x3x8x256xbf16, #tpu.memory_space<vmem>>, vector<1x1x8x256xbf16>
    %48 = vector.shape_cast %47 : vector<1x1x8x256xbf16> to vector<8x256xbf16>
    %cst_61 = arith.constant dense<0.000000e+00> : vector<256x256xf32>
    %49 = tpu.matmul %46, %48, %cst_61 {dimension_numbers = #tpu.dot_dimension_numbers<[1], [0], [0], [1], [0, 0, 1, 1], [], []>} : vector<256x8xbf16>, vector<8x256xbf16>, vector<256x256xf32> -> vector<256x256xf32>
    %50 = arith.addf %43, %49 : vector<256x256xf32>
    %c0_62 = arith.constant 0 : index
    %c2_63 = arith.constant 2 : index
    %c1_64 = arith.constant 1 : index
    %c0_65 = arith.constant 0 : index
    %51 = vector.load %arg1[%c0_62, %c2_63, %c1_64, %c0_65] : memref<1x18x18x8xbf16, #tpu.memory_space<vmem>>, vector<1x16x16x8xbf16>
    %52 = vector.shape_cast %51 : vector<1x16x16x8xbf16> to vector<16x16x8xbf16>
    %53 = vector.shape_cast %52 : vector<16x16x8xbf16> to vector<256x8xbf16>
    %c2_66 = arith.constant 2 : index
    %c1_67 = arith.constant 1 : index
    %c0_68 = arith.constant 0 : index
    %c0_69 = arith.constant 0 : index
    %54 = vector.load %arg2[%c2_66, %c1_67, %c0_68, %c0_69] : memref<3x3x8x256xbf16, #tpu.memory_space<vmem>>, vector<1x1x8x256xbf16>
    %55 = vector.shape_cast %54 : vector<1x1x8x256xbf16> to vector<8x256xbf16>
    %cst_70 = arith.constant dense<0.000000e+00> : vector<256x256xf32>
    %56 = tpu.matmul %53, %55, %cst_70 {dimension_numbers = #tpu.dot_dimension_numbers<[1], [0], [0], [1], [0, 0, 1, 1], [], []>} : vector<256x8xbf16>, vector<8x256xbf16>, vector<256x256xf32> -> vector<256x256xf32>
    %57 = arith.addf %50, %56 : vector<256x256xf32>
    %c0_71 = arith.constant 0 : index
    %c2_72 = arith.constant 2 : index
    %c2_73 = arith.constant 2 : index
    %c0_74 = arith.constant 0 : index
    %58 = vector.load %arg1[%c0_71, %c2_72, %c2_73, %c0_74] : memref<1x18x18x8xbf16, #tpu.memory_space<vmem>>, vector<1x16x16x8xbf16>
    %59 = vector.shape_cast %58 : vector<1x16x16x8xbf16> to vector<16x16x8xbf16>
    %60 = vector.shape_cast %59 : vector<16x16x8xbf16> to vector<256x8xbf16>
    %c2_75 = arith.constant 2 : index
    %c2_76 = arith.constant 2 : index
    %c0_77 = arith.constant 0 : index
    %c0_78 = arith.constant 0 : index
    %61 = vector.load %arg2[%c2_75, %c2_76, %c0_77, %c0_78] : memref<3x3x8x256xbf16, #tpu.memory_space<vmem>>, vector<1x1x8x256xbf16>
    %62 = vector.shape_cast %61 : vector<1x1x8x256xbf16> to vector<8x256xbf16>
    %cst_79 = arith.constant dense<0.000000e+00> : vector<256x256xf32>
    %63 = tpu.matmul %60, %62, %cst_79 {dimension_numbers = #tpu.dot_dimension_numbers<[1], [0], [0], [1], [0, 0, 1, 1], [], []>} : vector<256x8xbf16>, vector<8x256xbf16>, vector<256x256xf32> -> vector<256x256xf32>
    %64 = arith.addf %57, %63 : vector<256x256xf32>
    %65 = vector.broadcast %0 : vector<1x256xf32> to vector<256x256xf32>
    %66 = arith.addf %64, %65 : vector<256x256xf32>
    %67 = vector.shape_cast %66 : vector<256x256xf32> to vector<16x16x256xf32>
    %68 = arith.truncf %67 : vector<16x16x256xf32> to vector<16x16x256xbf16>
    %c0_80 = arith.constant 0 : index
    %c0_81 = arith.constant 0 : index
    %c0_82 = arith.constant 0 : index
    %c0_83 = arith.constant 0 : index
    %69 = vector.load %arg4[%c0_80, %c0_81, %c0_82, %c0_83] : memref<1x16x16x256xbf16, #tpu.memory_space<vmem>>, vector<1x16x16x256xbf16>
    %70 = vector.shape_cast %69 : vector<1x16x16x256xbf16> to vector<16x16x256xbf16>
    %71 = vector.shape_cast %68 : vector<16x16x256xbf16> to vector<1x16x16x256xbf16>
    tpu.vector_store %arg4[%c0_80, %c0_81, %c0_82, %c0_83], %71 {strides = array<i32>} : memref<1x16x16x256xbf16, #tpu.memory_space<vmem>>, vector<1x16x16x256xbf16>,
    return
  }
  func.func @transform_0(%arg0: i32) -> (i32, i32, i32, i32) {
    %c0_i32 = arith.constant 0 : i32
    %c0_i32_0 = arith.constant 0 : i32
    %c0_i32_1 = arith.constant 0 : i32
    %c0_i32_2 = arith.constant 0 : i32
    return %arg0, %c0_i32, %c0_i32_0, %c0_i32_1 : i32, i32, i32, i32
  }
  func.func @transform_1(%arg0: i32) -> (i32, i32, i32, i32) {
    %c0_i32 = arith.constant 0 : i32
    %c0_i32_0 = arith.constant 0 : i32
    %c0_i32_1 = arith.constant 0 : i32
    %c0_i32_2 = arith.constant 0 : i32
    %c0_i32_3 = arith.constant 0 : i32
    return %c0_i32, %c0_i32_0, %c0_i32_1, %c0_i32_2 : i32, i32, i32, i32
  }
  func.func @transform_2(%arg0: i32) -> (i32, i32) {
    %c0_i32 = arith.constant 0 : i32
    %c0_i32_0 = arith.constant 0 : i32
    %c0_i32_1 = arith.constant 0 : i32
    return %c0_i32, %c0_i32_0 : i32, i32
  }
  func.func @transform_3(%arg0: i32) -> (i32, i32, i32, i32) {
    %c0_i32 = arith.constant 0 : i32
    %c0_i32_0 = arith.constant 0 : i32
    %c0_i32_1 = arith.constant 0 : i32
    %c0_i32_2 = arith.constant 0 : i32
    return %arg0, %c0_i32, %c0_i32_0, %c0_i32_1 : i32, i32, i32, i32
  }
}

</mosaic_0001>

<bundles_post_ra>
// kernel: tpu_custom_call.1
= control target key start
LH: loop header
LB: loop body
LE: loop exit
PB: predicated region body
PF: predicated region fallthrough
CT: control target
= control target key end

     0   :  { %8 = vsyncpa [#allocation3], 0  ;;  %s8863_s0 = inlined_call_operand.vmem [shape: bf16[2,18,18,8], index: 0, kind: input, shape index: {}]   ;;  %s8864_s1 = inlined_call_operand.vmem [shape: bf16[3,3,8,256], index: 1, kind: input, shape index: {}]   ;;  %s8865_s2 = inlined_call_operand.vmem [shape: f32[1,256], index: 2, kind: input, shape index: {}]   ;;  %s8866_s3 = inlined_call_operand.hbm [shape: bf16[2,16,16,256], index: 3, kind: output, shape index: {}]  }
   0x1   :  { %10 = vsyncpa [#allocation3 + $0x1], 0  ;;  %s7095_s12 = smov 0   ;;  %s7097_s13 = smov 0  }
   0x2   :  { %s7099_s14 = smov 0   ;;  %s7101_s15 = smov 0  }
   0x3 LB: > { %s7116_s16 = sadd.s32 4294967295, %s7069_s15   ;;  %s5689_s17 = sadd.s32 4294967294, %s7069_s15   ;;  %s7069_s15 = sphi %s7101_s15, %s8876_s15   ;;  %s7065_s14 = sphi %s7099_s14, %s8875_s14   ;;  %s7061_s13 = sphi %s7097_s13, %s8874_s13   ;;  %s7057_s12 = sphi %s7095_s12, %s8873_s12  }
   0x4   : > { %s7120_s18 = sadd.s32 1, %s7069_s15   ;;  %s91_s19 = sadd.s32 1, %s7065_s14 }
   0x5   : > { %s88_s20 = ssub.s32 %s7069_s15, %s7120_s18  ;;  %p101_p0 = scmp.ne.s32.totalorder %s7065_s14, %s7061_s13 }
   0x6   : > { %p89_p1 = scmp.eq.s32.totalorder %s88_s20, 0  ;;  %p102_p2 = scmp.eq.s32.totalorder %s7116_s16, 1 }
   0x7   : > { %p107_p3 = scmp.ne.s32.totalorder %s7061_s13, %s7057_s12  ;;  %p108_p4 = scmp.eq.s32.totalorder %s5689_s17, 1 }
   0x8   : > { %s7131_s21 = scalar_select %p89_p1, %s7065_s14, %s91_s19  }
   0x9   : > { %p7133_p5 = por %p102_p2, %p101_p0  ;;  %p7137_p6 = por %p108_p4, %p107_p3 }
   0xa   : > { %p5692_p7 = scmp.ge.s32.totalorder %s7069_s15, 1  ;;  %p140_p8 = scmp.lt.s32.totalorder %s7069_s15, 3 }
   0xc   : > { %p141_p9 = pnand %p5692_p7, %p140_p8 }
   0xd   : > { %v5695_v0 = vld [vmem:[%s8864_s1 + $0x8] sm:$0xff] (!%p141_p9)  ;;  %vm711_vm0 = vcmask (!%p141_p9), 1043456   ;;  %v5934_v1 = vld [vmem:[%s8864_s1 + $0x20] sm:$0xff] (!%p141_p9)  ;;  %p164_p10 = scmp.lt.s32.totalorder (!%p141_p9), %s7116_s16, 1  ;;  %v7071_v7 = vmov (!%p141_p9), 0   ;;  %v7172_v14 = vld [vmem:[%s8864_s1 + $0x30] sm:$0xff] (!%p141_p9) }
   0xe   : > { %144 = sbr.rel (%p141_p9) target bundleno = 850 (0x352), region = 32  ;;  %v203_v2 = vld [vmem:[%s8864_s1] sm:$0xff] (!%p141_p9)  ;;  %v5713_v3 = vcombine.high (!%p141_p9), %v5695_v0, %v5695_v0  ;;  %v7153_v4 = vcombine.high (!%p141_p9), %v5934_v1, %v5934_v1  ;;  %v5712_v5 = vcombine.low (!%p141_p9), %v5695_v0, %v5695_v0  ;;  %v5951_v6 = vcombine.low (!%p141_p9), %v5934_v1, %v5934_v1  ;;  %750 = vmatprep.mubr.bf16.mxu1 (!%p141_p9), %v7071_v7  ;;  %v6002_v8 = vld [vmem:[%s8864_s1 + $0x28] sm:$0xff] (!%p141_p9)  ;;  %s161_s4 = sand.u32 (!%p141_p9), 1, %s7061_s13  }
   0xf   : > { %v5748_v9 = vcombine.high (!%p141_p9), %v203_v2, %v203_v2  ;;  %2776 = vmatprep.mubr.bf16.mxu0 (!%p141_p9), %v7071_v7  ;;  %v6020_v10 = vcombine.high (!%p141_p9), %v6002_v8, %v6002_v8  ;;  %v5747_v13 = vcombine.low (!%p141_p9), %v203_v2, %v203_v2  ;;  %v6019_v15 = vcombine.low (!%p141_p9), %v6002_v8, %v6002_v8  ;;  %s6327_s7 = sshll.u32 (!%p141_p9), %s7116_s16, 12  ;;  %s7072_s19 = smov (!%p141_p9), [#allocation2]  }
  0x10   : > { %5714 = vmatprep.subr.msk.bf16.mxu1 (!%p141_p9), %vm711_vm0, %v5713_v3  ;;  %5953 = vmatprep.subr.msk.bf16.mxu0 (!%p141_p9), %vm711_vm0, %v7153_v4  ;;  %v713_v11 = vsel (!%p141_p9), %vm711_vm0, %v5712_v5, 0  ;;  %v7166_v12 = vsel (!%p141_p9), %vm711_vm0, %v5951_v6, 0  ;;  %vm220_vm1 = vsmask.f32 (!%p141_p9), 3328  ;;  %vm221_vm2 = vsmask.f32 (!%p141_p9), 7440 }
  0x11   : > { %719 = vmatpush1.bf16.msra.mxu1 (!%p141_p9), %v713_v11  ;;  %2745 = vmatpush1.bf16.msra.mxu0 (!%p141_p9), %v7166_v12  ;;  %v7182_v16 = vsel (!%p141_p9), %vm711_vm0, %v5747_v13, 0  ;;  %v6088_v20 = vcombine.high (!%p141_p9), %v7172_v14, %v7172_v14  ;;  %vm662_vm3 = vcmask (!%p141_p9), 64512   ;;  %v7194_v29 = vsel (!%p141_p9), %vm711_vm0, %v6019_v15, 0  ;;  %vm7207_vm4 = vmor (!%p141_p9), %vm220_vm1, %vm221_vm2  ;;  %s7011_s20 = sshll.u32 (!%p141_p9), %s7072_s19, 4  ;;  %s7012_s20 = int_to_ptr.vmem [resolvable:$false] %s7011_s20 }
  0x12   : > { %5749 = vmatprep.subr.msk.bf16.mxu1 (!%p141_p9), %vm711_vm0, %v5748_v9  ;;  %6021 = vmatprep.subr.msk.bf16.mxu0 (!%p141_p9), %vm711_vm0, %v6020_v10  ;;  %v6087_v30 = vcombine.low (!%p141_p9), %v7172_v14, %v7172_v14  ;;  %vm1291_vm5 = vcmask (!%p141_p9), 1042432   ;;  %vm1292_vm6 = vcmask (!%p141_p9), 1046532   ;;  %s7013_s24 = scalar_lea.vmem (!%p141_p9), %s7012_s20, 8192 }
  0x13   : > { %vm7418_vm7 = vmor (!%p141_p9), %vm1291_vm5, %vm1292_vm6 }
  0x15   : > { %s165_s5 = scalar_select %p164_p10, %s7116_s16, 1 }
  0x16   : > { %s8822_s16 = scalar_lea.sflag [#allocation3], %s161_s4 }
  0x17   : > { %s6842_s6 = smul.u32 216, %s165_s5  ;;  %s5693_s5 = sshll.u32 %s161_s4, 8 }
  0x19   : > { %s7179_s11 = scalar_lea.vmem %s8863_s0, %s6842_s6  ;;  %s8693_s6 = scalar_lea.vmem [#allocation2], %s5693_s5 }
  0x1a   : > { %v171_v17 = vld [vmem:[%s7179_s11] sm:$0xf]  ;;  %v172_v18 = vld [vmem:[%s7179_s11 + $0x4] sm:$0xf]  ;;  %v204_v19 = vld [vmem:[%s7179_s11 + $0x8] sm:$0x1] }
  0x1b   : > { %v224_v21 = vshrl.u32 %v171_v17, 16  ;;  %v227_v22 = vshll.u32 %v171_v17, 16  ;;  %v233_v23 = vshll.u32 %v172_v18, 16  ;;  %v237_v24 = vshrl.u32 %v172_v18, 16  ;;  %v5886_v25 = vld [vmem:[%s7179_s11 + $0xc] sm:$0xf] }
  0x1c   : > { %v243_v26 = vshll.u32 %v204_v19, 16  ;;  %v7191_v27 = vld [vmem:[%s7179_s11 + $0x10] sm:$0xf]  ;;  %v2252_v28 = vshrl.u32 %v5886_v25, 16  ;;  %v7199_v35 = vld [vmem:[%s7179_s11 + $0x14] sm:$0x1] }
  0x1d   : > { %v226_v31 = vrot.slane %v224_v21, 4  ;;  %v229_v32 = vrot.slane %v227_v22, 5  ;;  %v235_v33 = vrot.slane %v233_v23, 5  ;;  %v239_v34 = vrot.slane %v237_v24, 4  ;;  %v173_v44 = vld [vmem:[%s7179_s11 + $0xc] sm:$0xf] }
  0x1e   : > { %v245_v36 = vrot.slane %v243_v26, 5  ;;  %v2254_v37 = vrot.slane %v2252_v28, 4  ;;  %v2255_v38 = vshll.u32 %v5886_v25, 16  ;;  %v2261_v39 = vshll.u32 %v7191_v27, 16  ;;  %v174_v50 = vld [vmem:[%s7179_s11 + $0x10] sm:$0xf] }
  0x1f   : > { %v230_v40 = vor.u32 %v229_v32, %v226_v31  ;;  %v240_v41 = vor.u32 %v239_v34, %v235_v33  ;;  %v2265_v42 = vshrl.u32 %v7191_v27, 16  ;;  %v2271_v43 = vshll.u32 %v7199_v35, 16  ;;  %v205_v57 = vld [vmem:[%s7179_s11 + $0x14] sm:$0x1]  ;;  %v5889_v0 = vld [vmem:[%s7179_s11 + $0x18] sm:$0xf] }
  0x20   : > { %v2257_v46 = vrot.slane %v2255_v38, 5  ;;  %v2263_v47 = vrot.slane %v2261_v39, 5  ;;  %v3067_v48 = vrot.slane %v7191_v27, 5  ;;  %v3070_v49 = vrot.slane %v7199_v35, 5  ;;  %v7225_v6 = vld [vmem:[%s7179_s11 + $0x1c] sm:$0xf] }
  0x21   : > { %v231_v51 = vrot.slane %v230_v40, 4  ;;  %v241_v52 = vrot.slane %v240_v41, 4  ;;  %v2267_v53 = vrot.slane %v2265_v42, 4  ;;  %v2273_v54 = vrot.slane %v2271_v43, 5  ;;  %v7231_v17 = vld [vmem:[%s7179_s11 + $0x20] sm:$0x1] }
  0x22   : > { %v2258_v55 = vor.u32 %v2257_v46, %v2254_v37  ;;  %v7216_v56 = vrot.slane %v3067_v48, 4  ;;  %v248_v58 = vshrl.u32 %v173_v44, 16  ;;  %v251_v59 = vshll.u32 %v173_v44, 16  ;;  %v175_v25 = vld [vmem:[%s7179_s11 + $0x18] sm:$0xf]  ;;  %s5627_s8 = sshll.u32 %s8693_s6, 4  ;;  %s8816_s8 = int_to_ptr.vmem [resolvable:$true] %s5627_s8 }
  0x23   : > { %v236_v60 = vsel %vm7207_vm4, %v231_v51, %v235_v33  ;;  %v246_v61 = vsel %vm7207_vm4, %v241_v52, %v245_v36  ;;  %v2268_v62 = vor.u32 %v2267_v53, %v2263_v47  ;;  %v257_v63 = vshll.u32 %v174_v50, 16  ;;  %v176_v33 = vld [vmem:[%s7179_s11 + $0x1c] sm:$0xf]  ;;  %v206_v40 = vld [vmem:[%s7179_s11 + $0x20] sm:$0x1]  ;;  %s7007_s17 = scalar_lea.vmem %s8816_s8, 4096  ;;  %p7014_p0 = scmp.lt.s32.totalorder %s8816_s8, %s7012_s20 }
  0x24   : > { %v5696_v1 = vcombine.low %v236_v60, %v246_v61  ;;  %v2259_v2 = vrot.slane %v2258_v55, 4  ;;  %v250_v3 = vrot.slane %v248_v58, 4  ;;  %v253_v5 = vrot.slane %v251_v59, 5  ;;  %v7256_v59 = vld [vmem:[%s7179_s11 + $0x28] sm:$0xf]  ;;  %p7008_p11 = scmp.ne.s32.totalorder %s8816_s8, %s7007_s17  ;;  %p7015_p1 = scmp.lt.s32.totalorder %s7013_s24, %s7007_s17 }
  0x25   : > { %v2269_v8 = vrot.slane %v2268_v62, 4  ;;  %v259_v9 = vrot.slane %v257_v63, 5  ;;  %v261_v10 = vshrl.u32 %v174_v50, 16  ;;  %v267_v11 = vshll.u32 %v205_v57, 16 }
  0x26   : > { %5715 = vmatmul.mubr.msk.bf16.vlgmr.msra.gmra.mrb[0].mxu1 %vm662_vm3, %v5696_v1  ;;  %v2264_v13 = vsel %vm7207_vm4, %v2259_v2, %v2263_v47  ;;  %v254_v15 = vor.u32 %v253_v5, %v250_v3  ;;  %v2276_v18 = vshrl.u32 %v5889_v0, 16  ;;  %v2279_v19 = vshll.u32 %v5889_v0, 16  ;;  %v7261_v0 = vld [vmem:[%s7179_s11 + $0x2c] sm:$0x1]  ;;  %p7009_p12 = pnand %p7008_p11, %p7133_p5  ;;  %p7016_p2 = por %p7015_p1, %p7014_p0 }
  0x27   : > { %1051 = vmatpush1.bf16.msra.mxu1 %v7182_v16  ;;  %v2274_v21 = vsel %vm7207_vm4, %v2269_v8, %v2273_v54  ;;  %760 = vmatprep.mubr.bf16.mxu1 %v7071_v7  ;;  %v263_v22 = vrot.slane %v261_v10, 4  ;;  %v269_v23 = vrot.slane %v267_v11, 5  ;;  %v2285_v24 = vshll.u32 %v7225_v6, 16  ;;  %v5892_v54 = vld [vmem:[%s7179_s11 + $0x24] sm:$0xf] }
  0x28   : > { %v5935_v26 = vcombine.low %v2264_v13, %v2274_v21  ;;  %v255_v28 = vrot.slane %v254_v15, 4  ;;  %v2278_v31 = vrot.slane %v2276_v18, 4  ;;  %v2281_v32 = vrot.slane %v2279_v19, 5  ;;  %v177_v11 = vld [vmem:[%s7179_s11 + $0x24] sm:$0xf]  ;;  %p7010_p13 = pneg %p7009_p12 }
  0x29   : > { %v264_v34 = vor.u32 %v263_v22, %v259_v9  ;;  %v2287_v36 = vrot.slane %v2285_v24, 5  ;;  %v2289_v16 = vshrl.u32 %v7225_v6, 16  ;;  %v2295_v37 = vshll.u32 %v7231_v17, 16  ;;  %v178_v21 = vld [vmem:[%s7179_s11 + $0x28] sm:$0xf] }
  0x2a   : > { %5954 = vmatmul.mubr.msk.bf16.vlgmr.msra.gmra.mrb[0].mxu0 %vm662_vm3, %v5935_v26  ;;  %v260_v38 = vsel %vm7207_vm4, %v255_v28, %v259_v9  ;;  %v2282_v39 = vor.u32 %v2281_v32, %v2278_v31  ;;  %v272_v41 = vshrl.u32 %v175_v25, 16  ;;  %v275_v42 = vshll.u32 %v175_v25, 16  ;;  %v207_v32 = vld [vmem:[%s7179_s11 + $0x2c] sm:$0x1]  ;;  %p7017_p3 = pnand %p7016_p2, %p7010_p13 }
  0x2b   : > { %3287 = vmatpush1.bf16.msra.mxu0 %v7194_v29  ;;  %2786 = vmatprep.mubr.bf16.mxu0 %v7071_v7  ;;  %v265_v43 = vrot.slane %v264_v34, 4  ;;  %v2291_v44 = vrot.slane %v2289_v16, 4  ;;  %v2297_v46 = vrot.slane %v2295_v37, 5  ;;  %v281_v47 = vshll.u32 %v176_v33, 16 }
  0x2c   : > { %v2283_v50 = vrot.slane %v2282_v39, 4  ;;  %v274_v51 = vrot.slane %v272_v41, 4  ;;  %v277_v52 = vrot.slane %v275_v42, 5  ;;  %v285_v53 = vshrl.u32 %v176_v33, 16  ;;  %6089 = vmatprep.subr.msk.bf16.mxu0 %vm711_vm0, %v6088_v20 }
  0x2d   : > { %v270_v29 = vsel %vm7207_vm4, %v265_v43, %v269_v23  ;;  %v2292_v55 = vor.u32 %v2291_v44, %v2287_v36  ;;  %v283_v57 = vrot.slane %v281_v47, 5  ;;  %v291_v58 = vshll.u32 %v206_v40, 16  ;;  %v7281_v43 = vld [vmem:[%s7179_s11 + $0x34] sm:$0xf] }
  0x2e   : > { %v5697_v60 = vcombine.low %v260_v38, %v270_v29  ;;  %v2288_v61 = vsel %vm7207_vm4, %v2283_v50, %v2287_v36  ;;  %v278_v62 = vor.u32 %v277_v52, %v274_v51  ;;  %v287_v63 = vrot.slane %v285_v53, 4  ;;  %v5895_v38 = vld [vmem:[%s7179_s11 + $0x30] sm:$0xf] }
  0x2f   : > { %v2293_v1 = vrot.slane %v2292_v55, 4  ;;  %v293_v20 = vrot.slane %v291_v58, 5  ;;  %v2300_v2 = vshrl.u32 %v5892_v54, 16  ;;  %v2303_v3 = vshll.u32 %v5892_v54, 16  ;;  %v7287_v58 = vld [vmem:[%s7179_s11 + $0x38] sm:$0x1] }
  0x30   : > { %5716 = vmatmul.mubr.msk.bf16.gmra.mrb[4].mxu1 %vm662_vm3, %v5697_v60  ;;  %v279_v5 = vrot.slane %v278_v62, 4  ;;  %v288_v8 = vor.u32 %v287_v63, %v283_v57  ;;  %v2309_v9 = vshll.u32 %v7256_v59, 16  ;;  %v2313_v10 = vshrl.u32 %v7256_v59, 16 }
  0x31   : > { %v2298_v13 = vsel %vm7207_vm4, %v2293_v1, %v2297_v46  ;;  %770 = vmatprep.mubr.bf16.mxu1 %v7071_v7  ;;  %v2302_v15 = vrot.slane %v2300_v2, 4  ;;  %v2305_v18 = vrot.slane %v2303_v3, 5  ;;  %v2319_v19 = vshll.u32 %v7261_v0, 16  ;;  %v180_v2 = vld [vmem:[%s7179_s11 + $0x34] sm:$0xf] }
  0x32   : > { %v5936_v22 = vcombine.low %v2288_v61, %v2298_v13  ;;  %v284_v23 = vsel %vm7207_vm4, %v279_v5, %v283_v57  ;;  %v289_v24 = vrot.slane %v288_v8, 4  ;;  %v2311_v25 = vrot.slane %v2309_v9, 5  ;;  %v179_v61 = vld [vmem:[%s7179_s11 + $0x30] sm:$0xf] }
  0x33   : > { %v2306_v26 = vor.u32 %v2305_v18, %v2302_v15  ;;  %v2315_v28 = vrot.slane %v2313_v10, 4  ;;  %v2321_v31 = vrot.slane %v2319_v19, 5  ;;  %v296_v33 = vshrl.u32 %v177_v11, 16 }
  0x34   : > { %5955 = vmatmul.mubr.msk.bf16.gmra.mrb[4].mxu0 %vm662_vm3, %v5936_v22  ;;  %v294_v34 = vsel %vm7207_vm4, %v289_v24, %v293_v20  ;;  %v299_v36 = vshll.u32 %v177_v11, 16  ;;  %v305_v16 = vshll.u32 %v178_v21, 16  ;;  %v309_v37 = vshrl.u32 %v178_v21, 16  ;;  %v208_v21 = vld [vmem:[%s7179_s11 + $0x38] sm:$0x1] }
  0x35   : > { %2796 = vmatprep.mubr.bf16.mxu0 %v7071_v7  ;;  %v5698_v39 = vcombine.low %v284_v23, %v294_v34  ;;  %v2307_v40 = vrot.slane %v2306_v26, 4  ;;  %v2316_v41 = vor.u32 %v2315_v28, %v2311_v25  ;;  %v298_v42 = vrot.slane %v296_v33, 4  ;;  %v5898_v24 = vld [vmem:[%s7179_s11 + $0x3c] sm:$0xf] }
  0x36   : > { %v301_v44 = vrot.slane %v299_v36, 5  ;;  %v307_v46 = vrot.slane %v305_v16, 5  ;;  %v311_v47 = vrot.slane %v309_v37, 4  ;;  %v315_v50 = vshll.u32 %v207_v32, 16  ;;  %v7306_v32 = vld [vmem:[%s7179_s11 + $0x40] sm:$0xf] }
  0x37   : > { %v2312_v51 = vsel %vm7207_vm4, %v2307_v40, %v2311_v25  ;;  %v2317_v52 = vrot.slane %v2316_v41, 4  ;;  %v2324_v53 = vshrl.u32 %v5895_v38, 16  ;;  %v2327_v54 = vshll.u32 %v5895_v38, 16  ;;  %v7311_v40 = vld [vmem:[%s7179_s11 + $0x44] sm:$0x1] }
  0x38   : > { %5717 = vmatmul.mubr.msk.bf16.gmra.mrb[8].mxu1 %vm662_vm3, %v5698_v39  ;;  %v302_v29 = vor.u32 %v301_v44, %v298_v42  ;;  %v312_v55 = vor.u32 %v311_v47, %v307_v46  ;;  %v317_v57 = vrot.slane %v315_v50, 5  ;;  %v2333_v60 = vshll.u32 %v7281_v43, 16  ;;  %v181_v50 = vld [vmem:[%s7179_s11 + $0x3c] sm:$0xf] }
  0x39   : > { %v2322_v62 = vsel %vm7207_vm4, %v2317_v52, %v2321_v31  ;;  %780 = vmatprep.mubr.bf16.mxu1 %v7071_v7  ;;  %v2326_v63 = vrot.slane %v2324_v53, 4  ;;  %v2329_v1 = vrot.slane %v2327_v54, 5  ;;  %v2337_v20 = vshrl.u32 %v7281_v43, 16 }
  0x3a   : > { %v5937_v3 = vcombine.low %v2312_v51, %v2322_v62  ;;  %v303_v5 = vrot.slane %v302_v29, 4  ;;  %v313_v8 = vrot.slane %v312_v55, 4  ;;  %v2335_v9 = vrot.slane %v2333_v60, 5 }
  0x3b   : > { %v2330_v10 = vor.u32 %v2329_v1, %v2326_v63  ;;  %v2339_v11 = vrot.slane %v2337_v20, 4  ;;  %v2343_v13 = vshll.u32 %v7287_v58, 16  ;;  %v320_v15 = vshrl.u32 %v179_v61, 16 }
  0x3c   : > { %5956 = vmatmul.mubr.msk.bf16.gmra.mrb[8].mxu0 %vm662_vm3, %v5937_v3  ;;  %v308_v18 = vsel %vm7207_vm4, %v303_v5, %v307_v46  ;;  %v318_v19 = vsel %vm7207_vm4, %v313_v8, %v317_v57  ;;  %v323_v22 = vshll.u32 %v179_v61, 16  ;;  %v329_v23 = vshll.u32 %v180_v2, 16  ;;  %v182_v61 = vld [vmem:[%s7179_s11 + $0x40] sm:$0xf]  ;;  %v209_v8 = vld [vmem:[%s7179_s11 + $0x44] sm:$0x1] }
  0x3d   : > { %2806 = vmatprep.mubr.bf16.mxu0 %v7071_v7  ;;  %v5699_v25 = vcombine.low %v308_v18, %v318_v19  ;;  %v2331_v26 = vrot.slane %v2330_v10, 4  ;;  %v2340_v28 = vor.u32 %v2339_v11, %v2335_v9  ;;  %v2345_v31 = vrot.slane %v2343_v13, 5  ;;  %v5901_v18 = vld [vmem:[%s7179_s11 + $0x48] sm:$0xf] }
  0x3e   : > { %v322_v33 = vrot.slane %v320_v15, 4  ;;  %v325_v34 = vrot.slane %v323_v22, 5  ;;  %v331_v36 = vrot.slane %v329_v23, 5  ;;  %v333_v16 = vshrl.u32 %v180_v2, 16 }
  0x3f   : > { %v2336_v37 = vsel %vm7207_vm4, %v2331_v26, %v2335_v9  ;;  %v2341_v38 = vrot.slane %v2340_v28, 4  ;;  %v339_v39 = vshll.u32 %v208_v21, 16  ;;  %v2348_v41 = vshrl.u32 %v5898_v24, 16 }
  0x40   : > { %5718 = vmatmul.mubr.msk.bf16.gmra.mrb[12].mxu1 %vm662_vm3, %v5699_v25  ;;  %v326_v42 = vor.u32 %v325_v34, %v322_v33  ;;  %v335_v44 = vrot.slane %v333_v16, 4  ;;  %v2351_v46 = vshll.u32 %v5898_v24, 16  ;;  %v2357_v47 = vshll.u32 %v7306_v32, 16  ;;  %v7331_v24 = vld [vmem:[%s7179_s11 + $0x4c] sm:$0xf] }
  0x41   : > { %v2346_v51 = vsel %vm7207_vm4, %v2341_v38, %v2345_v31  ;;  %790 = vmatprep.mubr.bf16.mxu1 %v7071_v7  ;;  %v341_v52 = vrot.slane %v339_v39, 5  ;;  %v2350_v53 = vrot.slane %v2348_v41, 4  ;;  %v2361_v54 = vshrl.u32 %v7306_v32, 16  ;;  %v7336_v16 = vld [vmem:[%s7179_s11 + $0x50] sm:$0x1] }
  0x42   : > { %v5938_v29 = vcombine.low %v2336_v37, %v2346_v51  ;;  %v327_v55 = vrot.slane %v326_v42, 4  ;;  %v336_v57 = vor.u32 %v335_v44, %v331_v36  ;;  %v2353_v60 = vrot.slane %v2351_v46, 5  ;;  %v183_v44 = vld [vmem:[%s7179_s11 + $0x48] sm:$0xf] }
  0x43   : > { %v2359_v62 = vrot.slane %v2357_v47, 5  ;;  %v2363_v63 = vrot.slane %v2361_v54, 4  ;;  %v2367_v1 = vshll.u32 %v7311_v40, 16  ;;  %v344_v20 = vshrl.u32 %v181_v50, 16 }
  0x44   : > { %5957 = vmatmul.mubr.msk.bf16.gmra.mrb[12].mxu0 %vm662_vm3, %v5938_v29  ;;  %v332_v2 = vsel %vm7207_vm4, %v327_v55, %v331_v36  ;;  %v337_v3 = vrot.slane %v336_v57, 4  ;;  %v2354_v5 = vor.u32 %v2353_v60, %v2350_v53  ;;  %v347_v9 = vshll.u32 %v181_v50, 16 }
  0x45   : > { %2816 = vmatprep.mubr.bf16.mxu0 %v7071_v7  ;;  %v2364_v10 = vor.u32 %v2363_v63, %v2359_v62  ;;  %v2369_v11 = vrot.slane %v2367_v1, 5  ;;  %v346_v13 = vrot.slane %v344_v20, 4  ;;  %v353_v15 = vshll.u32 %v182_v61, 16 }
  0x46   : > { %v342_v19 = vsel %vm7207_vm4, %v337_v3, %v341_v52  ;;  %v2355_v21 = vrot.slane %v2354_v5, 4  ;;  %v349_v22 = vrot.slane %v347_v9, 5  ;;  %v357_v23 = vshrl.u32 %v182_v61, 16  ;;  %v184_v52 = vld [vmem:[%s7179_s11 + $0x4c] sm:$0xf] }
  0x47   : > { %v5700_v25 = vcombine.low %v332_v2, %v342_v19  ;;  %v2365_v26 = vrot.slane %v2364_v10, 4  ;;  %v355_v28 = vrot.slane %v353_v15, 5  ;;  %v363_v31 = vshll.u32 %v209_v8, 16  ;;  %v210_v61 = vld [vmem:[%s7179_s11 + $0x50] sm:$0x1] }
  0x48   : > { %v2360_v33 = vsel %vm7207_vm4, %v2355_v21, %v2359_v62  ;;  %v350_v34 = vor.u32 %v349_v22, %v346_v13  ;;  %v359_v36 = vrot.slane %v357_v23, 4  ;;  %v2372_v37 = vshrl.u32 %v5901_v18, 16  ;;  %v5904_v5 = vld [vmem:[%s7179_s11 + $0x54] sm:$0xf]  ;;  %v7356_v13 = vld [vmem:[%s7179_s11 + $0x58] sm:$0xf] }
  0x49   : > { %5719 = vmatmul.mubr.msk.bf16.gmra.mrb[16].mxu1 %vm662_vm3, %v5700_v25  ;;  %v2370_v38 = vsel %vm7207_vm4, %v2365_v26, %v2369_v11  ;;  %v365_v39 = vrot.slane %v363_v31, 5  ;;  %v2375_v41 = vshll.u32 %v5901_v18, 16  ;;  %v2381_v42 = vshll.u32 %v7331_v24, 16 }
  0x4a   : > { %v5939_v46 = vcombine.low %v2360_v33, %v2370_v38  ;;  %800 = vmatprep.mubr.bf16.mxu1 %v7071_v7  ;;  %v351_v47 = vrot.slane %v350_v34, 4  ;;  %v360_v50 = vor.u32 %v359_v36, %v355_v28  ;;  %v2374_v51 = vrot.slane %v2372_v37, 4  ;;  %v7362_v33 = vld [vmem:[%s7179_s11 + $0x5c] sm:$0x1] }
  0x4b   : > { %v2377_v53 = vrot.slane %v2375_v41, 5  ;;  %v2383_v54 = vrot.slane %v2381_v42, 5  ;;  %v2385_v29 = vshrl.u32 %v7331_v24, 16  ;;  %v2391_v55 = vshll.u32 %v7336_v16, 16  ;;  %v185_v42 = vld [vmem:[%s7179_s11 + $0x54] sm:$0xf] }
  0x4c   : > { %5958 = vmatmul.mubr.msk.bf16.gmra.mrb[16].mxu0 %vm662_vm3, %v5939_v46  ;;  %v356_v57 = vsel %vm7207_vm4, %v351_v47, %v355_v28  ;;  %v361_v60 = vrot.slane %v360_v50, 4  ;;  %v368_v62 = vshrl.u32 %v183_v44, 16  ;;  %v371_v63 = vshll.u32 %v183_v44, 16 }
  0x4d   : > { %2826 = vmatprep.mubr.bf16.mxu0 %v7071_v7  ;;  %v2378_v1 = vor.u32 %v2377_v53, %v2374_v51  ;;  %v2387_v20 = vrot.slane %v2385_v29, 4  ;;  %v2393_v2 = vrot.slane %v2391_v55, 5  ;;  %v377_v3 = vshll.u32 %v184_v52, 16  ;;  %v7371_v51 = vld [vmem:[%s7179_s11 + $0x58] sm:$0xf] }
  0x4e   : > { %v366_v8 = vsel %vm7207_vm4, %v361_v60, %v365_v39  ;;  %v370_v9 = vrot.slane %v368_v62, 4  ;;  %v373_v10 = vrot.slane %v371_v63, 5  ;;  %v381_v11 = vshrl.u32 %v184_v52, 16  ;;  %v211_v60 = vld [vmem:[%s7179_s11 + $0x5c] sm:$0x1] }
  0x4f   : > { %v5701_v15 = vcombine.low %v356_v57, %v366_v8  ;;  %v2379_v18 = vrot.slane %v2378_v1, 4  ;;  %v2388_v19 = vor.u32 %v2387_v20, %v2383_v54  ;;  %v379_v21 = vrot.slane %v377_v3, 5  ;;  %v5907_v3 = vld [vmem:[%s7179_s11 + $0x60] sm:$0xf] }
  0x50   : > { %v374_v22 = vor.u32 %v373_v10, %v370_v9  ;;  %v383_v23 = vrot.slane %v381_v11, 4  ;;  %v387_v25 = vshll.u32 %v210_v61, 16  ;;  %v2396_v26 = vshrl.u32 %v5904_v5, 16  ;;  %v7385_v11 = vld [vmem:[%s7179_s11 + $0x64] sm:$0xf] }
  0x51   : > { %5720 = vmatmul.mubr.msk.bf16.gmra.mrb[20].mxu1 %vm662_vm3, %v5701_v15  ;;  %v2384_v28 = vsel %vm7207_vm4, %v2379_v18, %v2383_v54  ;;  %v2389_v31 = vrot.slane %v2388_v19, 4  ;;  %v2399_v34 = vshll.u32 %v5904_v5, 16  ;;  %v2405_v36 = vshll.u32 %v7356_v13, 16 }
  0x52   : > { %810 = vmatprep.mubr.bf16.mxu1 %v7071_v7  ;;  %v375_v37 = vrot.slane %v374_v22, 4  ;;  %v384_v38 = vor.u32 %v383_v23, %v379_v21  ;;  %v389_v39 = vrot.slane %v387_v25, 5  ;;  %v2398_v41 = vrot.slane %v2396_v26, 4 }
  0x53   : > { %v2394_v44 = vsel %vm7207_vm4, %v2389_v31, %v2393_v2  ;;  %v2401_v46 = vrot.slane %v2399_v34, 5  ;;  %v2407_v47 = vrot.slane %v2405_v36, 5  ;;  %v2409_v50 = vshrl.u32 %v7356_v13, 16  ;;  %v7392_v36 = vld [vmem:[%s7179_s11 + $0x68] sm:$0x1] }
  0x54   : > { %v5940_v52 = vcombine.low %v2384_v28, %v2394_v44  ;;  %v380_v53 = vsel %vm7207_vm4, %v375_v37, %v379_v21  ;;  %v385_v54 = vrot.slane %v384_v38, 4  ;;  %v2415_v29 = vshll.u32 %v7362_v33, 16  ;;  %v7396_v38 = vld [vmem:[%s7179_s11 + $0x60] sm:$0xf] }
  0x55   : > { %v2402_v55 = vor.u32 %v2401_v46, %v2398_v41  ;;  %v2411_v57 = vrot.slane %v2409_v50, 4  ;;  %v392_v61 = vshrl.u32 %v185_v42, 16  ;;  %v395_v62 = vshll.u32 %v185_v42, 16  ;;  %v7402_v46 = vld [vmem:[%s7179_s11 + $0x64] sm:$0xf] }
  0x56   : > { %5959 = vmatmul.mubr.msk.bf16.gmra.mrb[20].mxu0 %vm662_vm3, %v5940_v52  ;;  %v390_v63 = vsel %vm7207_vm4, %v385_v54, %v389_v39  ;;  %v2417_v1 = vrot.slane %v2415_v29, 5  ;;  %v401_v20 = vshll.u32 %v7371_v51, 16  ;;  %v405_v2 = vshrl.u32 %v7371_v51, 16 }
  0x57   : > { %2836 = vmatprep.mubr.bf16.mxu0 %v7071_v7  ;;  %v5702_v5 = vcombine.low %v380_v53, %v390_v63  ;;  %v2403_v8 = vrot.slane %v2402_v55, 4  ;;  %v2412_v9 = vor.u32 %v2411_v57, %v2407_v47  ;;  %v394_v10 = vrot.slane %v392_v61, 4 }
  0x58   : > { %v397_v15 = vrot.slane %v395_v62, 5  ;;  %v403_v18 = vrot.slane %v401_v20, 5  ;;  %v407_v19 = vrot.slane %v405_v2, 4  ;;  %v411_v21 = vshll.u32 %v211_v60, 16  ;;  %v212_v62 = vld [vmem:[%s7179_s11 + $0x68] sm:$0x1] }
  0x59   : > { %5721 = vmatmul.mubr.msk.bf16.gmra.mrb[24].mxu1 %vm662_vm3, %v5702_v5  ;;  %v2408_v22 = vsel %vm7207_vm4, %v2403_v8, %v2407_v47  ;;  %v2413_v23 = vrot.slane %v2412_v9, 4  ;;  %v2420_v25 = vshrl.u32 %v5907_v3, 16  ;;  %v2423_v26 = vshll.u32 %v5907_v3, 16  ;;  %v5970_v20 = vld [vmem:[%s7179_s11 + $0xc] sm:$0xe] }
  0x5a   : > { %820 = vmatprep.mubr.bf16.mxu1 %v7071_v7  ;;  %v398_v28 = vor.u32 %v397_v15, %v394_v10  ;;  %v408_v31 = vor.u32 %v407_v19, %v403_v18  ;;  %v413_v34 = vrot.slane %v411_v21, 5  ;;  %v2429_v37 = vshll.u32 %v7385_v11, 16  ;;  %v7424_v21 = vld [vmem:[%s7179_s11 + $0x6c] sm:$0xf] }
  0x5b   : > { %v2418_v39 = vsel %vm7207_vm4, %v2413_v23, %v2417_v1  ;;  %v2422_v41 = vrot.slane %v2420_v25, 4  ;;  %v2425_v42 = vrot.slane %v2423_v26, 5  ;;  %v2433_v44 = vshrl.u32 %v7385_v11, 16 }
  0x5c   : > { %v5941_v47 = vcombine.low %v2408_v22, %v2418_v39  ;;  %v399_v50 = vrot.slane %v398_v28, 4  ;;  %v409_v52 = vrot.slane %v408_v31, 4  ;;  %v2431_v53 = vrot.slane %v2429_v37, 5  ;;  %v7442_v39 = vld [vmem:[%s7179_s11 + $0x70] sm:$0xf] }
  0x5d   : > { %v2426_v54 = vor.u32 %v2425_v42, %v2422_v41  ;;  %v2435_v29 = vrot.slane %v2433_v44, 4  ;;  %v2439_v55 = vshll.u32 %v7392_v36, 16  ;;  %v416_v57 = vshrl.u32 %v7396_v38, 16  ;;  %v213_v44 = vld [vmem:[%s7179_s11 + $0x74] sm:$0x1] }
  0x5e   : > { %5960 = vmatmul.mubr.msk.bf16.gmra.mrb[24].mxu0 %vm662_vm3, %v5941_v47  ;;  %v404_v60 = vsel %vm7207_vm4, %v399_v50, %v403_v18  ;;  %v414_v61 = vsel %vm7207_vm4, %v409_v52, %v413_v34  ;;  %v419_v63 = vshll.u32 %v7396_v38, 16  ;;  %v425_v1 = vshll.u32 %v7402_v46, 16  ;;  %v7454_v52 = vld [vmem:[%s7179_s11 + $0x78] sm:$0xf] }
  0x5f   : > { %2846 = vmatprep.mubr.bf16.mxu0 %v7071_v7  ;;  %v5703_v2 = vcombine.low %v404_v60, %v414_v61  ;;  %v2427_v3 = vrot.slane %v2426_v54, 4  ;;  %v2436_v5 = vor.u32 %v2435_v29, %v2431_v53  ;;  %v2441_v8 = vrot.slane %v2439_v55, 5 }
  0x60   : > { %v418_v10 = vrot.slane %v416_v57, 4  ;;  %v421_v15 = vrot.slane %v419_v63, 5  ;;  %v427_v18 = vrot.slane %v425_v1, 5  ;;  %v429_v19 = vshrl.u32 %v7402_v46, 16 }
  0x61   : > { %5722 = vmatmul.mubr.msk.bf16.gmra.mrb[28].mxu1 %vm662_vm3, %v5703_v2  ;;  %v2432_v22 = vsel %vm7207_vm4, %v2427_v3, %v2431_v53  ;;  %v2437_v23 = vrot.slane %v2436_v5, 4  ;;  %v435_v25 = vshll.u32 %v212_v62, 16  ;;  %v5986_v26 = vrot.slane %v5970_v20, 9  ;;  %v214_v62 = vld [vmem:[%s7179_s11 + $0x80] sm:$0x1] }
  0x62   : > { %830 = vmatprep.mubr.bf16.mxu1 %v7071_v7  ;;  %v422_v28 = vor.u32 %v421_v15, %v418_v10  ;;  %v431_v31 = vrot.slane %v429_v19, 4  ;;  %v3071_v34 = vsel %vm7418_vm7, %v7216_v56, %v3070_v49  ;;  %v7439_v37 = vsel %vm711_vm0, %v6087_v30, 0  ;;  %v5971_v56 = vld [vmem:[%s7179_s11 + $0x18] sm:$0xe]  ;;  %v5972_v3 = vld [vmem:[%s7179_s11 + $0x24] sm:$0xe] }
  0x63   : > { %v2442_v41 = vsel %vm7207_vm4, %v2437_v23, %v2441_v8  ;;  %v437_v42 = vrot.slane %v435_v25, 5  ;;  %v3068_v35 = vsel %vm7418_vm7, %v5986_v26, %v3067_v48  ;;  %v440_v49 = vshrl.u32 %v7424_v21, 16  ;;  %v7460_v48 = vld [vmem:[%s7179_s11 + $0x7c] sm:$0xf] }
  0x64   : > { %v5942_v14 = vcombine.low %v2432_v22, %v2442_v41  ;;  %v423_v30 = vrot.slane %v422_v28, 4  ;;  %v432_v47 = vor.u32 %v431_v31, %v427_v18  ;;  %v6003_v50 = vcombine.low %v3068_v35, %v3071_v34  ;;  %v7480_v31 = vld [vmem:[%s7179_s11 + $0x84] sm:$0xf]  ;;  %v7485_v35 = vld [vmem:[%s7179_s11 + $0x88] sm:$0xf] }
  0x65   : > { %v442_v53 = vrot.slane %v440_v49, 4  ;;  %v443_v54 = vshll.u32 %v7424_v21, 16  ;;  %v449_v27 = vshll.u32 %v7442_v39, 16  ;;  %v453_v29 = vshrl.u32 %v7442_v39, 16 }
  0x66   : > { %5961 = vmatmul.mubr.msk.bf16.gmra.mrb[28].mxu0 %vm662_vm3, %v5942_v14  ;;  %v428_v55 = vsel %vm7207_vm4, %v423_v30, %v427_v18  ;;  %v433_v57 = vrot.slane %v432_v47, 4  ;;  %v459_v60 = vshll.u32 %v213_v44, 16  ;;  %v5987_v61 = vrot.slane %v5971_v56, 9 }
  0x67   : > { %3318 = vmatprep.mubr.bf16.mxu0 %v7071_v7  ;;  %v445_v63 = vrot.slane %v443_v54, 5  ;;  %v451_v1 = vrot.slane %v449_v27, 5  ;;  %v455_v20 = vrot.slane %v453_v29, 4  ;;  %v3074_v2 = vrot.slane %v7225_v6, 5  ;;  %v215_v27 = vld [vmem:[%s7179_s11 + $0x8c] sm:$0x1] }
  0x68   : > { %v438_v5 = vsel %vm7207_vm4, %v433_v57, %v437_v42  ;;  %v461_v8 = vrot.slane %v459_v60, 5  ;;  %v3077_v10 = vrot.slane %v7231_v17, 5  ;;  %v464_v15 = vshrl.u32 %v7454_v52, 16 }
  0x69   : > { %v5704_v18 = vcombine.low %v428_v55, %v438_v5  ;;  %v446_v19 = vor.u32 %v445_v63, %v442_v53  ;;  %v456_v22 = vor.u32 %v455_v20, %v451_v1  ;;  %v7475_v23 = vsel %vm7418_vm7, %v5987_v61, %v3074_v2  ;;  %v5973_v20 = vld [vmem:[%s7179_s11 + $0x30] sm:$0xe] }
  0x6a   : > { %v3076_v25 = vrot.slane %v3074_v2, 4  ;;  %v466_v26 = vrot.slane %v464_v15, 4  ;;  %v467_v6 = vshll.u32 %v7454_v52, 16  ;;  %v473_v28 = vshll.u32 %v7460_v48, 16  ;;  %v7514_v15 = vld [vmem:[%s7179_s11 + $0x94] sm:$0xf] }
  0x6b   : > { %5723 = vmatmul.mubr.msk.bf16.gmra.mrb[32].mxu1 %vm662_vm3, %v5704_v18  ;;  %v447_v17 = vrot.slane %v446_v19, 4  ;;  %v457_v34 = vrot.slane %v456_v22, 4  ;;  %v477_v41 = vshrl.u32 %v7460_v48, 16  ;;  %v483_v42 = vshll.u32 %v214_v62, 16 }
  0x6c   : > { %840 = vmatprep.mubr.bf16.mxu1 %v7071_v7  ;;  %v3078_v44 = vsel %vm7418_vm7, %v3076_v25, %v3077_v10  ;;  %v469_v49 = vrot.slane %v467_v6, 5  ;;  %v475_v56 = vrot.slane %v473_v28, 5  ;;  %v5988_v14 = vrot.slane %v5972_v3, 9 }
  0x6d   : > { %v452_v30 = vsel %vm7207_vm4, %v447_v17, %v451_v1  ;;  %v462_v47 = vsel %vm7207_vm4, %v457_v34, %v461_v8  ;;  %v6004_v53 = vcombine.low %v7475_v23, %v3078_v44  ;;  %v479_v54 = vrot.slane %v477_v41, 4  ;;  %v216_v17 = vld [vmem:[%s7179_s11 + $0x98] sm:$0x1]  ;;  %v5974_v44 = vld [vmem:[%s7179_s11 + $0x3c] sm:$0xe] }
  0x6e   : > { %6022 = vmatmul.mubr.msk.bf16.vlgmr.msra.gmra.mrb[0].mxu0 %vm662_vm3, %v6003_v50  ;;  %v5705_v29 = vcombine.low %v452_v30, %v462_v47  ;;  %v470_v55 = vor.u32 %v469_v49, %v466_v26  ;;  %v485_v57 = vrot.slane %v483_v42, 5  ;;  %v3081_v60 = vrot.slane %v7256_v59, 5 }
  0x6f   : > { %3718 = vmatpush1.bf16.msra.mxu0 %v7439_v37  ;;  %3328 = vmatprep.mubr.bf16.mxu0 %v7071_v7  ;;  %v480_v61 = vor.u32 %v479_v54, %v475_v56  ;;  %v3084_v62 = vrot.slane %v7261_v0, 5  ;;  %v488_v63 = vshrl.u32 %v7480_v31, 16  ;;  %v491_v1 = vshll.u32 %v7480_v31, 16  ;;  %v7510_v37 = vld [vmem:[%s7179_s11 + $0x90] sm:$0xf] }
  0x70   : > { %v471_v50 = vrot.slane %v470_v55, 4  ;;  %v7506_v2 = vsel %vm7418_vm7, %v5988_v14, %v3081_v60  ;;  %v3083_v3 = vrot.slane %v3081_v60, 4  ;;  %v497_v59 = vshll.u32 %v7485_v35, 16 }
  0x71   : > { %v481_v5 = vrot.slane %v480_v61, 4  ;;  %v490_v8 = vrot.slane %v488_v63, 4  ;;  %v493_v10 = vrot.slane %v491_v1, 5  ;;  %v501_v0 = vshrl.u32 %v7485_v35, 16 }
  0x72   : > { %v476_v18 = vsel %vm7207_vm4, %v471_v50, %v475_v56  ;;  %v3085_v19 = vsel %vm7418_vm7, %v3083_v3, %v3084_v62  ;;  %v7520_v22 = vrot.slane %v497_v59, 5  ;;  %v507_v23 = vshll.u32 %v215_v27, 16 }
  0x73   : > { %5724 = vmatmul.mubr.msk.bf16.gmra.mrb[36].mxu1 %vm662_vm3, %v5705_v29  ;;  %v486_v25 = vsel %vm7207_vm4, %v481_v5, %v485_v57  ;;  %v6005_v26 = vcombine.low %v7506_v2, %v3085_v19  ;;  %v494_v6 = vor.u32 %v493_v10, %v490_v8  ;;  %v503_v28 = vrot.slane %v501_v0, 4  ;;  %v7541_v29 = vld [vmem:[%s7179_s11 + $0x9c] sm:$0xf]  ;;  %v217_v0 = vld [vmem:[%s7179_s11 + $0xa4] sm:$0x1] }
  0x74   : > { %850 = vmatprep.mubr.bf16.mxu1 %v7071_v7  ;;  %v5706_v34 = vcombine.low %v476_v18, %v486_v25  ;;  %v5989_v41 = vrot.slane %v5973_v20, 9  ;;  %v3088_v42 = vrot.slane %v7281_v43, 5  ;;  %v3091_v14 = vrot.slane %v7287_v58, 5 }
  0x75   : > { %v495_v49 = vrot.slane %v494_v6, 4  ;;  %v504_v56 = vor.u32 %v503_v28, %v7520_v22  ;;  %v512_v30 = vshrl.u32 %v7510_v37, 16  ;;  %v515_v27 = vshll.u32 %v7510_v37, 16 }
  0x76   : > { %6023 = vmatmul.mubr.msk.bf16.gmra.mrb[4].mxu0 %vm662_vm3, %v6004_v53  ;;  %v7536_v47 = vsel %vm7418_vm7, %v5989_v41, %v3088_v42  ;;  %v3090_v54 = vrot.slane %v3088_v42, 4  ;;  %v521_v43 = vshll.u32 %v7514_v15, 16  ;;  %v509_v57 = vrot.slane %v507_v23, 5  ;;  %v7546_v53 = vld [vmem:[%s7179_s11 + $0xa0] sm:$0xf] }
  0x77   : > { %3338 = vmatprep.mubr.bf16.mxu0 %v7071_v7  ;;  %v505_v55 = vrot.slane %v504_v56, 4  ;;  %v514_v58 = vrot.slane %v512_v30, 4  ;;  %v525_v60 = vshrl.u32 %v7514_v15, 16  ;;  %v517_v62 = vrot.slane %v515_v27, 5  ;;  %v5975_v23 = vld [vmem:[%s7179_s11 + $0x48] sm:$0xe] }
  0x78   : > { %v7550_v61 = vsel %vm7418_vm7, %v3090_v54, %v3091_v14  ;;  %v7552_v63 = vrot.slane %v521_v43, 5  ;;  %v531_v1 = vshll.u32 %v216_v17, 16  ;;  %v5990_v2 = vrot.slane %v5974_v44, 9  ;;  %v7587_v56 = vld [vmem:[%s7179_s11 + $0xac] sm:$0xf] }
  0x79   : > { %v6006_v20 = vcombine.low %v7536_v47, %v7550_v61  ;;  %v527_v50 = vrot.slane %v525_v60, 4  ;;  %v500_v3 = vsel %vm7207_vm4, %v495_v49, %v7520_v22  ;;  %v518_v59 = vor.u32 %v517_v62, %v514_v58 }
  0x7a   : > { %v3095_v5 = vrot.slane %v7306_v32, 5  ;;  %v3098_v10 = vrot.slane %v7311_v40, 5  ;;  %v536_v18 = vshrl.u32 %v7541_v29, 16  ;;  %v539_v19 = vshll.u32 %v7541_v29, 16  ;;  %v7576_v40 = vld [vmem:[%s7179_s11 + $0xa8] sm:$0xf] }
  0x7b   : > { %5725 = vmatmul.mubr.msk.bf16.gmra.mrb[40].mxu1 %vm662_vm3, %v5706_v34  ;;  %v528_v8 = vor.u32 %v527_v50, %v7552_v63  ;;  %v510_v22 = vsel %vm7207_vm4, %v505_v55, %v509_v57  ;;  %v545_v6 = vshll.u32 %v7546_v53, 16  ;;  %v533_v28 = vrot.slane %v531_v1, 5  ;;  %v5976_v50 = vld [vmem:[%s7179_s11 + $0x54] sm:$0xe] }
  0x7c   : > { %860 = vmatprep.mubr.bf16.mxu1 %v7071_v7  ;;  %v7572_v32 = vsel %vm7418_vm7, %v5990_v2, %v3095_v5  ;;  %v3097_v25 = vrot.slane %v3095_v5, 4  ;;  %v538_v17 = vrot.slane %v536_v18, 4  ;;  %v541_v34 = vrot.slane %v539_v19, 5 }
  0x7d   : > { %v549_v41 = vshrl.u32 %v7546_v53, 16  ;;  %v519_v42 = vrot.slane %v518_v59, 4  ;;  %v7584_v49 = vrot.slane %v545_v6, 5  ;;  %v5707_v14 = vcombine.low %v500_v3, %v510_v22 }
  0x7e   : > { %6024 = vmatmul.mubr.msk.bf16.gmra.mrb[8].mxu0 %vm662_vm3, %v6005_v26  ;;  %v7582_v44 = vsel %vm7418_vm7, %v3097_v25, %v3098_v10  ;;  %v529_v30 = vrot.slane %v528_v8, 4  ;;  %v542_v27 = vor.u32 %v541_v34, %v538_v17  ;;  %v555_v26 = vshll.u32 %v217_v0, 16 }
  0x7f   : > { %3348 = vmatprep.mubr.bf16.mxu0 %v7071_v7  ;;  %v6007_v47 = vcombine.low %v7572_v32, %v7582_v44  ;;  %v551_v54 = vrot.slane %v549_v41, 4  ;;  %v5991_v43 = vrot.slane %v5975_v23, 9  ;;  %v3102_v55 = vrot.slane %v7331_v24, 5  ;;  %v7622_v41 = vld [vmem:[%s7179_s11 + $0xb4] sm:$0xf] }
  0x80   : > { %v3105_v58 = vrot.slane %v7336_v16, 5  ;;  %v560_v60 = vshrl.u32 %v7576_v40, 16  ;;  %v563_v1 = vshll.u32 %v7576_v40, 16  ;;  %v524_v24 = vsel %vm7207_vm4, %v519_v42, %v7552_v63  ;;  %v218_v63 = vld [vmem:[%s7179_s11 + $0xb0] sm:$0x1] }
  0x81   : > { %v552_v57 = vor.u32 %v551_v54, %v7584_v49  ;;  %v7598_v61 = vsel %vm7418_vm7, %v5991_v43, %v3102_v55  ;;  %v3104_v62 = vrot.slane %v3102_v55, 4  ;;  %v534_v16 = vsel %vm7207_vm4, %v529_v30, %v533_v28  ;;  %v7628_v42 = vld [vmem:[%s7179_s11 + $0xb8] sm:$0xf]  ;;  %v7638_v54 = vld [vmem:[%s8864_s1 + $0x10] sm:$0xff] }
  0x82   : > { %v569_v2 = vshll.u32 %v7587_v56, 16  ;;  %v573_v3 = vshrl.u32 %v7587_v56, 16  ;;  %v543_v59 = vrot.slane %v542_v27, 4  ;;  %v557_v8 = vrot.slane %v555_v26, 5 }
  0x83   : > { %5726 = vmatmul.mubr.msk.bf16.gmra.mrb[44].mxu1 %vm662_vm3, %v5707_v14  ;;  %v553_v5 = vrot.slane %v552_v57, 4  ;;  %v3106_v10 = vsel %vm7418_vm7, %v3104_v62, %v3105_v58  ;;  %v562_v18 = vrot.slane %v560_v60, 4  ;;  %v5992_v19 = vrot.slane %v5976_v50, 9 }
  0x84   : > { %870 = vmatprep.mubr.bf16.mxu1 %v7071_v7  ;;  %v6008_v0 = vcombine.low %v7598_v61, %v3106_v10  ;;  %v565_v23 = vrot.slane %v563_v1, 5  ;;  %v3109_v22 = vrot.slane %v7356_v13, 5  ;;  %v5708_v32 = vcombine.low %v524_v24, %v534_v16  ;;  %v5977_v13 = vld [vmem:[%s7179_s11 + $0x60] sm:$0xe] }
  0x85   : > { %v571_v25 = vrot.slane %v569_v2, 5  ;;  %v575_v6 = vrot.slane %v573_v3, 4  ;;  %v3112_v28 = vrot.slane %v7362_v33, 5  ;;  %v558_v44 = vsel %vm7207_vm4, %v553_v5, %v557_v8 }
  0x86   : > { %6025 = vmatmul.mubr.msk.bf16.gmra.mrb[12].mxu0 %vm662_vm3, %v6006_v20  ;;  %v3110_v17 = vsel %vm7418_vm7, %v5992_v19, %v3109_v22  ;;  %v3111_v34 = vrot.slane %v3109_v22, 4  ;;  %v548_v20 = vsel %vm7207_vm4, %v543_v59, %v7584_v49  ;;  %v566_v14 = vor.u32 %v565_v23, %v562_v18 }
  0x87   : > { %3358 = vmatprep.mubr.bf16.mxu0 %v7071_v7  ;;  %v579_v30 = vshll.u32 %v218_v63, 16  ;;  %v576_v27 = vor.u32 %v575_v6, %v571_v25  ;;  %v584_v26 = vshrl.u32 %v7622_v41, 16  ;;  %v587_v43 = vshll.u32 %v7622_v41, 16 }
  0x88   : > { %v3113_v33 = vsel %vm7418_vm7, %v3111_v34, %v3112_v28  ;;  %v593_v55 = vshll.u32 %v7628_v42, 16  ;;  %v597_v57 = vshrl.u32 %v7628_v42, 16  ;;  %v5993_v58 = vrot.slane %v5977_v13, 9 }
  0x89   : > { %v6009_v49 = vcombine.low %v3110_v17, %v3113_v33  ;;  %v3116_v60 = vrot.slane %v7385_v11, 5  ;;  %v3119_v61 = vrot.slane %v7392_v36, 5  ;;  %v5800_v62 = vcombine.high %v7638_v54, %v7638_v54 }
  0x8a   : > { %v5709_v1 = vcombine.low %v548_v20, %v558_v44  ;;  %v567_v16 = vrot.slane %v566_v14, 4  ;;  %v577_v2 = vrot.slane %v576_v27, 4  ;;  %v581_v3 = vrot.slane %v579_v30, 5  ;;  %v7677_v20 = vld [vmem:[%s8864_s1 + $0x38] sm:$0xff]  ;;  %v5912_v14 = vld [vmem:[%s7179_s11 + $0x74] sm:$0x1] }
  0x8b   : > { %5727 = vmatmul.mubr.msk.bf16.gmra.mrb[48].mxu1 %vm662_vm3, %v5708_v32  ;;  %v3117_v50 = vsel %vm7418_vm7, %v5993_v58, %v3116_v60  ;;  %v3118_v24 = vrot.slane %v3116_v60, 4  ;;  %v586_v59 = vrot.slane %v584_v26, 4  ;;  %5801 = vmatprep.subr.msk.bf16.mxu1 %vm711_vm0, %v5800_v62  ;;  %v589_v11 = vrot.slane %v587_v43, 5  ;;  %v5978_v30 = vld [vmem:[%s7179_s11 + $0x6c] sm:$0xe] }
  0x8c   : > { %880 = vmatprep.mubr.bf16.mxu1 %v7071_v7  ;;  %v595_v36 = vrot.slane %v593_v55, 5  ;;  %v599_v5 = vrot.slane %v597_v57, 4  ;;  %v572_v63 = vsel %vm7207_vm4, %v567_v16, %v571_v25  ;;  %v582_v18 = vsel %vm7207_vm4, %v577_v2, %v581_v3  ;;  %v5914_v43 = vld [vmem:[%s7179_s11 + $0x7c] sm:$0xf]  ;;  %v6951_v58 = vld [vmem:[%s7179_s11] sm:$0xf] }
  0x8d   : > { %v3120_v8 = vsel %vm7418_vm7, %v3118_v24, %v3119_v61  ;;  %v590_v19 = vor.u32 %v589_v11, %v586_v59  ;;  %v5710_v32 = vcombine.low %v572_v63, %v582_v18  ;;  %v6172_v33 = vcombine.high %v7677_v20, %v7677_v20  ;;  %v7694_v57 = vld [vmem:[%s8864_s1 + $0x18] sm:$0xff]  ;;  %v7699_v60 = vld [vmem:[%s7179_s11 + $0x4] sm:$0xf] }
  0x8e   : > { %6026 = vmatmul.mubr.msk.bf16.gmra.mrb[16].mxu0 %vm662_vm3, %v6007_v47  ;;  %v219_v47 = vld [vmem:[%s7179_s11 + $0xbc] sm:$0x1]  ;;  %v6010_v10 = vcombine.low %v3117_v50, %v3120_v8  ;;  %v600_v23 = vor.u32 %v599_v5, %v595_v36  ;;  %v5994_v27 = vrot.slane %v5978_v30, 9  ;;  %v3126_v26 = vrot.slane %v5912_v14, 5  ;;  %v5915_v50 = vld [vmem:[%s7179_s11 + $0x80] sm:$0x1] }
  0x8f   : > { %3368 = vmatprep.mubr.bf16.mxu0 %v7071_v7  ;;  %v603_v22 = vshll.u32 %v219_v47, 16  ;;  %v591_v6 = vrot.slane %v590_v19, 4  ;;  %6173 = vmatprep.subr.msk.bf16.mxu0 %vm711_vm0, %v6172_v33  ;;  %v5799_v55 = vcombine.low %v7638_v54, %v7638_v54  ;;  %v5731_v61 = vcombine.low %v6951_v58, %v7699_v60  ;;  %v5979_v24 = vld [vmem:[%s7179_s11 + $0x78] sm:$0xe]  ;;  %v5917_v5 = vld [vmem:[%s7179_s11 + $0x88] sm:$0xf] }
  0x90   : > { %v601_v28 = vrot.slane %v600_v23, 4  ;;  %v5868_v2 = vcombine.high %v7694_v57, %v7694_v57  ;;  %v5995_v59 = vrot.slane %v5979_v24, 9  ;;  %v6953_v8 = vld [vmem:[%s7179_s11 + $0xc] sm:$0xf]  ;;  %v7719_v47 = vld [vmem:[%s7179_s11 + $0x10] sm:$0xf] }
  0x91   : > { %v605_v17 = vrot.slane %v603_v22, 5  ;;  %v596_v25 = vsel %vm7207_vm4, %v591_v6, %v595_v36  ;;  %v1510_v16 = vsel %vm711_vm0, %v5799_v55, 0  ;;  %v3133_v36 = vrot.slane %v5915_v50, 5  ;;  %v5918_v23 = vld [vmem:[%s7179_s11 + $0x8c] sm:$0x1] }
  0x92   : > { %v3137_v19 = vrot.slane %v5917_v5, 5  ;;  %v5980_v22 = vld [vmem:[%s7179_s11 + $0x84] sm:$0xe]  ;;  %v5921_v33 = vld [vmem:[%s7179_s11 + $0x98] sm:$0x1] }
  0x93   : > { %5728 = vmatmul.mubr.msk.bf16.gmra.mrb[52].mxu1 %vm662_vm3, %v5709_v1  ;;  %v606_v34 = vsel %vm7207_vm4, %v601_v28, %v605_v17  ;;  %v3130_v1 = vrot.slane %v5914_v43, 5  ;;  %v5996_v6 = vrot.slane %v5980_v22, 9  ;;  %v3140_v17 = vrot.slane %v5918_v23, 5  ;;  %v5923_v58 = vld [vmem:[%s7179_s11 + $0xa0] sm:$0xf] }
  0x94   : > { %890 = vmatprep.mubr.bf16.mxu1 %v7071_v7  ;;  %v5711_v13 = vcombine.low %v596_v25, %v606_v34  ;;  %v3139_v28 = vrot.slane %v3137_v19, 4  ;;  %v5920_v25 = vld [vmem:[%s7179_s11 + $0x94] sm:$0xf]  ;;  %v6955_v34 = vld [vmem:[%s7179_s11 + $0x18] sm:$0xf]  ;;  %v3147_v55 = vrot.slane %v5921_v33, 5 }
  0x95   : > { %v3132_v11 = vrot.slane %v3130_v1, 4  ;;  %v3131_v63 = vsel %vm7418_vm7, %v5995_v59, %v3130_v1  ;;  %v3144_v30 = vrot.slane %v5920_v25, 5  ;;  %v3151_v24 = vrot.slane %v5923_v58, 5  ;;  %v5926_v5 = vld [vmem:[%s7179_s11 + $0xac] sm:$0xf] }
  0x96   : > { %6027 = vmatmul.mubr.msk.bf16.gmra.mrb[20].mxu0 %vm662_vm3, %v6008_v0  ;;  %v5911_v0 = vld [vmem:[%s7179_s11 + $0x70] sm:$0xf]  ;;  %v3141_v14 = vsel %vm7418_vm7, %v3139_v28, %v3140_v17  ;;  %v3158_v23 = vrot.slane %v5926_v5, 5 }
  0x97   : > { %3378 = vmatprep.mubr.bf16.mxu0 %v7071_v7  ;;  %v3123_v44 = vrot.slane %v5911_v0, 5  ;;  %v3134_v18 = vsel %vm7418_vm7, %v3132_v11, %v3133_v36  ;;  %v7735_v0 = vld [vmem:[%s7179_s11 + $0x1c] sm:$0xf]  ;;  %v3146_v43 = vrot.slane %v3144_v30, 4  ;;  %v3153_v11 = vrot.slane %v3151_v24, 4 }
  0x98   : > { %v5927_v22 = vld [vmem:[%s7179_s11 + $0xb0] sm:$0x1]  ;;  %v3160_v17 = vrot.slane %v3158_v23, 4 }
  0x99   : > { %v3124_v62 = vsel %vm7418_vm7, %v5994_v27, %v3123_v44  ;;  %v5981_v27 = vld [vmem:[%s7179_s11 + $0x90] sm:$0xe]  ;;  %v3148_v50 = vsel %vm7418_vm7, %v3146_v43, %v3147_v55  ;;  %v3161_v25 = vrot.slane %v5927_v22, 5 }
  0x9b   : > { %5729 = vmatmul.mubr.msk.bf16.gmra.mrb[56].mxu1 %vm662_vm3, %v5710_v32  ;;  %v6012_v32 = vcombine.low %v3131_v63, %v3134_v18  ;;  %v3162_v33 = vsel %vm7418_vm7, %v3160_v17, %v3161_v25  ;;  %v6907_v17 = vld [vmem:[%s7179_s11 + $0x18] sm:$0xff]  }
  0x9c   : > { %900 = vmatprep.mubr.bf16.mxu1 %v7071_v7 }
  0x9e   : > { %6028 = vmatmul.mubr.msk.bf16.gmra.mrb[24].mxu0 %vm662_vm3, %v6009_v49  ;;  %v3125_v49 = vrot.slane %v3123_v44, 4  ;;  %v3138_v44 = vsel %vm7418_vm7, %v5996_v6, %v3137_v19 }
  0x9f   : > { %3388 = vmatprep.mubr.bf16.mxu0 %v7071_v7 }
  0xa0   : > { %v3127_v54 = vsel %vm7418_vm7, %v3125_v49, %v3126_v26  ;;  %v6013_v49 = vcombine.low %v3138_v44, %v3141_v14  ;;  %v5997_v26 = vrot.slane %v5981_v27, 9  ;;  %v7783_v44 = vld [vmem:[%s7179_s11 + $0x40] sm:$0xf] }
  0xa1   : > { %v6011_v3 = vcombine.low %v3124_v62, %v3127_v54  ;;  %v7751_v62 = vld [vmem:[%s7179_s11 + $0x28] sm:$0xf] }
  0xa2   : > { %v3145_v1 = vsel %vm7418_vm7, %v5997_v26, %v3144_v30  ;;  %v5984_v26 = vld [vmem:[%s7179_s11 + $0xb4] sm:$0xe] }
  0xa3   : > { %5730 = vmatmul.mubr.msk.bf16.gmra.mrb[60].mxu1 %vm662_vm3, %v5711_v13  ;;  %v5733_v13 = vcombine.low %v6955_v34, %v7735_v0  ;;  %v5929_v34 = vld [vmem:[%s7179_s11 + $0xb8] sm:$0xf]  ;;  %v6000_v55 = vrot.slane %v5984_v26, 9  ;;  %v1303_v26 = vrot.slane %v7719_v47, 5 }
  0xa4   : > { %1082 = vmatprep.mubr.bf16.mxu1 %v7071_v7  ;;  %v3165_v27 = vrot.slane %v5929_v34, 5 }
  0xa6   : > { %6029 = vmatmul.mubr.msk.bf16.gmra.mrb[28].mxu0 %vm662_vm3, %v6010_v10  ;;  %v5732_v10 = vcombine.low %v6953_v8, %v7719_v47  ;;  %v6959_v8 = vld [vmem:[%s7179_s11 + $0x30] sm:$0xf]  ;;  %v3167_v58 = vrot.slane %v3165_v27, 4 }
  0xa7   : > { %3398 = vmatprep.mubr.bf16.mxu0 %v7071_v7 }
  0xab   : > { %5750 = vmatmul.mubr.msk.bf16.vlgmr.msra.gmra.mrb[0].mxu1 %vm662_vm3, %v5731_v61  ;;  %v6957_v61 = vld [vmem:[%s7179_s11 + $0x24] sm:$0xf] }
  0xac   : > { %1516 = vmatpush1.bf16.msra.mxu1 %v1510_v16  ;;  %1092 = vmatprep.mubr.bf16.mxu1 %v7071_v7  ;;  %v5734_v54 = vcombine.low %v6957_v61, %v7751_v62  ;;  %v5924_v16 = vld [vmem:[%s7179_s11 + $0xa4] sm:$0x1] }
  0xad   : > { %5869 = vmatprep.subr.msk.bf16.mxu1 %vm711_vm0, %v5868_v2  ;;  %v5982_v2 = vld [vmem:[%s7179_s11 + $0x9c] sm:$0xe]  ;;  %v3154_v36 = vrot.slane %v5924_v16, 5  ;;  %v3166_v16 = vsel %vm7418_vm7, %v6000_v55, %v3165_v27  ;;  %v6922_v27 = vld [vmem:[%s7179_s11 + $0x6c] sm:$0xff]  }
  0xae   : > { %6030 = vmatmul.mubr.msk.bf16.gmra.mrb[32].mxu0 %vm662_vm3, %v6011_v3  ;;  %v6014_v3 = vcombine.low %v3145_v1, %v3148_v50  ;;  %v5998_v59 = vrot.slane %v5982_v2, 9  ;;  %v6963_v1 = vld [vmem:[%s7179_s11 + $0x48] sm:$0xf]  ;;  %v7799_v50 = vld [vmem:[%s7179_s11 + $0x4c] sm:$0xf] }
  0xaf   : > { %3408 = vmatprep.mubr.bf16.mxu0 %v7071_v7  ;;  %v3155_v19 = vsel %vm7418_vm7, %v3153_v11, %v3154_v36  ;;  %v5985_v11 = vld [vmem:[%s7179_s11 + $0xc0] sm:$0xe] }
  0xb0   : > { %v3152_v18 = vsel %vm7418_vm7, %v5998_v59, %v3151_v24  ;;  %v5737_v24 = vcombine.low %v6963_v1, %v7799_v50  ;;  %v5933_v59 = vld [vmem:[%s7179_s11 + $0xc8] sm:$0x1]  ;;  %v6001_v5 = vrot.slane %v5985_v11, 9 }
  0xb1   : > { %v6015_v6 = vcombine.low %v3152_v18, %v3155_v19  ;;  %v6965_v18 = vld [vmem:[%s7179_s11 + $0x54] sm:$0xf] }
  0xb2   : > { %v5738_v19 = vcombine.low %v6965_v18, %v7371_v51  ;;  %v6171_v51 = vcombine.low %v7677_v20, %v7677_v20  ;;  %v5741_v20 = vcombine.low %v7454_v52, %v7460_v48  ;;  %v5743_v52 = vcombine.low %v7510_v37, %v7514_v15  ;;  %v6916_v48 = vld [vmem:[%s7179_s11 + $0x48] sm:$0xff]   ;;  %v6920_v15 = vld [vmem:[%s7179_s11 + $0x60] sm:$0xff]  }
  0xb3   : > { %5751 = vmatmul.mubr.msk.bf16.gmra.mrb[4].mxu1 %vm662_vm3, %v5732_v10  ;;  %v7767_v10 = vld [vmem:[%s7179_s11 + $0x34] sm:$0xf]  ;;  %v5745_v37 = vcombine.low %v7576_v40, %v7587_v56  ;;  %v1246_v18 = vld [vmem:[%s7179_s11 + $0x24] sm:$0xe] }
  0xb4   : > { %1102 = vmatprep.mubr.bf16.mxu1 %v7071_v7  ;;  %v5735_v63 = vcombine.low %v6959_v8, %v7767_v10  ;;  %v4510_v25 = vsel %vm711_vm0, %v6171_v51, 0  ;;  %v6927_v51 = vld [vmem:[%s7179_s11 + $0x90] sm:$0xff]  }
  0xb6   : > { %6031 = vmatmul.mubr.msk.bf16.gmra.mrb[36].mxu0 %vm662_vm3, %v6012_v32  ;;  %v5983_v32 = vld [vmem:[%s7179_s11 + $0xa8] sm:$0xe] }
  0xb7   : > { %3418 = vmatprep.mubr.bf16.mxu0 %v7071_v7  ;;  %v5999_v28 = vrot.slane %v5983_v32, 9 }
  0xb9   : > { %v3159_v30 = vsel %vm7418_vm7, %v5999_v28, %v3158_v23  ;;  %v7829_v28 = vld [vmem:[%s8864_s1 + $0x40] sm:$0xff] }
  0xba   : > { %v6016_v43 = vcombine.low %v3159_v30, %v3162_v33  ;;  %v6240_v34 = vcombine.high %v7829_v28, %v7829_v28  ;;  %v6966_v30 = vld [vmem:[%s7179_s11 + $0x8] sm:$0x1] }
  0xbb   : > { %5752 = vmatmul.mubr.msk.bf16.gmra.mrb[8].mxu1 %vm662_vm3, %v5733_v13  ;;  %v6961_v13 = vld [vmem:[%s7179_s11 + $0x3c] sm:$0xf]  ;;  %v1299_v33 = vrot.slane %v6966_v30, 5 }
  0xbc   : > { %1112 = vmatprep.mubr.bf16.mxu1 %v7071_v7  ;;  %v5736_v14 = vcombine.low %v6961_v13, %v7783_v44  ;;  %v6912_v13 = vld [vmem:[%s7179_s11 + $0x30] sm:$0xff]  }
  0xbe   : > { %6032 = vmatmul.mubr.msk.bf16.gmra.mrb[40].mxu0 %vm662_vm3, %v6013_v49  ;;  %v5930_v49 = vld [vmem:[%s7179_s11 + $0xbc] sm:$0x1] }
  0xbf   : > { %3428 = vmatprep.mubr.bf16.mxu0 %v7071_v7  ;;  %v3168_v61 = vrot.slane %v5930_v49, 5 }
  0xc1   : > { %v3169_v2 = vsel %vm7418_vm7, %v3167_v58, %v3168_v61  ;;  %v1305_v58 = vrot.slane %v1303_v26, 4  ;;  %v6967_v61 = vld [vmem:[%s7179_s11 + $0x14] sm:$0x1] }
  0xc2   : > { %v6017_v36 = vcombine.low %v3166_v16, %v3169_v2  ;;  %v1310_v16 = vrot.slane %v7735_v0, 5  ;;  %v1245_v2 = vld [vmem:[%s7179_s11 + $0x18] sm:$0xe] }
  0xc3   : > { %5753 = vmatmul.mubr.msk.bf16.gmra.mrb[12].mxu1 %vm662_vm3, %v5734_v54  ;;  %v5932_v54 = vld [vmem:[%s7179_s11 + $0xc4] sm:$0xf] }
  0xc4   : > { %1122 = vmatprep.mubr.bf16.mxu1 %v7071_v7  ;;  %v1312_v11 = vrot.slane %v1310_v16, 4 }
  0xc6   : > { %6033 = vmatmul.mubr.msk.bf16.gmra.mrb[44].mxu0 %vm662_vm3, %v6014_v3  ;;  %v3172_v3 = vrot.slane %v5932_v54, 5  ;;  %v1306_v54 = vrot.slane %v6967_v61, 5 }
  0xc7   : > { %3438 = vmatprep.mubr.bf16.mxu0 %v7071_v7 }
  0xc8   : > { %v3174_v8 = vrot.slane %v3172_v3, 4  ;;  %v3173_v23 = vsel %vm7418_vm7, %v6001_v5, %v3172_v3  ;;  %v1307_v47 = vsel %vm7418_vm7, %v1305_v58, %v1306_v54  ;;  %v6106_v58 = vld [vmem:[%s7179_s11 + $0x18] sm:$0xf] }
  0xcb   : > { %5754 = vmatmul.mubr.msk.bf16.gmra.mrb[16].mxu1 %vm662_vm3, %v5735_v63  ;;  %v3175_v63 = vrot.slane %v5933_v59, 5  ;;  %v5768_v59 = vrot.slane %v1245_v2, 9  ;;  %v4026_v2 = vshll.u32 %v6106_v58, 16 }
  0xcc   : > { %1132 = vmatprep.mubr.bf16.mxu1 %v7071_v7 }
  0xcd   : > { %v3176_v22 = vsel %vm7418_vm7, %v3174_v8, %v3175_v63  ;;  %v6926_v8 = vld [vmem:[%s7179_s11 + $0x84] sm:$0xff]   ;;  %v1311_v0 = vsel %vm7418_vm7, %v5768_v59, %v1310_v16  ;;  %v1317_v63 = vrot.slane %v7751_v62, 5  ;;  %v4023_v16 = vshrl.u32 %v6106_v58, 16 }
  0xce   : > { %6034 = vmatmul.mubr.msk.bf16.gmra.mrb[48].mxu0 %vm662_vm3, %v6015_v6  ;;  %v6018_v32 = vcombine.low %v3173_v23, %v3176_v22  ;;  %v5739_v6 = vcombine.low %v7396_v38, %v7402_v46  ;;  %v5740_v38 = vcombine.low %v7424_v21, %v7442_v39  ;;  %v6910_v46 = vld [vmem:[%s7179_s11 + $0x24] sm:$0xff]   ;;  %v5742_v21 = vcombine.low %v7480_v31, %v7485_v35  ;;  %v6914_v39 = vld [vmem:[%s7179_s11 + $0x3c] sm:$0xff]   ;;  %v6918_v35 = vld [vmem:[%s7179_s11 + $0x54] sm:$0xff]  }
  0xcf   : > { %3448 = vmatprep.mubr.bf16.mxu0 %v7071_v7  ;;  %v5744_v31 = vcombine.low %v7541_v29, %v7546_v53  ;;  %v1243_v29 = vld [vmem:[%s7179_s11] sm:$0xe]  ;;  %v5746_v53 = vcombine.low %v7622_v41, %v7628_v42  ;;  %v5867_v41 = vcombine.low %v7694_v57, %v7694_v57  ;;  %v1244_v42 = vld [vmem:[%s7179_s11 + $0xc] sm:$0xe]  ;;  %v5769_v23 = vrot.slane %v1246_v18, 9 }
  0xd0   : > { %v5766_v40 = vrot.slane %v1243_v29, 9  ;;  %v5767_v55 = vrot.slane %v1244_v42, 9  ;;  %v1319_v22 = vrot.slane %v1317_v63, 4  ;;  %v4028_v18 = vrot.slane %v4026_v2, 5  ;;  %v6978_v2 = vld [vmem:[%s7179_s11 + $0x74] sm:$0x1] }
  0xd1   : > { %v1941_v1 = vsel %vm711_vm0, %v5867_v41, 0  ;;  %v1318_v62 = vsel %vm7418_vm7, %v5769_v23, %v1317_v63  ;;  %v6973_v41 = vld [vmem:[%s7179_s11 + $0x58] sm:$0xf]  ;;  %v4025_v63 = vrot.slane %v4023_v16, 4 }
  0xd2   : > { %v1304_v57 = vsel %vm7418_vm7, %v5767_v55, %v1303_v26  ;;  %v1345_v42 = vrot.slane %v6973_v41, 5  ;;  %v1250_v55 = vld [vmem:[%s7179_s11 + $0x54] sm:$0xe] }
  0xd3   : > { %5755 = vmatmul.mubr.msk.bf16.gmra.mrb[20].mxu1 %vm662_vm3, %v5736_v14  ;;  %v1296_v14 = vrot.slane %v7699_v60, 5  ;;  %v5784_v3 = vcombine.low %v1304_v57, %v1307_v47  ;;  %v6974_v57 = vld [vmem:[%s7179_s11 + $0x5c] sm:$0x1] }
  0xd4   : > { %1142 = vmatprep.mubr.bf16.mxu1 %v7071_v7  ;;  %v1348_v47 = vrot.slane %v6974_v57, 5  ;;  %v6239_v57 = vcombine.low %v7829_v28, %v7829_v28 }
  0xd5   : > { %v1298_v56 = vrot.slane %v1296_v14, 4  ;;  %v1297_v60 = vsel %vm7418_vm7, %v5766_v40, %v1296_v14  ;;  %v6971_v14 = vld [vmem:[%s7179_s11 + $0x44] sm:$0x1]  ;;  %v1249_v40 = vld [vmem:[%s7179_s11 + $0x48] sm:$0xe] }
  0xd6   : > { %6035 = vmatmul.mubr.msk.bf16.gmra.mrb[52].mxu0 %vm662_vm3, %v6016_v43  ;;  %v1334_v29 = vrot.slane %v6971_v14, 5  ;;  %v6112_v14 = vld [vmem:[%s7179_s11 + $0x30] sm:$0xf] }
  0xd7   : > { %3458 = vmatprep.mubr.bf16.mxu0 %v7071_v7  ;;  %v1300_v49 = vsel %vm7418_vm7, %v1298_v56, %v1299_v33  ;;  %v1338_v33 = vrot.slane %v7799_v50, 5  ;;  %v7970_v50 = vld [vmem:[%s7179_s11 + $0x1c] sm:$0xf] }
  0xd8   : > { %v5783_v43 = vcombine.low %v1297_v60, %v1300_v49  ;;  %v6972_v49 = vld [vmem:[%s7179_s11 + $0x50] sm:$0x1]  ;;  %v4036_v59 = vshrl.u32 %v7970_v50, 16 }
  0xd9   : > { %v1340_v60 = vrot.slane %v1338_v33, 4  ;;  %v1341_v26 = vrot.slane %v6972_v49, 5 }
  0xda   : > { %v4038_v23 = vrot.slane %v4036_v59, 4 }
  0xdb   : > { %5756 = vmatmul.mubr.msk.bf16.gmra.mrb[24].mxu1 %vm662_vm3, %v5737_v24  ;;  %v6925_v24 = vld [vmem:[%s7179_s11 + $0x78] sm:$0xff]   ;;  %v1342_v54 = vsel %vm7418_vm7, %v1340_v60, %v1341_v26  ;;  %v1252_v26 = vld [vmem:[%s7179_s11 + $0x6c] sm:$0xe] }
  0xdc   : > { %1152 = vmatprep.mubr.bf16.mxu1 %v7071_v7 }
  0xde   : > { %6036 = vmatmul.mubr.msk.bf16.gmra.mrb[56].mxu0 %vm662_vm3, %v6017_v36  ;;  %v6968_v36 = vld [vmem:[%s7179_s11 + $0x20] sm:$0x1] }
  0xdf   : > { %3468 = vmatprep.mubr.bf16.mxu0 %v7071_v7  ;;  %v1313_v5 = vrot.slane %v6968_v36, 5  ;;  %v6109_v36 = vld [vmem:[%s7179_s11 + $0x24] sm:$0xf] }
  0xe3   : > { %5757 = vmatmul.mubr.msk.bf16.gmra.mrb[28].mxu1 %vm662_vm3, %v5738_v19 }
  0xe4   : > { %1162 = vmatprep.mubr.bf16.mxu1 %v7071_v7 }
  0xe6   : > { %6037 = vmatmul.mubr.msk.bf16.gmra.mrb[60].mxu0 %vm662_vm3, %v6018_v32  ;;  %v6969_v32 = vld [vmem:[%s7179_s11 + $0x2c] sm:$0x1] }
  0xe7   : > { %3749 = vmatprep.mubr.bf16.mxu0 %v7071_v7 }
  0xeb   : > { %5758 = vmatmul.mubr.msk.bf16.gmra.mrb[32].mxu1 %vm662_vm3, %v5739_v6  ;;  %v1320_v6 = vrot.slane %v6969_v32, 5 }
  0xec   : > { %1172 = vmatprep.mubr.bf16.mxu1 %v7071_v7 }
  0xee   : > { %6090 = vmatmul.mubr.msk.bf16.vlgmr.msra.gmra.mrb[0].mxu0 %vm662_vm3, %v6907_v17  ;;  %v1321_v17 = vsel %vm7418_vm7, %v1319_v22, %v1320_v6  ;;  %v6975_v22 = vld [vmem:[%s7179_s11 + $0x64] sm:$0xf]  ;;  %v7996_v6 = vld [vmem:[%s7179_s11 + $0x20] sm:$0x1] }
  0xef   : > { %4516 = vmatpush1.bf16.msra.mxu0 %v4510_v25  ;;  %3759 = vmatprep.mubr.bf16.mxu0 %v7071_v7  ;;  %v1324_v25 = vrot.slane %v7767_v10, 5  ;;  %v1352_v32 = vrot.slane %v6975_v22, 5  ;;  %v6115_v22 = vld [vmem:[%s7179_s11 + $0x3c] sm:$0xf] }
  0xf0   : > { %6241 = vmatprep.subr.msk.bf16.mxu0 %vm711_vm0, %v6240_v34  ;;  %v1247_v34 = vld [vmem:[%s7179_s11 + $0x30] sm:$0xe] }
  0xf3   : > { %5759 = vmatmul.mubr.msk.bf16.gmra.mrb[36].mxu1 %vm662_vm3, %v5740_v38  ;;  %v5786_v38 = vcombine.low %v1318_v62, %v1321_v17  ;;  %v4050_v62 = vshll.u32 %v6109_v36, 16  ;;  %v1251_v17 = vld [vmem:[%s7179_s11 + $0x60] sm:$0xe] }
  0xf4   : > { %1182 = vmatprep.mubr.bf16.mxu1 %v7071_v7 }
  0xf6   : > { %6091 = vmatmul.mubr.msk.bf16.gmra.mrb[4].mxu0 %vm662_vm3, %v6910_v46  ;;  %v5770_v46 = vrot.slane %v1247_v34, 9 }
  0xf7   : > { %3769 = vmatprep.mubr.bf16.mxu0 %v7071_v7 }
  0xf8   : > { %v1325_v10 = vsel %vm7418_vm7, %v5770_v46, %v1324_v25  ;;  %v6976_v46 = vld [vmem:[%s7179_s11 + $0x68] sm:$0x1] }
  0xfb   : > { %5760 = vmatmul.mubr.msk.bf16.gmra.mrb[40].mxu1 %vm662_vm3, %v5741_v20  ;;  %v1326_v20 = vrot.slane %v1324_v25, 4 }
  0xfc   : > { %1192 = vmatprep.mubr.bf16.mxu1 %v7071_v7 }
  0xfe   : > { %6092 = vmatmul.mubr.msk.bf16.gmra.mrb[8].mxu0 %vm662_vm3, %v6912_v13  ;;  %v6970_v13 = vld [vmem:[%s7179_s11 + $0x38] sm:$0x1] }
  0xff   : > { %3779 = vmatprep.mubr.bf16.mxu0 %v7071_v7 }
 0x103   : > { %5761 = vmatmul.mubr.msk.bf16.gmra.mrb[44].mxu1 %vm662_vm3, %v5742_v21  ;;  %v1327_v21 = vrot.slane %v6970_v13, 5  ;;  %v4029_v13 = vor.u32 %v4028_v18, %v4025_v63  ;;  %v6979_v18 = vld [vmem:[%s7179_s11 + $0x7c] sm:$0xf] }
 0x104   : > { %1202 = vmatprep.mubr.bf16.mxu1 %v7071_v7 }
 0x106   : > { %6093 = vmatmul.mubr.msk.bf16.gmra.mrb[12].mxu0 %vm662_vm3, %v6914_v39  ;;  %v6928_v39 = vld [vmem:[%s7179_s11 + $0x9c] sm:$0xff]  }
 0x107   : > { %3789 = vmatprep.mubr.bf16.mxu0 %v7071_v7 }
 0x10b   : > { %5762 = vmatmul.mubr.msk.bf16.gmra.mrb[48].mxu1 %vm662_vm3, %v5743_v52  ;;  %v1328_v52 = vsel %vm7418_vm7, %v1326_v20, %v1327_v21  ;;  %v1355_v20 = vrot.slane %v6976_v46, 5  ;;  %v6980_v46 = vld [vmem:[%s7179_s11 + $0x80] sm:$0x1] }
 0x10c   : > { %1212 = vmatprep.mubr.bf16.mxu1 %v7071_v7 }
 0x10e   : > { %6094 = vmatmul.mubr.msk.bf16.gmra.mrb[16].mxu0 %vm662_vm3, %v6916_v48  ;;  %v1331_v48 = vrot.slane %v7783_v44, 5 }
 0x10f   : > { %3799 = vmatprep.mubr.bf16.mxu0 %v7071_v7 }
 0x113   : > { %5763 = vmatmul.mubr.msk.bf16.gmra.mrb[52].mxu1 %vm662_vm3, %v5744_v31  ;;  %v1248_v31 = vld [vmem:[%s7179_s11 + $0x3c] sm:$0xe] }
 0x114   : > { %1222 = vmatprep.mubr.bf16.mxu1 %v7071_v7 }
 0x116   : > { %6095 = vmatmul.mubr.msk.bf16.gmra.mrb[20].mxu0 %vm662_vm3, %v6918_v35  ;;  %v5787_v35 = vcombine.low %v1325_v10, %v1328_v52  ;;  %v5774_v10 = vrot.slane %v1251_v17, 9  ;;  %v1354_v52 = vrot.slane %v1352_v32, 4  ;;  %v1253_v17 = vld [vmem:[%s7179_s11 + $0x78] sm:$0xe] }
 0x117   : > { %3809 = vmatprep.mubr.bf16.mxu0 %v7071_v7 }
 0x11b   : > { %5764 = vmatmul.mubr.msk.bf16.gmra.mrb[56].mxu1 %vm662_vm3, %v5745_v37  ;;  %v5771_v37 = vrot.slane %v1248_v31, 9  ;;  %v4052_v31 = vrot.slane %v4050_v62, 5 }
 0x11c   : > { %1232 = vmatprep.mubr.bf16.mxu1 %v7071_v7 }
 0x11d   : > { %v1332_v44 = vsel %vm7418_vm7, %v5771_v37, %v1331_v48 }
 0x11e   : > { %6096 = vmatmul.mubr.msk.bf16.gmra.mrb[24].mxu0 %vm662_vm3, %v6920_v15  ;;  %v1333_v15 = vrot.slane %v1331_v48, 4 }
 0x11f   : > { %3819 = vmatprep.mubr.bf16.mxu0 %v7071_v7 }
 0x120   : > { %v1335_v30 = vsel %vm7418_vm7, %v1333_v15, %v1334_v29  ;;  %v8010_v15 = vld [vmem:[%s7179_s11 + $0x2c] sm:$0x1] }
 0x121   : > { %v5788_v56 = vcombine.low %v1332_v44, %v1335_v30  ;;  %v6932_v29 = vld [vmem:[%s7179_s11 + $0xcc] sm:$0xff]  }
 0x123   : > { %5765 = vmatmul.mubr.msk.bf16.gmra.mrb[60].mxu1 %vm662_vm3, %v5746_v53  ;;  %v6929_v53 = vld [vmem:[%s7179_s11 + $0xa8] sm:$0xff]  }
 0x124   : > { %1547 = vmatprep.mubr.bf16.mxu1 %v7071_v7 }
 0x126   : > { %6097 = vmatmul.mubr.msk.bf16.gmra.mrb[28].mxu0 %vm662_vm3, %v6922_v27  ;;  %v5772_v27 = vrot.slane %v1249_v40, 9  ;;  %v1353_v40 = vsel %vm7418_vm7, %v5774_v10, %v1352_v32  ;;  %v5052_v32 = vsel %vm711_vm0, %v6239_v57, 0  ;;  %v4095_v10 = vshrl.u32 %v6115_v22, 16 }
 0x127   : > { %3829 = vmatprep.mubr.bf16.mxu0 %v7071_v7 }
 0x128   : > { %v1339_v61 = vsel %vm7418_vm7, %v5772_v27, %v1338_v33  ;;  %v8015_v33 = vld [vmem:[%s7179_s11 + $0x34] sm:$0xf]  ;;  %v6977_v27 = vld [vmem:[%s7179_s11 + $0x70] sm:$0xf] }
 0x129   : > { %v1359_v60 = vrot.slane %v6977_v27, 5  ;;  %v4080_v58 = vshll.u32 %v8015_v33, 16 }
 0x12b   : > { %5802 = vmatmul.mubr.msk.bf16.vlgmr.msra.gmra.mrb[0].mxu1 %vm662_vm3, %v5783_v43  ;;  %v6930_v43 = vld [vmem:[%s7179_s11 + $0xb4] sm:$0xff]   ;;  %v1361_v16 = vrot.slane %v1359_v60, 4 }
 0x12c   : > { %1947 = vmatpush1.bf16.msra.mxu1 %v1941_v1  ;;  %1557 = vmatprep.mubr.bf16.mxu1 %v7071_v7  ;;  %v5773_v1 = vrot.slane %v1250_v55, 9  ;;  %v4074_v55 = vshll.u32 %v6112_v14, 16 }
 0x12d   : > { %6328 = vmatprep.subr.msk.bf16.mxu1 %vm711_vm0, %v7153_v4  ;;  %v1314_v4 = vsel %vm7418_vm7, %v1312_v11, %v1313_v5  ;;  %v5789_v11 = vcombine.low %v1339_v61, %v1342_v54  ;;  %v4084_v61 = vshrl.u32 %v8015_v33, 16 }
 0x12e   : > { %6098 = vmatmul.mubr.msk.bf16.gmra.mrb[32].mxu0 %vm662_vm3, %v6925_v24  ;;  %v5785_v19 = vcombine.low %v1311_v0, %v1314_v4  ;;  %v1347_v24 = vrot.slane %v1345_v42, 4  ;;  %v1346_v5 = vsel %vm7418_vm7, %v5773_v1, %v1345_v42  ;;  %v7988_v0 = vld [vmem:[%s7179_s11 + $0x28] sm:$0xf]  ;;  %v6931_v4 = vld [vmem:[%s7179_s11 + $0xc0] sm:$0xff]   ;;  %v4066_v42 = vshll.u32 %v8010_v15, 16 }
 0x12f   : > { %3839 = vmatprep.mubr.bf16.mxu0 %v7071_v7  ;;  %v4056_v25 = vshll.u32 %v7988_v0, 16  ;;  %v4060_v34 = vshrl.u32 %v7988_v0, 16  ;;  %v4086_v63 = vrot.slane %v4084_v61, 4 }
 0x131   : > { %v4062_v37 = vrot.slane %v4060_v34, 4 }
 0x133   : > { %5803 = vmatmul.mubr.msk.bf16.gmra.mrb[4].mxu1 %vm662_vm3, %v5784_v3  ;;  %v4032_v3 = vshll.u32 %v7970_v50, 16 }
 0x134   : > { %1567 = vmatprep.mubr.bf16.mxu1 %v7071_v7 }
 0x136   : > { %6099 = vmatmul.mubr.msk.bf16.gmra.mrb[36].mxu0 %vm662_vm3, %v6926_v8  ;;  %v1349_v8 = vsel %vm7418_vm7, %v1347_v24, %v1348_v47  ;;  %v5775_v47 = vrot.slane %v1252_v26, 9 }
 0x137   : > { %3849 = vmatprep.mubr.bf16.mxu0 %v7071_v7 }
 0x13b   : > { %5804 = vmatmul.mubr.msk.bf16.gmra.mrb[8].mxu1 %vm662_vm3, %v5785_v19  ;;  %v7991_v19 = vrot.slane %v4032_v3, 5  ;;  %v1362_v3 = vrot.slane %v6978_v2, 5 }
 0x13c   : > { %1577 = vmatprep.mubr.bf16.mxu1 %v7071_v7 }
 0x13d   : > { %v4039_v21 = vor.u32 %v4038_v23, %v7991_v19  ;;  %v8043_v23 = vld [vmem:[%s7179_s11 + $0x38] sm:$0x1]  ;;  %v1363_v62 = vsel %vm7418_vm7, %v1361_v16, %v1362_v3 }
 0x13e   : > { %6100 = vmatmul.mubr.msk.bf16.gmra.mrb[40].mxu0 %vm662_vm3, %v6927_v51  ;;  %v4047_v51 = vshrl.u32 %v6109_v36, 16  ;;  %v4068_v36 = vrot.slane %v4066_v42, 5  ;;  %v1254_v42 = vld [vmem:[%s7179_s11 + $0x84] sm:$0xe] }
 0x13f   : > { %3859 = vmatprep.mubr.bf16.mxu0 %v7071_v7  ;;  %v4040_v44 = vrot.slane %v4039_v21, 4  ;;  %v5777_v16 = vrot.slane %v1254_v42, 9 }
 0x140   : > { %v4049_v48 = vrot.slane %v4047_v51, 4  ;;  %v1360_v51 = vsel %vm7418_vm7, %v5775_v47, %v1359_v60 }
 0x142   : > { %v4053_v49 = vor.u32 %v4052_v31, %v4049_v48  ;;  %v5776_v48 = vrot.slane %v1253_v17, 9 }
 0x143   : > { %5805 = vmatmul.mubr.msk.bf16.gmra.mrb[12].mxu1 %vm662_vm3, %v5786_v38  ;;  %v5790_v38 = vcombine.low %v1346_v5, %v1349_v8  ;;  %v4076_v8 = vrot.slane %v4074_v55, 5 }
 0x144   : > { %1587 = vmatprep.mubr.bf16.mxu1 %v7071_v7  ;;  %v4054_v59 = vrot.slane %v4053_v49, 4  ;;  %v8074_v49 = vld [vmem:[%s7179_s11 + $0x44] sm:$0x1] }
 0x145   : > { %v4114_v47 = vshll.u32 %v8074_v49, 16 }
 0x146   : > { %6101 = vmatmul.mubr.msk.bf16.gmra.mrb[44].mxu0 %vm662_vm3, %v6928_v39  ;;  %v4042_v39 = vshll.u32 %v7996_v6, 16 }
 0x147   : > { %3869 = vmatprep.mubr.bf16.mxu0 %v7071_v7 }
 0x148   : > { %v4044_v30 = vrot.slane %v4042_v39, 5  ;;  %v4090_v39 = vshll.u32 %v8043_v23, 16 }
 0x14a   : > { %v4045_v24 = vsel %vm7207_vm4, %v4040_v44, %v4044_v30  ;;  %v4092_v30 = vrot.slane %v4090_v39, 5  ;;  %v1255_v39 = vld [vmem:[%s7179_s11 + $0x90] sm:$0xe] }
 0x14b   : > { %5806 = vmatmul.mubr.msk.bf16.gmra.mrb[16].mxu1 %vm662_vm3, %v5787_v35  ;;  %v8007_v35 = vrot.slane %v4056_v25, 5  ;;  %v8054_v25 = vld [vmem:[%s7179_s11 + $0x40] sm:$0xf] }
 0x14c   : > { %1597 = vmatprep.mubr.bf16.mxu1 %v7071_v7 }
 0x14d   : > { %v4063_v41 = vor.u32 %v4062_v37, %v8007_v35  ;;  %v4059_v34 = vsel %vm7207_vm4, %v4054_v59, %v8007_v35  ;;  %v4104_v37 = vshll.u32 %v8054_v25, 16  ;;  %v4108_v35 = vshrl.u32 %v8054_v25, 16 }
 0x14e   : > { %6102 = vmatmul.mubr.msk.bf16.gmra.mrb[48].mxu0 %vm662_vm3, %v6929_v53  ;;  %v4030_v53 = vrot.slane %v4029_v13, 4 }
 0x14f   : > { %3879 = vmatprep.mubr.bf16.mxu0 %v7071_v7  ;;  %v8076_v26 = vrot.slane %v4104_v37, 5 }
 0x150   : > { %v4035_v1 = vsel %vm7207_vm4, %v4030_v53, %v7991_v19  ;;  %v1366_v19 = vrot.slane %v6979_v18, 5  ;;  %v4116_v18 = vrot.slane %v4114_v47, 5 }
 0x151   : > { %v6155_v28 = vcombine.low %v4035_v1, %v4045_v24 }
 0x152   : > { %v1368_v31 = vrot.slane %v1366_v19, 4  ;;  %v1367_v27 = vsel %vm7418_vm7, %v5776_v48, %v1366_v19  ;;  %v6121_v19 = vld [vmem:[%s7179_s11 + $0x54] sm:$0xf] }
 0x153   : > { %5807 = vmatmul.mubr.msk.bf16.gmra.mrb[20].mxu1 %vm662_vm3, %v5788_v56  ;;  %v1356_v56 = vsel %vm7418_vm7, %v1354_v52, %v1355_v20  ;;  %v1369_v20 = vrot.slane %v6980_v46, 5  ;;  %v4098_v52 = vshll.u32 %v6115_v22, 16  ;;  %v8100_v22 = vld [vmem:[%s7179_s11 + $0x58] sm:$0xf] }
 0x154   : > { %1607 = vmatprep.mubr.bf16.mxu1 %v7071_v7  ;;  %v5791_v54 = vcombine.low %v1353_v40, %v1356_v56  ;;  %v4097_v40 = vrot.slane %v4095_v10, 4  ;;  %v4143_v10 = vshrl.u32 %v6121_v19, 16  ;;  %v4152_v48 = vshll.u32 %v8100_v22, 16 }
 0x155   : > { %v4100_v56 = vrot.slane %v4098_v52, 5  ;;  %v1370_v60 = vsel %vm7418_vm7, %v1368_v31, %v1369_v20  ;;  %v8109_v20 = vld [vmem:[%s7179_s11 + $0x50] sm:$0x1]  ;;  %v4146_v52 = vshll.u32 %v6121_v19, 16  ;;  %v4156_v31 = vshrl.u32 %v8100_v22, 16 }
 0x156   : > { %6103 = vmatmul.mubr.msk.bf16.gmra.mrb[52].mxu0 %vm662_vm3, %v6930_v43  ;;  %v4071_v43 = vshrl.u32 %v6112_v14, 16  ;;  %v5792_v14 = vcombine.low %v1360_v51, %v1363_v62  ;;  %v5793_v1 = vcombine.low %v1367_v27, %v1370_v60  ;;  %v4138_v27 = vshll.u32 %v8109_v20, 16 }
 0x157   : > { %3889 = vmatprep.mubr.bf16.mxu0 %v7071_v7  ;;  %v4101_v57 = vor.u32 %v4100_v56, %v4097_v40  ;;  %v4145_v60 = vrot.slane %v4143_v10, 4  ;;  %v4158_v42 = vrot.slane %v4156_v31, 4  ;;  %v1257_v31 = vld [vmem:[%s7179_s11 + $0xa8] sm:$0xe] }
 0x158   : > { %v4073_v5 = vrot.slane %v4071_v43, 4  ;;  %v6981_v43 = vld [vmem:[%s7179_s11 + $0x88] sm:$0xf] }
 0x159   : > { %v1373_v55 = vrot.slane %v6981_v43, 5  ;;  %v8127_v43 = vld [vmem:[%s7179_s11 + $0x5c] sm:$0x1] }
 0x15a   : > { %v4077_v13 = vor.u32 %v4076_v8, %v4073_v5 }
 0x15b   : > { %5808 = vmatmul.mubr.msk.bf16.gmra.mrb[24].mxu1 %vm662_vm3, %v5789_v11  ;;  %v4064_v11 = vrot.slane %v4063_v41, 4  ;;  %v4110_v41 = vrot.slane %v4108_v35, 4 }
 0x15c   : > { %1617 = vmatprep.mubr.bf16.mxu1 %v7071_v7  ;;  %v4078_v53 = vrot.slane %v4077_v13, 4 }
 0x15d   : > { %v4111_v2 = vor.u32 %v4110_v41, %v8076_v26  ;;  %v8124_v41 = vrot.slane %v4152_v48, 5 }
 0x15e   : > { %6104 = vmatmul.mubr.msk.bf16.gmra.mrb[56].mxu0 %vm662_vm3, %v6931_v4  ;;  %v8039_v4 = vrot.slane %v4080_v58, 5  ;;  %v6118_v58 = vld [vmem:[%s7179_s11 + $0x48] sm:$0xf] }
 0x15f   : > { %3899 = vmatprep.mubr.bf16.mxu0 %v7071_v7  ;;  %v4119_v3 = vshrl.u32 %v6118_v58, 16  ;;  %v4122_v59 = vshll.u32 %v6118_v58, 16  ;;  %v4112_v51 = vrot.slane %v4111_v2, 4  ;;  %v1256_v2 = vld [vmem:[%s7179_s11 + $0x9c] sm:$0xe] }
 0x160   : > { %v4087_v21 = vor.u32 %v4086_v63, %v8039_v4  ;;  %v4083_v61 = vsel %vm7207_vm4, %v4078_v53, %v8039_v4 }
 0x161   : > { %v4121_v62 = vrot.slane %v4119_v3, 4  ;;  %v4124_v17 = vrot.slane %v4122_v59, 5  ;;  %v6985_v3 = vld [vmem:[%s7179_s11 + $0xa0] sm:$0xf] }
 0x162   : > { %v4088_v44 = vrot.slane %v4087_v21, 4  ;;  %v1387_v59 = vrot.slane %v6985_v3, 5  ;;  %v6130_v3 = vld [vmem:[%s7179_s11 + $0x78] sm:$0xf] }
 0x163   : > { %5809 = vmatmul.mubr.msk.bf16.gmra.mrb[28].mxu1 %vm662_vm3, %v5790_v38  ;;  %v4069_v38 = vsel %vm7207_vm4, %v4064_v11, %v4068_v36  ;;  %v1375_v11 = vrot.slane %v1373_v55, 4  ;;  %v6982_v36 = vld [vmem:[%s7179_s11 + $0x8c] sm:$0x1] }
 0x164   : > { %1627 = vmatprep.mubr.bf16.mxu1 %v7071_v7  ;;  %v4093_v24 = vsel %vm7207_vm4, %v4088_v44, %v4092_v30  ;;  %v1376_v5 = vrot.slane %v6982_v36, 5  ;;  %v4125_v44 = vor.u32 %v4124_v17, %v4121_v62  ;;  %v5778_v30 = vrot.slane %v1255_v39, 9  ;;  %v6986_v62 = vld [vmem:[%s7179_s11 + $0xa4] sm:$0x1] }
 0x165   : > { %v6157_v63 = vcombine.low %v4083_v61, %v4093_v24  ;;  %v6124_v61 = vld [vmem:[%s7179_s11 + $0x60] sm:$0xf]  ;;  %v4159_v36 = vor.u32 %v4158_v42, %v8124_v41  ;;  %v1390_v17 = vrot.slane %v6986_v62, 5 }
 0x166   : > { %6105 = vmatmul.mubr.msk.bf16.gmra.mrb[60].mxu0 %vm662_vm3, %v6932_v29  ;;  %v6156_v29 = vcombine.low %v4059_v34, %v4069_v38  ;;  %v1377_v34 = vsel %vm7418_vm7, %v1375_v11, %v1376_v5  ;;  %v6983_v38 = vld [vmem:[%s7179_s11 + $0x94] sm:$0xf]  ;;  %v4126_v58 = vrot.slane %v4125_v44, 4  ;;  %v4162_v5 = vshll.u32 %v8127_v43, 16  ;;  %v8164_v44 = vld [vmem:[%s7179_s11 + $0x70] sm:$0xf] }
 0x167   : > { %4547 = vmatprep.mubr.bf16.mxu0 %v7071_v7  ;;  %v1380_v46 = vrot.slane %v6983_v38, 5 }
 0x169   : > { %v1382_v40 = vrot.slane %v1380_v46, 4  ;;  %v1381_v24 = vsel %vm7418_vm7, %v5778_v30, %v1380_v46  ;;  %v4160_v46 = vrot.slane %v4159_v36, 4 }
 0x16b   : > { %5810 = vmatmul.mubr.msk.bf16.gmra.mrb[32].mxu1 %vm662_vm3, %v5791_v54  ;;  %v8087_v54 = vld [vmem:[%s7179_s11 + $0x4c] sm:$0xf] }
 0x16c   : > { %1637 = vmatprep.mubr.bf16.mxu1 %v7071_v7  ;;  %v4128_v8 = vshll.u32 %v8087_v54, 16  ;;  %v4132_v4 = vshrl.u32 %v8087_v54, 16 }
 0x16e   : > { %6174 = vmatmul.mubr.msk.bf16.vlgmr.msra.gmra.mrb[0].mxu0 %vm662_vm3, %v6155_v28  ;;  %v4102_v28 = vrot.slane %v4101_v57, 4  ;;  %v4130_v13 = vrot.slane %v4128_v8, 5  ;;  %v4134_v21 = vrot.slane %v4132_v4, 4  ;;  %v4167_v8 = vshrl.u32 %v6124_v61, 16 }
 0x16f   : > { %5058 = vmatpush1.bf16.msra.mxu0 %v5052_v32  ;;  %4557 = vmatprep.mubr.bf16.mxu0 %v7071_v7  ;;  %v1374_v32 = vsel %vm7418_vm7, %v5777_v16, %v1373_v55  ;;  %v4140_v16 = vrot.slane %v4138_v27, 5  ;;  %v4170_v4 = vshll.u32 %v6124_v61, 16  ;;  %v6988_v27 = vld [vmem:[%s7179_s11 + $0xb0] sm:$0x1] }
 0x170   : > { %v4107_v37 = vsel %vm7207_vm4, %v4102_v28, %v8076_v26  ;;  %v5794_v35 = vcombine.low %v1374_v32, %v1377_v34  ;;  %v4135_v56 = vor.u32 %v4134_v21, %v4130_v13  ;;  %v4148_v26 = vrot.slane %v4146_v52, 5 }
 0x171   : > { %v1389_v34 = vrot.slane %v1387_v59, 4  ;;  %v4164_v21 = vrot.slane %v4162_v5, 5  ;;  %v4169_v39 = vrot.slane %v4167_v8, 4  ;;  %v8185_v8 = vld [vmem:[%s7179_s11 + $0x7c] sm:$0xf] }
 0x172   : > { %v4136_v47 = vrot.slane %v4135_v56, 4  ;;  %v4149_v11 = vor.u32 %v4148_v26, %v4145_v60  ;;  %v1397_v60 = vrot.slane %v6988_v27, 5  ;;  %v5780_v26 = vrot.slane %v1257_v31, 9 }
 0x173   : > { %5811 = vmatmul.mubr.msk.bf16.gmra.mrb[36].mxu1 %vm662_vm3, %v5792_v14  ;;  %v4117_v14 = vsel %vm7207_vm4, %v4112_v51, %v4116_v18  ;;  %v4131_v18 = vsel %vm7207_vm4, %v4126_v58, %v4130_v13  ;;  %v5779_v51 = vrot.slane %v1256_v2, 9  ;;  %v4172_v13 = vrot.slane %v4170_v4, 5 }
 0x174   : > { %1647 = vmatprep.mubr.bf16.mxu1 %v7071_v7  ;;  %v6158_v55 = vcombine.low %v4107_v37, %v4117_v14  ;;  %v4141_v32 = vsel %vm7207_vm4, %v4136_v47, %v4140_v16  ;;  %v4150_v38 = vrot.slane %v4149_v11, 4  ;;  %v6987_v37 = vld [vmem:[%s7179_s11 + $0xac] sm:$0xf]  ;;  %v8157_v14 = vld [vmem:[%s7179_s11 + $0x68] sm:$0x1]  ;;  %v1391_v30 = vsel %vm7418_vm7, %v1389_v34, %v1390_v17 }
 0x175   : > { %v6159_v48 = vcombine.low %v4131_v18, %v4141_v32  ;;  %v4165_v56 = vsel %vm7207_vm4, %v4160_v46, %v4164_v21  ;;  %v4173_v42 = vor.u32 %v4172_v13, %v4169_v39  ;;  %v4186_v58 = vshll.u32 %v8157_v14, 16  ;;  %v1258_v32 = vld [vmem:[%s7179_s11 + $0xb4] sm:$0xe]  ;;  %v6990_v46 = vld [vmem:[%s7179_s11 + $0x70] sm:$0xf] }
 0x176   : > { %6175 = vmatmul.mubr.msk.bf16.gmra.mrb[4].mxu0 %vm662_vm3, %v6156_v29  ;;  %v6984_v29 = vld [vmem:[%s7179_s11 + $0x98] sm:$0x1]  ;;  %v4204_v16 = vshrl.u32 %v8164_v44, 16  ;;  %v4215_v34 = vshrl.u32 %v6130_v3, 16  ;;  %v2453_v21 = vshll.u32 %v6990_v46, 16  ;;  %v4224_v39 = vshll.u32 %v8185_v8, 16 }
 0x177   : > { %4567 = vmatprep.mubr.bf16.mxu0 %v7071_v7  ;;  %v1383_v53 = vrot.slane %v6984_v29, 5  ;;  %v1388_v29 = vsel %vm7418_vm7, %v5779_v51, %v1387_v59  ;;  %v4174_v11 = vrot.slane %v4173_v42, 4  ;;  %v4188_v5 = vrot.slane %v4186_v58, 5  ;;  %v6989_v51 = vld [vmem:[%s7179_s11 + $0xb8] sm:$0xf] }
 0x178   : > { %v5796_v47 = vcombine.low %v1388_v29, %v1391_v30  ;;  %v1401_v62 = vrot.slane %v6989_v51, 5  ;;  %v4206_v17 = vrot.slane %v4204_v16, 4  ;;  %v4228_v13 = vshrl.u32 %v8185_v8, 16  ;;  %v6991_v29 = vld [vmem:[%s7179_s11 + $0xbc] sm:$0x1] }
 0x179   : > { %v1384_v57 = vsel %vm7418_vm7, %v1382_v40, %v1383_v53  ;;  %v6127_v53 = vld [vmem:[%s7179_s11 + $0x6c] sm:$0xf]  ;;  %v4155_v40 = vsel %vm7207_vm4, %v4150_v38, %v8124_v41  ;;  %v4200_v41 = vshll.u32 %v8164_v44, 16  ;;  %v4218_v38 = vshll.u32 %v6130_v3, 16  ;;  %v8216_v58 = vld [vmem:[%s7179_s11 + $0x80] sm:$0x1] }
 0x17a   : > { %v5795_v19 = vcombine.low %v1381_v24, %v1384_v57  ;;  %v4191_v24 = vshrl.u32 %v6127_v53, 16  ;;  %v4194_v57 = vshll.u32 %v6127_v53, 16  ;;  %v6160_v2 = vcombine.low %v4155_v40, %v4165_v56  ;;  %v8220_v16 = vld [vmem:[%s7179_s11 + $0x88] sm:$0xf] }
 0x17b   : > { %5812 = vmatmul.mubr.msk.bf16.gmra.mrb[40].mxu1 %vm662_vm3, %v5793_v1  ;;  %v8131_v1 = vld [vmem:[%s7179_s11 + $0x64] sm:$0xf]  ;;  %v1404_v53 = vrot.slane %v6991_v29, 5  ;;  %v1403_v56 = vrot.slane %v1401_v62, 4  ;;  %v4230_v42 = vrot.slane %v4228_v13, 4 }
 0x17c   : > { %1657 = vmatprep.mubr.bf16.mxu1 %v7071_v7  ;;  %v4180_v28 = vshrl.u32 %v8131_v1, 16  ;;  %v4196_v18 = vrot.slane %v4194_v57, 5 }
 0x17d   : > { %v1405_v3 = vsel %vm7418_vm7, %v1403_v56, %v1404_v53  ;;  %v8248_v56 = vld [vmem:[%s7179_s11 + $0x94] sm:$0xf] }
 0x17e   : > { %6176 = vmatmul.mubr.msk.bf16.gmra.mrb[8].mxu0 %vm662_vm3, %v6157_v63  ;;  %v4176_v63 = vshll.u32 %v8131_v1, 16  ;;  %v4182_v52 = vrot.slane %v4180_v28, 4  ;;  %v4193_v28 = vrot.slane %v4191_v24, 4 }
 0x17f   : > { %4577 = vmatprep.mubr.bf16.mxu0 %v7071_v7 }
 0x180   : > { %v8152_v10 = vrot.slane %v4176_v63, 5  ;;  %v8190_v63 = vld [vmem:[%s7179_s11 + $0x74] sm:$0x1]  ;;  %v4197_v30 = vor.u32 %v4196_v18, %v4193_v28  ;;  %v4248_v18 = vshll.u32 %v8220_v16, 16 }
 0x181   : > { %v4210_v40 = vshll.u32 %v8190_v63, 16 }
 0x182   : > { %v4179_v31 = vsel %vm7207_vm4, %v4174_v11, %v8152_v10 }
 0x183   : > { %5813 = vmatmul.mubr.msk.bf16.gmra.mrb[44].mxu1 %vm662_vm3, %v5794_v35  ;;  %v1394_v35 = vrot.slane %v6987_v37, 5 }
 0x184   : > { %1667 = vmatprep.mubr.bf16.mxu1 %v7071_v7 }
 0x185   : > { %v1396_v61 = vrot.slane %v1394_v35, 4  ;;  %v1395_v59 = vsel %vm7418_vm7, %v5780_v26, %v1394_v35  ;;  %v5781_v35 = vrot.slane %v1258_v32, 9  ;;  %v8211_v26 = vrot.slane %v4224_v39, 5 }
 0x186   : > { %6177 = vmatmul.mubr.msk.bf16.gmra.mrb[12].mxu0 %vm662_vm3, %v6158_v55  ;;  %v4183_v55 = vor.u32 %v4182_v52, %v8152_v10  ;;  %v2457_v52 = vshrl.u32 %v6990_v46, 16  ;;  %v4217_v10 = vrot.slane %v4215_v34, 4  ;;  %v4252_v32 = vshrl.u32 %v8220_v16, 16 }
 0x187   : > { %4587 = vmatprep.mubr.bf16.mxu0 %v7071_v7  ;;  %v1398_v4 = vsel %vm7418_vm7, %v1396_v61, %v1397_v60  ;;  %v4220_v60 = vrot.slane %v4218_v38, 5  ;;  %v6133_v61 = vld [vmem:[%s7179_s11 + $0x84] sm:$0xf] }
 0x188   : > { %v4184_v36 = vrot.slane %v4183_v55, 4  ;;  %v8213_v55 = vrot.slane %v2453_v21, 5  ;;  %v2459_v24 = vrot.slane %v2457_v52, 4  ;;  %v4242_v28 = vshll.u32 %v6133_v61, 16 }
 0x189   : > { %v4221_v11 = vor.u32 %v4220_v60, %v4217_v10 }
 0x18a   : > { %v4189_v37 = vsel %vm7207_vm4, %v4184_v36, %v4188_v5  ;;  %v4231_v36 = vor.u32 %v4230_v42, %v8211_v26  ;;  %v4234_v5 = vshll.u32 %v8216_v58, 16  ;;  %v2460_v51 = vor.u32 %v2459_v24, %v8213_v55 }
 0x18b   : > { %5814 = vmatmul.mubr.msk.bf16.gmra.mrb[48].mxu1 %vm662_vm3, %v5795_v19  ;;  %v8192_v19 = vrot.slane %v4200_v41, 5  ;;  %v6161_v57 = vcombine.low %v4179_v31, %v4189_v37  ;;  %v4198_v41 = vrot.slane %v4197_v30, 4  ;;  %v4222_v21 = vrot.slane %v4221_v11, 4  ;;  %v8242_v30 = vld [vmem:[%s7179_s11 + $0x8c] sm:$0x1] }
 0x18c   : > { %1677 = vmatprep.mubr.bf16.mxu1 %v7071_v7  ;;  %v4232_v39 = vrot.slane %v4231_v36, 4  ;;  %v4236_v13 = vrot.slane %v4234_v5, 5  ;;  %v4250_v31 = vrot.slane %v4248_v18, 5  ;;  %v4254_v37 = vrot.slane %v4252_v32, 4 }
 0x18d   : > { %v4207_v27 = vor.u32 %v4206_v17, %v8192_v19  ;;  %v4203_v38 = vsel %vm7207_vm4, %v4198_v41, %v8192_v19  ;;  %v6136_v19 = vld [vmem:[%s7179_s11 + $0x90] sm:$0xf]  ;;  %v4227_v60 = vsel %vm7207_vm4, %v4222_v21, %v8211_v26  ;;  %v4276_v11 = vshrl.u32 %v8248_v56, 16 }
 0x18e   : > { %6178 = vmatmul.mubr.msk.bf16.gmra.mrb[16].mxu0 %vm662_vm3, %v6159_v48  ;;  %v5797_v48 = vcombine.low %v1395_v59, %v1398_v4  ;;  %v4239_v4 = vshrl.u32 %v6133_v61, 16  ;;  %v4237_v42 = vsel %vm7207_vm4, %v4232_v39, %v4236_v13  ;;  %v4255_v24 = vor.u32 %v4254_v37, %v4250_v31  ;;  %v6935_v26 = vld [vmem:[%s7179_s11 + $0xc] sm:$0xff]   ;;  %v6139_v39 = vld [vmem:[%s7179_s11 + $0x9c] sm:$0xf]  ;;  %v8275_v13 = vld [vmem:[%s7179_s11 + $0xa0] sm:$0xf] }
 0x18f   : > { %4597 = vmatprep.mubr.bf16.mxu0 %v7071_v7  ;;  %v4208_v59 = vrot.slane %v4207_v27, 4 }
 0x190   : > { %v4241_v52 = vrot.slane %v4239_v4, 4  ;;  %v6163_v4 = vcombine.low %v4227_v60, %v4237_v42  ;;  %v4256_v18 = vrot.slane %v4255_v24, 4 }
 0x193   : > { %5815 = vmatmul.mubr.msk.bf16.gmra.mrb[52].mxu1 %vm662_vm3, %v5796_v47  ;;  %v4212_v47 = vrot.slane %v4210_v40, 5  ;;  %v5910_v40 = vld [vmem:[%s7179_s11 + $0x6c] sm:$0xf] }
 0x194   : > { %1687 = vmatprep.mubr.bf16.mxu1 %v7071_v7  ;;  %v2444_v27 = vshrl.u32 %v5910_v40, 16  ;;  %v2447_v10 = vshll.u32 %v5910_v40, 16  ;;  %v4290_v40 = vshll.u32 %v6139_v39, 16 }
 0x195   : > { %v4213_v46 = vsel %vm7207_vm4, %v4208_v59, %v4212_v47  ;;  %v4272_v59 = vshll.u32 %v8248_v56, 16 }
 0x196   : > { %6179 = vmatmul.mubr.msk.bf16.gmra.mrb[20].mxu0 %vm662_vm3, %v6160_v2  ;;  %v1402_v2 = vsel %vm7418_vm7, %v5781_v35, %v1401_v62  ;;  %v6992_v62 = vld [vmem:[%s7179_s11 + $0x74] sm:$0x1]  ;;  %v2461_v35 = vrot.slane %v2460_v51, 4  ;;  %v6162_v53 = vcombine.low %v4203_v38, %v4213_v46  ;;  %v2446_v41 = vrot.slane %v2444_v27, 4  ;;  %v8266_v46 = vld [vmem:[%s7179_s11 + $0x98] sm:$0x1] }
 0x197   : > { %4607 = vmatprep.mubr.bf16.mxu0 %v7071_v7  ;;  %v2463_v17 = vshll.u32 %v6992_v62, 16  ;;  %v5798_v34 = vcombine.low %v1402_v2, %v1405_v3  ;;  %v2449_v47 = vrot.slane %v2447_v10, 5  ;;  %v4263_v2 = vshrl.u32 %v6136_v19, 16  ;;  %v8291_v10 = vld [vmem:[%s7179_s11 + $0xac] sm:$0xf] }
 0x198   : > { %v4266_v3 = vshll.u32 %v6136_v19, 16  ;;  %v4278_v38 = vrot.slane %v4276_v11, 4  ;;  %v4296_v19 = vshll.u32 %v8275_v13, 16  ;;  %v4300_v27 = vshrl.u32 %v8275_v13, 16 }
 0x199   : > { %v2465_v29 = vrot.slane %v2463_v17, 5  ;;  %v2450_v36 = vor.u32 %v2449_v47, %v2446_v41  ;;  %v4265_v62 = vrot.slane %v4263_v2, 4  ;;  %v4292_v41 = vrot.slane %v4290_v40, 5 }
 0x19a   : > { %v4268_v17 = vrot.slane %v4266_v3, 5  ;;  %v4298_v47 = vrot.slane %v4296_v19, 5  ;;  %v4302_v2 = vrot.slane %v4300_v27, 4  ;;  %v8296_v3 = vld [vmem:[%s7179_s11 + $0xa4] sm:$0x1] }
 0x19b   : > { %5816 = vmatmul.mubr.msk.bf16.gmra.mrb[56].mxu1 %vm662_vm3, %v5797_v48  ;;  %v4244_v48 = vrot.slane %v4242_v28, 5  ;;  %v2466_v5 = vsel %vm7207_vm4, %v2461_v35, %v2465_v29  ;;  %v2451_v51 = vrot.slane %v2450_v36, 4  ;;  %v6936_v29 = vld [vmem:[%s7179_s11 + $0x18] sm:$0xff]   ;;  %v4324_v36 = vshrl.u32 %v8291_v10, 16 }
 0x19c   : > { %1697 = vmatprep.mubr.bf16.mxu1 %v7071_v7 }
 0x19d   : > { %v4245_v61 = vor.u32 %v4244_v48, %v4241_v52  ;;  %v2456_v21 = vsel %vm7207_vm4, %v2451_v51, %v8213_v55  ;;  %v4269_v55 = vor.u32 %v4268_v17, %v4265_v62  ;;  %v4306_v51 = vshll.u32 %v8296_v3, 16 }
 0x19e   : > { %6180 = vmatmul.mubr.msk.bf16.gmra.mrb[24].mxu0 %vm662_vm3, %v6161_v57  ;;  %v4258_v57 = vshll.u32 %v8242_v30, 16  ;;  %v8277_v52 = vcombine.low %v2456_v21, %v2466_v5  ;;  %v4326_v21 = vrot.slane %v4324_v36, 4 }
 0x19f   : > { %4617 = vmatprep.mubr.bf16.mxu0 %v7071_v7  ;;  %v4246_v28 = vrot.slane %v4245_v61, 4  ;;  %v4270_v42 = vrot.slane %v4269_v55, 4 }
 0x1a0   : > { %v4260_v32 = vrot.slane %v4258_v57, 5 }
 0x1a1   : > { %v4251_v48 = vsel %vm7207_vm4, %v4246_v28, %v4250_v31  ;;  %v6142_v31 = vld [vmem:[%s7179_s11 + $0xa8] sm:$0xf] }
 0x1a2   : > { %v4261_v37 = vsel %vm7207_vm4, %v4256_v18, %v4260_v32  ;;  %v4314_v11 = vshll.u32 %v6142_v31, 16  ;;  %v4303_v32 = vor.u32 %v4302_v2, %v4298_v47 }
 0x1a3   : > { %5817 = vmatmul.mubr.msk.bf16.gmra.mrb[60].mxu1 %vm662_vm3, %v5798_v34  ;;  %v4274_v34 = vrot.slane %v4272_v59, 5  ;;  %v6164_v60 = vcombine.low %v4251_v48, %v4261_v37  ;;  %v4311_v59 = vshrl.u32 %v6142_v31, 16  ;;  %v6145_v37 = vld [vmem:[%s7179_s11 + $0xb4] sm:$0xf] }
 0x1a4   : > { %1978 = vmatprep.mubr.bf16.mxu1 %v7071_v7  ;;  %v4316_v17 = vrot.slane %v4314_v11, 5  ;;  %v4335_v19 = vshrl.u32 %v6145_v37, 16  ;;  %v4338_v27 = vshll.u32 %v6145_v37, 16 }
 0x1a5   : > { %v4279_v35 = vor.u32 %v4278_v38, %v4274_v34  ;;  %v4275_v5 = vsel %vm7207_vm4, %v4270_v42, %v4274_v34  ;;  %v4313_v62 = vrot.slane %v4311_v59, 4  ;;  %v8313_v34 = vld [vmem:[%s7179_s11 + $0xb8] sm:$0xf]  ;;  %v6938_v42 = vld [vmem:[%s7179_s11 + $0x30] sm:$0xff]  }
 0x1a6   : > { %6181 = vmatmul.mubr.msk.bf16.gmra.mrb[28].mxu0 %vm662_vm3, %v6162_v53  ;;  %v4287_v53 = vshrl.u32 %v6139_v39, 16  ;;  %v8309_v39 = vld [vmem:[%s7179_s11 + $0xb0] sm:$0x1]  ;;  %v4344_v31 = vshll.u32 %v8313_v34, 16  ;;  %v4337_v59 = vrot.slane %v4335_v19, 4  ;;  %v4340_v11 = vrot.slane %v4338_v27, 5 }
 0x1a7   : > { %4627 = vmatprep.mubr.bf16.mxu0 %v7071_v7  ;;  %v4280_v61 = vrot.slane %v4279_v35, 4  ;;  %v4304_v35 = vrot.slane %v4303_v32, 4  ;;  %v4330_v40 = vshll.u32 %v8309_v39, 16 }
 0x1a8   : > { %v4289_v57 = vrot.slane %v4287_v53, 4 }
 0x1a9   : > { %v4332_v2 = vrot.slane %v4330_v40, 5 }
 0x1aa   : > { %v4293_v18 = vor.u32 %v4292_v41, %v4289_v57 }
 0x1ab   : > { %5870 = vmatmul.mubr.msk.bf16.vlgmr.msra.gmra.mrb[0].mxu1 %vm662_vm3, %v6935_v26  ;;  %v4320_v26 = vshll.u32 %v8291_v10, 16 }
 0x1ac   : > { %6329 = vmatpush1.bf16.msra.mxu1 %v7166_v12  ;;  %1988 = vmatprep.mubr.bf16.mxu1 %v7071_v7  ;;  %v4282_v12 = vshll.u32 %v8266_v46, 16  ;;  %v4294_v55 = vrot.slane %v4293_v18, 4  ;;  %v8333_v18 = vld [vmem:[%s7179_s11 + $0xc4] sm:$0xf] }
 0x1ad   : > { %v4322_v38 = vrot.slane %v4320_v26, 5  ;;  %v4346_v26 = vrot.slane %v4344_v31, 5  ;;  %v4368_v37 = vshll.u32 %v8333_v18, 16 }
 0x1ae   : > { %6182 = vmatmul.mubr.msk.bf16.gmra.mrb[32].mxu0 %vm662_vm3, %v6163_v4  ;;  %v4284_v24 = vrot.slane %v4282_v12, 5  ;;  %v6937_v4 = vld [vmem:[%s7179_s11 + $0x24] sm:$0xff]   ;;  %v4308_v12 = vrot.slane %v4306_v51, 5  ;;  %v4341_v51 = vor.u32 %v4340_v11, %v4337_v59 }
 0x1af   : > { %4637 = vmatprep.mubr.bf16.mxu0 %v7071_v7  ;;  %v4327_v53 = vor.u32 %v4326_v21, %v4322_v38  ;;  %v4370_v27 = vrot.slane %v4368_v37, 5  ;;  %v6940_v11 = vld [vmem:[%s7179_s11 + $0x48] sm:$0xff]  }
 0x1b0   : > { %v4285_v28 = vsel %vm7207_vm4, %v4280_v61, %v4284_v24  ;;  %v4299_v61 = vsel %vm7207_vm4, %v4294_v55, %v4298_v47  ;;  %v4309_v24 = vsel %vm7207_vm4, %v4304_v35, %v4308_v12  ;;  %v4372_v55 = vshrl.u32 %v8333_v18, 16 }
 0x1b1   : > { %v6165_v48 = vcombine.low %v4275_v5, %v4285_v28  ;;  %v4328_v41 = vrot.slane %v4327_v53, 4  ;;  %v6166_v5 = vcombine.low %v4299_v61, %v4309_v24  ;;  %v6148_v28 = vld [vmem:[%s7179_s11 + $0xc0] sm:$0xf]  ;;  %v4342_v12 = vrot.slane %v4341_v51, 4  ;;  %v8353_v61 = vld [vmem:[%s7179_s11 + $0xd0] sm:$0xf] }
 0x1b2   : > { %v4359_v21 = vshrl.u32 %v6148_v28, 16  ;;  %v4374_v31 = vrot.slane %v4372_v55, 4  ;;  %v8368_v55 = vld [vmem:[%s7179_s11 + $0xd4] sm:$0x1] }
 0x1b3   : > { %5871 = vmatmul.mubr.msk.bf16.gmra.mrb[4].mxu1 %vm662_vm3, %v6936_v29  ;;  %v4317_v29 = vor.u32 %v4316_v17, %v4313_v62  ;;  %v4333_v32 = vsel %vm7207_vm4, %v4328_v41, %v4332_v2  ;;  %v4347_v24 = vsel %vm7207_vm4, %v4342_v12, %v4346_v26 }
 0x1b4   : > { %1998 = vmatprep.mubr.bf16.mxu1 %v7071_v7  ;;  %v4361_v40 = vrot.slane %v4359_v21, 4  ;;  %v4375_v2 = vor.u32 %v4374_v31, %v4370_v27 }
 0x1b5   : > { %v4318_v57 = vrot.slane %v4317_v29, 4 }
 0x1b6   : > { %6183 = vmatmul.mubr.msk.bf16.gmra.mrb[36].mxu0 %vm662_vm3, %v6164_v60  ;;  %v4348_v60 = vshrl.u32 %v8313_v34, 16  ;;  %v4376_v51 = vrot.slane %v4375_v2, 4  ;;  %v4838_v2 = vrot.slane %v7970_v50, 5 }
 0x1b7   : > { %4647 = vmatprep.mubr.bf16.mxu0 %v7071_v7  ;;  %v4323_v47 = vsel %vm7207_vm4, %v4318_v57, %v4322_v38  ;;  %v6939_v38 = vld [vmem:[%s7179_s11 + $0x3c] sm:$0xff]  }
 0x1b8   : > { %v4350_v36 = vrot.slane %v4348_v60, 4  ;;  %v6167_v35 = vcombine.low %v4323_v47, %v4333_v32  ;;  %v8348_v60 = vld [vmem:[%s7179_s11 + $0xc8] sm:$0x1] }
 0x1b9   : > { %v4378_v59 = vshll.u32 %v8348_v60, 16 }
 0x1ba   : > { %v4351_v62 = vor.u32 %v4350_v36, %v4346_v26  ;;  %v4396_v26 = vshrl.u32 %v8353_v61, 16 }
 0x1bb   : > { %5872 = vmatmul.mubr.msk.bf16.gmra.mrb[8].mxu1 %vm662_vm3, %v6937_v4  ;;  %v8328_v4 = vld [vmem:[%s7179_s11 + $0xbc] sm:$0x1] }
 0x1bc   : > { %2008 = vmatprep.mubr.bf16.mxu1 %v7071_v7  ;;  %v4354_v17 = vshll.u32 %v8328_v4, 16  ;;  %v4352_v29 = vrot.slane %v4351_v62, 4  ;;  %v4380_v62 = vrot.slane %v4378_v59, 5  ;;  %v4398_v37 = vrot.slane %v4396_v26, 4  ;;  %v6190_v59 = vld [vmem:[%s7179_s11 + $0x18] sm:$0xe] }
 0x1bd   : > { %v6943_v26 = vld [vmem:[%s7179_s11 + $0x6c] sm:$0xff]  }
 0x1be   : > { %6184 = vmatmul.mubr.msk.bf16.gmra.mrb[40].mxu0 %vm662_vm3, %v6165_v48  ;;  %v4362_v48 = vshll.u32 %v6148_v28, 16  ;;  %v4356_v53 = vrot.slane %v4354_v17, 5  ;;  %v4392_v28 = vshll.u32 %v8353_v61, 16  ;;  %v4381_v12 = vsel %vm7207_vm4, %v4376_v51, %v4380_v62  ;;  %v6191_v51 = vld [vmem:[%s7179_s11 + $0x24] sm:$0xe] }
 0x1bf   : > { %4657 = vmatprep.mubr.bf16.mxu0 %v7071_v7 }
 0x1c0   : > { %v4364_v19 = vrot.slane %v4362_v48, 5  ;;  %v4357_v57 = vsel %vm7207_vm4, %v4352_v29, %v4356_v53  ;;  %v4394_v48 = vrot.slane %v4392_v28, 5  ;;  %v4841_v28 = vrot.slane %v7996_v6, 5 }
 0x1c1   : > { %v6168_v47 = vcombine.low %v4347_v24, %v4357_v57  ;;  %v6207_v6 = vrot.slane %v6191_v51, 9 }
 0x1c2   : > { %v4365_v41 = vor.u32 %v4364_v19, %v4361_v40  ;;  %v4399_v53 = vor.u32 %v4398_v37, %v4394_v48  ;;  %v4402_v40 = vshll.u32 %v8368_v55, 16 }
 0x1c3   : > { %5873 = vmatmul.mubr.msk.bf16.gmra.mrb[12].mxu1 %vm662_vm3, %v6938_v42  ;;  %v6151_v42 = vld [vmem:[%s7179_s11 + $0xcc] sm:$0xf] }
 0x1c4   : > { %2018 = vmatprep.mubr.bf16.mxu1 %v7071_v7  ;;  %v4383_v36 = vshrl.u32 %v6151_v42, 16  ;;  %v4366_v32 = vrot.slane %v4365_v41, 4  ;;  %v4404_v24 = vrot.slane %v4402_v40, 5  ;;  %v6945_v40 = vld [vmem:[%s7179_s11 + $0x84] sm:$0xff]  }
 0x1c6   : > { %6185 = vmatmul.mubr.msk.bf16.gmra.mrb[44].mxu0 %vm662_vm3, %v6166_v5  ;;  %v4386_v5 = vshll.u32 %v6151_v42, 16  ;;  %v4385_v17 = vrot.slane %v4383_v36, 4  ;;  %v4400_v42 = vrot.slane %v4399_v53, 4  ;;  %v6206_v36 = vrot.slane %v6190_v59, 9 }
 0x1c7   : > { %4667 = vmatprep.mubr.bf16.mxu0 %v7071_v7  ;;  %v4855_v53 = vrot.slane %v8043_v23, 5  ;;  %v4866_v59 = vrot.slane %v8087_v54, 5 }
 0x1c8   : > { %v4388_v21 = vrot.slane %v4386_v5, 5  ;;  %v4405_v41 = vsel %vm7207_vm4, %v4400_v42, %v4404_v24  ;;  %v4840_v5 = vrot.slane %v4838_v2, 4  ;;  %v6193_v42 = vld [vmem:[%s7179_s11 + $0x3c] sm:$0xe] }
 0x1c9   : > { %v6209_v23 = vrot.slane %v6193_v42, 9 }
 0x1ca   : > { %v4389_v29 = vor.u32 %v4388_v21, %v4385_v17  ;;  %v4842_v50 = vsel %vm7418_vm7, %v4840_v5, %v4841_v28  ;;  %v4848_v21 = vrot.slane %v8010_v15, 5  ;;  %v4868_v5 = vrot.slane %v4866_v59, 4 }
 0x1cb   : > { %5874 = vmatmul.mubr.msk.bf16.gmra.mrb[16].mxu1 %vm662_vm3, %v6939_v38  ;;  %v4371_v38 = vsel %vm7207_vm4, %v4366_v32, %v4370_v27  ;;  %v6942_v27 = vld [vmem:[%s7179_s11 + $0x60] sm:$0xff]   ;;  %v4845_v32 = vrot.slane %v7988_v0, 5  ;;  %v4869_v28 = vrot.slane %v8109_v20, 5 }
 0x1cc   : > { %2028 = vmatprep.mubr.bf16.mxu1 %v7071_v7  ;;  %v6169_v19 = vcombine.low %v4371_v38, %v4381_v12  ;;  %v4390_v31 = vrot.slane %v4389_v29, 4  ;;  %v4852_v38 = vrot.slane %v8015_v33, 5 }
 0x1cd   : > { %v4847_v17 = vrot.slane %v4845_v32, 4  ;;  %v4846_v37 = vsel %vm7418_vm7, %v6207_v6, %v4845_v32  ;;  %v4870_v54 = vsel %vm7418_vm7, %v4868_v5, %v4869_v28  ;;  %v6195_v32 = vld [vmem:[%s7179_s11 + $0x54] sm:$0xe]  ;;  %v4876_v6 = vrot.slane %v8127_v43, 5  ;;  %v5916_v5 = vld [vmem:[%s7179_s11 + $0x84] sm:$0xf] }
 0x1ce   : > { %6186 = vmatmul.mubr.msk.bf16.gmra.mrb[48].mxu0 %vm662_vm3, %v6167_v35  ;;  %v6941_v35 = vld [vmem:[%s7179_s11 + $0x54] sm:$0xff]   ;;  %v4395_v57 = vsel %vm7207_vm4, %v4390_v31, %v4394_v48  ;;  %v4854_v29 = vrot.slane %v4852_v38, 4  ;;  %v4859_v31 = vrot.slane %v8054_v25, 5  ;;  %v6211_v20 = vrot.slane %v6195_v32, 9  ;;  %v6994_v32 = vld [vmem:[%s7179_s11 + $0x80] sm:$0x1] }
 0x1cf   : > { %4677 = vmatprep.mubr.bf16.mxu0 %v7071_v7  ;;  %v6944_v48 = vld [vmem:[%s7179_s11 + $0x78] sm:$0xff]   ;;  %v4849_v0 = vsel %vm7418_vm7, %v4847_v17, %v4848_v21  ;;  %v4880_v17 = vrot.slane %v8131_v1, 5  ;;  %v6948_v21 = vld [vmem:[%s7179_s11 + $0xa8] sm:$0xff]  }
 0x1d0   : > { %v6224_v12 = vcombine.low %v4846_v37, %v4849_v0  ;;  %v4856_v33 = vsel %vm7418_vm7, %v4854_v29, %v4855_v53  ;;  %v6196_v37 = vld [vmem:[%s7179_s11 + $0x60] sm:$0xe]  ;;  %v4887_v29 = vrot.slane %v8164_v44, 5  ;;  %v6949_v53 = vld [vmem:[%s7179_s11 + $0xb4] sm:$0xff]  }
 0x1d1   : > { %v6212_v0 = vrot.slane %v6196_v37, 9  ;;  %v4901_v37 = vrot.slane %v8220_v16, 5  ;;  %v4904_v16 = vrot.slane %v8242_v30, 5 }
 0x1d3   : > { %5875 = vmatmul.mubr.msk.bf16.gmra.mrb[20].mxu1 %vm662_vm3, %v6940_v11  ;;  %v6170_v11 = vcombine.low %v4395_v57, %v4405_v41  ;;  %v4862_v57 = vrot.slane %v8074_v49, 5  ;;  %v6946_v41 = vld [vmem:[%s7179_s11 + $0x90] sm:$0xff]   ;;  %v4881_v1 = vsel %vm7418_vm7, %v6212_v0, %v4880_v17 }
 0x1d4   : > { %2038 = vmatprep.mubr.bf16.mxu1 %v7071_v7 }
 0x1d6   : > { %6187 = vmatmul.mubr.msk.bf16.gmra.mrb[52].mxu0 %vm662_vm3, %v6168_v47  ;;  %v4839_v47 = vsel %vm7418_vm7, %v6206_v36, %v4838_v2  ;;  %v4860_v2 = vsel %vm7418_vm7, %v6209_v23, %v4859_v31  ;;  %v6993_v23 = vld [vmem:[%s7179_s11 + $0x7c] sm:$0xf] }
 0x1d7   : > { %4687 = vmatprep.mubr.bf16.mxu0 %v7071_v7  ;;  %v6223_v62 = vcombine.low %v4839_v47, %v4842_v50  ;;  %v4873_v50 = vrot.slane %v8100_v22, 5 }
 0x1d9   : > { %v4874_v22 = vsel %vm7418_vm7, %v6211_v20, %v4873_v50  ;;  %v2492_v20 = vshrl.u32 %v5916_v5, 16 }
 0x1db   : > { %5876 = vmatmul.mubr.msk.bf16.gmra.mrb[24].mxu1 %vm662_vm3, %v6941_v35  ;;  %v6192_v35 = vld [vmem:[%s7179_s11 + $0x30] sm:$0xe] }
 0x1dc   : > { %2048 = vmatprep.mubr.bf16.mxu1 %v7071_v7  ;;  %v6208_v15 = vrot.slane %v6192_v35, 9  ;;  %v4883_v35 = vrot.slane %v8157_v14, 5  ;;  %v5913_v14 = vld [vmem:[%s7179_s11 + $0x78] sm:$0xf] }
 0x1dd   : > { %v2468_v42 = vshrl.u32 %v5913_v14, 16 }
 0x1de   : > { %6188 = vmatmul.mubr.msk.bf16.gmra.mrb[56].mxu0 %vm662_vm3, %v6169_v19  ;;  %v4853_v19 = vsel %vm7418_vm7, %v6208_v15, %v4852_v38  ;;  %v4882_v38 = vrot.slane %v4880_v17, 4  ;;  %v6197_v15 = vld [vmem:[%s7179_s11 + $0x6c] sm:$0xe] }
 0x1df   : > { %4697 = vmatprep.mubr.bf16.mxu0 %v7071_v7  ;;  %v6225_v24 = vcombine.low %v4853_v19, %v4856_v33  ;;  %v6213_v19 = vrot.slane %v6197_v15, 9  ;;  %v4889_v33 = vrot.slane %v4887_v29, 4 }
 0x1e1   : > { %v4888_v44 = vsel %vm7418_vm7, %v6213_v19, %v4887_v29  ;;  %v5919_v29 = vld [vmem:[%s7179_s11 + $0x90] sm:$0xf]  ;;  %v4903_v19 = vrot.slane %v4901_v37, 4 }
 0x1e3   : > { %5877 = vmatmul.mubr.msk.bf16.gmra.mrb[28].mxu1 %vm662_vm3, %v6942_v27  ;;  %v4861_v27 = vrot.slane %v4859_v31, 4  ;;  %v4890_v31 = vrot.slane %v8190_v63, 5  ;;  %v4894_v63 = vrot.slane %v8185_v8, 5 }
 0x1e4   : > { %2058 = vmatprep.mubr.bf16.mxu1 %v7071_v7 }
 0x1e5   : > { %v4863_v25 = vsel %vm7418_vm7, %v4861_v27, %v4862_v57  ;;  %v2477_v27 = vshll.u32 %v6993_v23, 16  ;;  %v2481_v57 = vshrl.u32 %v6993_v23, 16 }
 0x1e6   : > { %6189 = vmatmul.mubr.msk.bf16.gmra.mrb[60].mxu0 %vm662_vm3, %v6170_v11  ;;  %v6194_v11 = vld [vmem:[%s7179_s11 + $0x48] sm:$0xe]  ;;  %v6226_v36 = vcombine.low %v4860_v2, %v4863_v25  ;;  %v2470_v2 = vrot.slane %v2468_v42, 4  ;;  %v2516_v42 = vshrl.u32 %v5919_v29, 16 }
 0x1e7   : > { %5089 = vmatprep.mubr.bf16.mxu0 %v7071_v7  ;;  %v6210_v49 = vrot.slane %v6194_v11, 9  ;;  %v6198_v11 = vld [vmem:[%s7179_s11 + $0x78] sm:$0xe] }
 0x1e9   : > { %v4867_v47 = vsel %vm7418_vm7, %v6210_v49, %v4866_v59  ;;  %v6950_v59 = vld [vmem:[%s7179_s11 + $0xc0] sm:$0xff]   ;;  %v2483_v49 = vrot.slane %v2481_v57, 4 }
 0x1ea   : > { %v6227_v51 = vcombine.low %v4867_v47, %v4870_v54  ;;  %v4896_v47 = vrot.slane %v4894_v63, 4  ;;  %v4897_v54 = vrot.slane %v8216_v58, 5 }
 0x1eb   : > { %5878 = vmatmul.mubr.msk.bf16.gmra.mrb[32].mxu1 %vm662_vm3, %v6943_v26  ;;  %v6947_v26 = vld [vmem:[%s7179_s11 + $0x9c] sm:$0xff]  }
 0x1ec   : > { %2068 = vmatprep.mubr.bf16.mxu1 %v7071_v7 }
 0x1ee   : > { %6242 = vmatmul.mubr.msk.bf16.vlgmr.msra.gmra.mrb[0].mxu0 %vm662_vm3, %v6223_v62  ;;  %v4875_v62 = vrot.slane %v4873_v50, 4 }
 0x1ef   : > { %5099 = vmatprep.mubr.bf16.mxu0 %v7071_v7 }
 0x1f3   : > { %5879 = vmatmul.mubr.msk.bf16.gmra.mrb[36].mxu1 %vm662_vm3, %v6944_v48  ;;  %v4877_v48 = vsel %vm7418_vm7, %v4875_v62, %v4876_v6  ;;  %v2495_v62 = vshll.u32 %v5916_v5, 16  ;;  %v6995_v6 = vld [vmem:[%s7179_s11 + $0x88] sm:$0xf] }
 0x1f4   : > { %2078 = vmatprep.mubr.bf16.mxu1 %v7071_v7  ;;  %v6228_v43 = vcombine.low %v4874_v22, %v4877_v48  ;;  %v2501_v17 = vshll.u32 %v6995_v6, 16  ;;  %v4898_v22 = vsel %vm7418_vm7, %v4896_v47, %v4897_v54 }
 0x1f6   : > { %6243 = vmatmul.mubr.msk.bf16.gmra.mrb[4].mxu0 %vm662_vm3, %v6224_v12  ;;  %v4884_v12 = vsel %vm7418_vm7, %v4882_v38, %v4883_v35  ;;  %v6199_v38 = vld [vmem:[%s7179_s11 + $0x84] sm:$0xe]  ;;  %v2494_v35 = vrot.slane %v2492_v20, 4 }
 0x1f7   : > { %5109 = vmatprep.mubr.bf16.mxu0 %v7071_v7 }
 0x1fb   : > { %5880 = vmatmul.mubr.msk.bf16.gmra.mrb[40].mxu1 %vm662_vm3, %v6945_v40  ;;  %v6229_v40 = vcombine.low %v4881_v1, %v4884_v12  ;;  %v2497_v1 = vrot.slane %v2495_v62, 5  ;;  %v8501_v12 = vrot.slane %v2501_v17, 5  ;;  %v4911_v17 = vrot.slane %v8266_v46, 5  ;;  %v6201_v46 = vld [vmem:[%s7179_s11 + $0x9c] sm:$0xe] }
 0x1fc   : > { %2088 = vmatprep.mubr.bf16.mxu1 %v7071_v7 }
 0x1fe   : > { %6244 = vmatmul.mubr.msk.bf16.gmra.mrb[8].mxu0 %vm662_vm3, %v6225_v24  ;;  %v2471_v24 = vshll.u32 %v5913_v14, 16 }
 0x1ff   : > { %5119 = vmatprep.mubr.bf16.mxu0 %v7071_v7 }
 0x200   : > { %v2473_v25 = vrot.slane %v2471_v24, 5  ;;  %v2519_v24 = vshll.u32 %v5919_v29, 16 }
 0x202   : > { %v2474_v50 = vor.u32 %v2473_v25, %v2470_v2  ;;  %v4908_v2 = vrot.slane %v8248_v56, 5  ;;  %v5922_v25 = vld [vmem:[%s7179_s11 + $0x9c] sm:$0xf]  ;;  %v2521_v5 = vrot.slane %v2519_v24, 5 }
 0x203   : > { %5881 = vmatmul.mubr.msk.bf16.gmra.mrb[44].mxu1 %vm662_vm3, %v6946_v41  ;;  %v4891_v41 = vsel %vm7418_vm7, %v4889_v33, %v4890_v31  ;;  %v2498_v31 = vor.u32 %v2497_v1, %v2494_v35 }
 0x204   : > { %2098 = vmatprep.mubr.bf16.mxu1 %v7071_v7  ;;  %v6230_v28 = vcombine.low %v4888_v44, %v4891_v41  ;;  %v2475_v48 = vrot.slane %v2474_v50, 4  ;;  %v6997_v44 = vld [vmem:[%s7179_s11 + $0x94] sm:$0xf]  ;;  %v2540_v50 = vshrl.u32 %v5922_v25, 16 }
 0x205   : > { %v2525_v41 = vshll.u32 %v6997_v44, 16  ;;  %v2529_v30 = vshrl.u32 %v6997_v44, 16 }
 0x206   : > { %6245 = vmatmul.mubr.msk.bf16.gmra.mrb[12].mxu0 %vm662_vm3, %v6226_v36  ;;  %v2479_v36 = vrot.slane %v2477_v27, 5  ;;  %v6996_v27 = vld [vmem:[%s7179_s11 + $0x8c] sm:$0x1] }
 0x207   : > { %5129 = vmatprep.mubr.bf16.mxu0 %v7071_v7  ;;  %v2511_v57 = vshll.u32 %v6996_v27, 16  ;;  %v8524_v47 = vrot.slane %v2525_v41, 5  ;;  %v2531_v54 = vrot.slane %v2529_v30, 4  ;;  %v7000_v27 = vld [vmem:[%s7179_s11 + $0xa4] sm:$0x1] }
 0x208   : > { %v2484_v8 = vor.u32 %v2483_v49, %v2479_v36  ;;  %v2480_v14 = vsel %vm7207_vm4, %v2475_v48, %v2479_v36  ;;  %v6200_v36 = vld [vmem:[%s7179_s11 + $0x90] sm:$0xe]  ;;  %v2518_v49 = vrot.slane %v2516_v42, 4  ;;  %v7001_v30 = vld [vmem:[%s7179_s11 + $0xac] sm:$0xf] }
 0x209   : > { %v6216_v62 = vrot.slane %v6200_v36, 9 }
 0x20b   : > { %5882 = vmatmul.mubr.msk.bf16.gmra.mrb[48].mxu1 %vm662_vm3, %v6947_v26  ;;  %v6214_v26 = vrot.slane %v6198_v11, 9  ;;  %v2499_v11 = vrot.slane %v2498_v31, 4  ;;  %v4909_v29 = vsel %vm7418_vm7, %v6216_v62, %v4908_v2  ;;  %v4918_v31 = vrot.slane %v8296_v3, 5 }
 0x20c   : > { %2108 = vmatprep.mubr.bf16.mxu1 %v7071_v7 }
 0x20d   : > { %v4895_v58 = vsel %vm7418_vm7, %v6214_v26, %v4894_v63  ;;  %v4905_v63 = vsel %vm7418_vm7, %v4903_v19, %v4904_v16  ;;  %v2513_v26 = vrot.slane %v2511_v57, 5  ;;  %v2504_v48 = vsel %vm7207_vm4, %v2499_v11, %v8501_v12 }
 0x20e   : > { %6246 = vmatmul.mubr.msk.bf16.gmra.mrb[16].mxu0 %vm662_vm3, %v6227_v51  ;;  %v2487_v51 = vshll.u32 %v6994_v32, 16  ;;  %v6998_v32 = vld [vmem:[%s7179_s11 + $0xa0] sm:$0xf]  ;;  %v6217_v16 = vrot.slane %v6201_v46, 9  ;;  %v2559_v57 = vshll.u32 %v7000_v27, 16 }
 0x20f   : > { %5139 = vmatprep.mubr.bf16.mxu0 %v7071_v7  ;;  %v2553_v56 = vshrl.u32 %v6998_v32, 16 }
 0x210   : > { %v2489_v0 = vrot.slane %v2487_v51, 5  ;;  %v2549_v51 = vshll.u32 %v6998_v32, 16 }
 0x212   : > { %v2551_v1 = vrot.slane %v2549_v51, 5  ;;  %v5928_v51 = vld [vmem:[%s7179_s11 + $0xb4] sm:$0xf] }
 0x213   : > { %5883 = vmatmul.mubr.msk.bf16.gmra.mrb[52].mxu1 %vm662_vm3, %v6948_v21  ;;  %v2505_v21 = vshrl.u32 %v6995_v6, 16  ;;  %v4910_v6 = vrot.slane %v4908_v2, 4 }
 0x214   : > { %2118 = vmatprep.mubr.bf16.mxu1 %v7071_v7 }
 0x215   : > { %v2507_v15 = vrot.slane %v2505_v21, 4  ;;  %v2522_v21 = vor.u32 %v2521_v5, %v2518_v49  ;;  %v2561_v49 = vrot.slane %v2559_v57, 5  ;;  %v4922_v5 = vrot.slane %v8291_v10, 5 }
 0x216   : > { %6247 = vmatmul.mubr.msk.bf16.gmra.mrb[20].mxu0 %vm662_vm3, %v6228_v43  ;;  %v2485_v43 = vrot.slane %v2484_v8, 4  ;;  %v2543_v8 = vshll.u32 %v5922_v25, 16  ;;  %v4925_v10 = vrot.slane %v8309_v39, 5 }
 0x217   : > { %5149 = vmatprep.mubr.bf16.mxu0 %v7071_v7  ;;  %v2508_v23 = vor.u32 %v2507_v15, %v8501_v12  ;;  %v2555_v15 = vrot.slane %v2553_v56, 4  ;;  %v4912_v12 = vsel %vm7418_vm7, %v4910_v6, %v4911_v17  ;;  %v4924_v62 = vrot.slane %v4922_v5, 4 }
 0x218   : > { %v2490_v33 = vsel %vm7207_vm4, %v2485_v43, %v2489_v0  ;;  %v2532_v43 = vor.u32 %v2531_v54, %v8524_v47  ;;  %v4915_v0 = vrot.slane %v8275_v13, 5  ;;  %v2545_v35 = vrot.slane %v2543_v8, 5 }
 0x219   : > { %v6233_v42 = vcombine.low %v4909_v29, %v4912_v12  ;;  %v4929_v12 = vrot.slane %v8313_v34, 5 }
 0x21a   : > { %v2533_v19 = vrot.slane %v2532_v43, 4  ;;  %v4916_v25 = vsel %vm7418_vm7, %v6217_v16, %v4915_v0  ;;  %v7003_v43 = vld [vmem:[%s7179_s11 + $0xb8] sm:$0xf] }
 0x21b   : > { %5884 = vmatmul.mubr.msk.bf16.gmra.mrb[56].mxu1 %vm662_vm3, %v6949_v53  ;;  %v6231_v53 = vcombine.low %v4895_v58, %v4898_v22  ;;  %v6999_v58 = vld [vmem:[%s7179_s11 + $0x98] sm:$0x1]  ;;  %v2601_v46 = vshrl.u32 %v7003_v43, 16 }
 0x21c   : > { %2128 = vmatprep.mubr.bf16.mxu1 %v7071_v7  ;;  %v2535_v22 = vshll.u32 %v6999_v58, 16  ;;  %v7002_v58 = vld [vmem:[%s7179_s11 + $0xb0] sm:$0x1] }
 0x21e   : > { %6248 = vmatmul.mubr.msk.bf16.gmra.mrb[24].mxu0 %vm662_vm3, %v6229_v40  ;;  %v6215_v40 = vrot.slane %v6199_v38, 9  ;;  %v2542_v38 = vrot.slane %v2540_v50, 4  ;;  %v2537_v13 = vrot.slane %v2535_v22, 5  ;;  %v2583_v22 = vshll.u32 %v7002_v58, 16 }
 0x21f   : > { %5159 = vmatprep.mubr.bf16.mxu0 %v7071_v7 }
 0x220   : > { %v2546_v24 = vor.u32 %v2545_v35, %v2542_v38  ;;  %v2538_v3 = vsel %vm7207_vm4, %v2533_v19, %v2537_v13  ;;  %v4926_v35 = vsel %vm7418_vm7, %v4924_v62, %v4925_v10  ;;  %v2585_v29 = vrot.slane %v2583_v22, 5 }
 0x221   : > { %v2603_v19 = vrot.slane %v2601_v46, 4  ;;  %v4943_v22 = vrot.slane %v8353_v61, 5 }
 0x222   : > { %v2547_v11 = vrot.slane %v2546_v24, 4  ;;  %v4931_v24 = vrot.slane %v4929_v12, 4 }
 0x223   : > { %5885 = vmatmul.mubr.msk.bf16.gmra.mrb[60].mxu1 %vm662_vm3, %v6950_v59  ;;  %v5944_v59 = vcombine.low %v2480_v14, %v2490_v33  ;;  %v2523_v14 = vrot.slane %v2522_v21, 4  ;;  %v4917_v33 = vrot.slane %v4915_v0, 4  ;;  %v2597_v0 = vshll.u32 %v7003_v43, 16 }
 0x224   : > { %2856 = vmatprep.mubr.bf16.mxu1 %v7071_v7  ;;  %v2552_v56 = vsel %vm7207_vm4, %v2547_v11, %v2551_v1 }
 0x225   : > { %v2528_v2 = vsel %vm7207_vm4, %v2523_v14, %v8524_v47 }
 0x226   : > { %6249 = vmatmul.mubr.msk.bf16.gmra.mrb[28].mxu0 %vm662_vm3, %v6230_v28  ;;  %v2509_v28 = vrot.slane %v2508_v23, 4  ;;  %v2556_v23 = vor.u32 %v2555_v15, %v2551_v1  ;;  %v5946_v8 = vcombine.low %v2528_v2, %v2538_v3 }
 0x227   : > { %5169 = vmatprep.mubr.bf16.mxu0 %v7071_v7 }
 0x228   : > { %v2557_v36 = vrot.slane %v2556_v23, 4  ;;  %v4932_v23 = vrot.slane %v8328_v4, 5 }
 0x22a   : > { %v2562_v6 = vsel %vm7207_vm4, %v2557_v36, %v2561_v49 }
 0x22b   : > { %5962 = vmatmul.mubr.msk.bf16.vlgmr.msra.gmra.mrb[32].mxu1 %vm662_vm3, %v8277_v52  ;;  %v4902_v52 = vsel %vm7418_vm7, %v6215_v40, %v4901_v37  ;;  %v2514_v37 = vsel %vm7207_vm4, %v2509_v28, %v2513_v26  ;;  %v5925_v40 = vld [vmem:[%s7179_s11 + $0xa8] sm:$0xf]  ;;  %v5947_v38 = vcombine.low %v2552_v56, %v2562_v6 }
 0x22c   : > { %2866 = vmatprep.mubr.bf16.mxu1 %v7071_v7  ;;  %v6232_v20 = vcombine.low %v4902_v52, %v4905_v63  ;;  %v2564_v44 = vshrl.u32 %v5925_v40, 16  ;;  %v2567_v41 = vshll.u32 %v5925_v40, 16  ;;  %v2573_v52 = vshll.u32 %v7001_v30, 16  ;;  %v6202_v28 = vld [vmem:[%s7179_s11 + $0xa8] sm:$0xe] }
 0x22d   : > { %v2577_v63 = vshrl.u32 %v7001_v30, 16  ;;  %v2599_v40 = vrot.slane %v2597_v0, 5  ;;  %v7006_v6 = vld [vmem:[%s7179_s11 + $0xc8] sm:$0x1]  ;;  %v6205_v0 = vld [vmem:[%s7179_s11 + $0xcc] sm:$0xe] }
 0x22e   : > { %6250 = vmatmul.mubr.msk.bf16.gmra.mrb[32].mxu0 %vm662_vm3, %v6231_v53  ;;  %v5945_v53 = vcombine.low %v2504_v48, %v2514_v37  ;;  %v2566_v26 = vrot.slane %v2564_v44, 4  ;;  %v2569_v47 = vrot.slane %v2567_v41, 5  ;;  %v2575_v54 = vrot.slane %v2573_v52, 5  ;;  %v7004_v44 = vld [vmem:[%s7179_s11 + $0xbc] sm:$0x1] }
 0x22f   : > { %5179 = vmatprep.mubr.bf16.mxu0 %v7071_v7  ;;  %v2579_v50 = vrot.slane %v2577_v63, 4  ;;  %v2588_v48 = vshrl.u32 %v5928_v51, 16  ;;  %v2591_v37 = vshll.u32 %v5928_v51, 16  ;;  %v2604_v57 = vor.u32 %v2603_v19, %v2599_v40  ;;  %v7005_v63 = vld [vmem:[%s7179_s11 + $0xc4] sm:$0xf] }
 0x230   : > { %v2570_v17 = vor.u32 %v2569_v47, %v2566_v26  ;;  %v2607_v41 = vshll.u32 %v7004_v44, 16  ;;  %v2621_v2 = vshll.u32 %v7005_v63, 16  ;;  %v2625_v3 = vshrl.u32 %v7005_v63, 16 }
 0x231   : > { %v2580_v21 = vor.u32 %v2579_v50, %v2575_v54  ;;  %v2590_v14 = vrot.slane %v2588_v48, 4  ;;  %v2593_v13 = vrot.slane %v2591_v37, 5  ;;  %v2605_v36 = vrot.slane %v2604_v57, 4 }
 0x232   : > { %v2571_v1 = vrot.slane %v2570_v17, 4  ;;  %v2609_v49 = vrot.slane %v2607_v41, 5  ;;  %v2627_v50 = vrot.slane %v2625_v3, 4  ;;  %v2631_v17 = vshll.u32 %v7006_v6, 16 }
 0x233   : > { %5963 = vmatmul.mubr.msk.bf16.gmra.mrb[36].mxu1 %vm662_vm3, %v5944_v59  ;;  %v4919_v59 = vsel %vm7418_vm7, %v4917_v33, %v4918_v31  ;;  %v2581_v15 = vrot.slane %v2580_v21, 4  ;;  %v5931_v33 = vld [vmem:[%s7179_s11 + $0xc0] sm:$0xf]  ;;  %v2594_v27 = vor.u32 %v2593_v13, %v2590_v14 }
 0x234   : > { %2876 = vmatprep.mubr.bf16.mxu1 %v7071_v7  ;;  %v6234_v32 = vcombine.low %v4916_v25, %v4919_v59  ;;  %v2576_v31 = vsel %vm7207_vm4, %v2571_v1, %v2575_v54  ;;  %v2612_v30 = vshrl.u32 %v5931_v33, 16  ;;  %v2615_v52 = vshll.u32 %v5931_v33, 16 }
 0x235   : > { %v2586_v34 = vsel %vm7207_vm4, %v2581_v15, %v2585_v29  ;;  %v4933_v59 = vsel %vm7418_vm7, %v4931_v24, %v4932_v23  ;;  %v2595_v11 = vrot.slane %v2594_v27, 4  ;;  %v2623_v54 = vrot.slane %v2621_v2, 5 }
 0x236   : > { %6251 = vmatmul.mubr.msk.bf16.gmra.mrb[36].mxu0 %vm662_vm3, %v6232_v20  ;;  %v6218_v20 = vrot.slane %v6202_v28, 9  ;;  %v5948_v4 = vcombine.low %v2576_v31, %v2586_v34  ;;  %v6204_v28 = vld [vmem:[%s7179_s11 + $0xc0] sm:$0xe]  ;;  %v2614_v26 = vrot.slane %v2612_v30, 4  ;;  %v2617_v47 = vrot.slane %v2615_v52, 5 }
 0x237   : > { %5189 = vmatprep.mubr.bf16.mxu0 %v7071_v7  ;;  %v6220_v51 = vrot.slane %v6204_v28, 9  ;;  %v2628_v10 = vor.u32 %v2627_v50, %v2623_v54  ;;  %v2633_v43 = vrot.slane %v2631_v17, 5  ;;  %v170_v50 = vld [vmem:[%s8865_s2] sm:$0x3] }
 0x238   : > { %v4923_v39 = vsel %vm7418_vm7, %v6218_v20, %v4922_v5  ;;  %v4936_v5 = vrot.slane %v8333_v18, 5  ;;  %v4939_v20 = vrot.slane %v8348_v60, 5  ;;  %v2610_v18 = vsel %vm7207_vm4, %v2605_v36, %v2609_v49 }
 0x239   : > { %v6235_v16 = vcombine.low %v4923_v39, %v4926_v35  ;;  %v2618_v62 = vor.u32 %v2617_v47, %v2614_v26  ;;  %v2629_v37 = vrot.slane %v2628_v10, 4  ;;  %v4945_v39 = vrot.slane %v4943_v22, 4 }
 0x23a   : > { %v4938_v56 = vrot.slane %v4936_v5, 4  ;;  %v4937_v58 = vsel %vm7418_vm7, %v6220_v51, %v4936_v5  ;;  %v4946_v35 = vrot.slane %v8368_v55, 5  ;;  %v5315_v36 = vlaneseq }
 0x23b   : > { %5964 = vmatmul.mubr.msk.bf16.gmra.mrb[40].mxu1 %vm662_vm3, %v5945_v53  ;;  %v6203_v53 = vld [vmem:[%s7179_s11 + $0xb4] sm:$0xe]  ;;  %v2619_v48 = vrot.slane %v2618_v62, 4  ;;  %v2634_v15 = vsel %vm7207_vm4, %v2629_v37, %v2633_v43  ;;  %s8814_s11 = scalar_lea.hbm %s8866_s3, %s6327_s7 }
 0x23c   : > { %2886 = vmatprep.mubr.bf16.mxu1 %v7071_v7  ;;  %v4940_v60 = vsel %vm7418_vm7, %v4938_v56, %v4939_v20  ;;  %v5316_v26 = vshrl.u32 %v5315_v36, 7 }
 0x23d   : > { %v6237_v46 = vcombine.low %v4937_v58, %v4940_v60  ;;  %v2624_v1 = vsel %vm7207_vm4, %v2619_v48, %v2623_v54 }
 0x23e   : > { %6252 = vmatmul.mubr.msk.bf16.gmra.mrb[40].mxu0 %vm662_vm3, %v6233_v42  ;;  %v6219_v42 = vrot.slane %v6203_v53, 9  ;;  %v5950_v61 = vcombine.low %v2624_v1, %v2634_v15  ;;  %v5317_v54 = vsub.s32 0, %v5316_v26 }
 0x23f   : > { %5199 = vmatprep.mubr.bf16.mxu0 %v7071_v7 }
 0x240   : > { %v4930_v25 = vsel %vm7418_vm7, %v6219_v42, %v4929_v12  ;;  %v4947_v12 = vsel %vm7418_vm7, %v4945_v39, %v4946_v35 }
 0x243   : > { %5965 = vmatmul.mubr.msk.bf16.gmra.mrb[44].mxu1 %vm662_vm3, %v5946_v8  ;;  %v6236_v8 = vcombine.low %v4930_v25, %v4933_v59 }
 0x244   : > { %2896 = vmatprep.mubr.bf16.mxu1 %v7071_v7 }
 0x246   : > { %6253 = vmatmul.mubr.msk.bf16.gmra.mrb[44].mxu0 %vm662_vm3, %v6234_v32  ;;  %v2600_v32 = vsel %vm7207_vm4, %v2595_v11, %v2599_v40 }
 0x247   : > { %5209 = vmatprep.mubr.bf16.mxu0 %v7071_v7  ;;  %v5949_v21 = vcombine.low %v2600_v32, %v2610_v18  ;;  %v8682_v32 = vrot.slane %v170_v50, %v5317_v54 }
 0x24b   : > { %5966 = vmatmul.mubr.msk.bf16.gmra.mrb[48].mxu1 %vm662_vm3, %v5947_v38  ;;  %v6221_v38 = vrot.slane %v6205_v0, 9 }
 0x24c   : > { %2906 = vmatprep.mubr.bf16.mxu1 %v7071_v7 }
 0x24d   : > { %v4944_v29 = vsel %vm7418_vm7, %v6221_v38, %v4943_v22 }
 0x24e   : > { %6254 = vmatmul.mubr.msk.bf16.gmra.mrb[48].mxu0 %vm662_vm3, %v6235_v16  ;;  %v6238_v55 = vcombine.low %v4944_v29, %v4947_v12 }
 0x24f   : > { %5219 = vmatprep.mubr.bf16.mxu0 %v7071_v7 }
 0x253   : > { %5967 = vmatmul.mubr.msk.bf16.gmra.mrb[52].mxu1 %vm662_vm3, %v5948_v4 }
 0x254   : > { %2916 = vmatprep.mubr.bf16.mxu1 %v7071_v7 }
 0x256   : > { %6255 = vmatmul.mubr.msk.bf16.gmra.mrb[52].mxu0 %vm662_vm3, %v6236_v8  ;;  %v5321_v8 = vsub.s32 1, %v5316_v26 }
 0x257   : > { %5229 = vmatprep.mubr.bf16.mxu0 %v7071_v7 }
 0x258   : > { %v8685_v56 = vrot.slane %v170_v50, %v5321_v8 }
 0x25b   : > { %5968 = vmatmul.mubr.msk.bf16.gmra.mrb[56].mxu1 %vm662_vm3, %v5949_v21 }
 0x25c   : > { %2926 = vmatprep.mubr.bf16.mxu1 %v7071_v7 }
 0x25e   : > { %6256 = vmatmul.mubr.msk.bf16.gmra.mrb[56].mxu0 %vm662_vm3, %v6237_v46 }
 0x25f   : > { %5239 = vmatprep.mubr.bf16.mxu0 %v7071_v7 }
 0x263   : > { %5969 = vmatmul.mubr.msk.bf16.gmra.mrb[60].mxu1 %vm662_vm3, %v5950_v61 }
 0x266   : > { %6257 = vmatmul.mubr.msk.bf16.gmra.mrb[60].mxu0 %vm662_vm3, %v6238_v55 }
 0x27e   : > { %v1980_v53 = vpop.f32.mrb[0].mxu1 }
 0x27f   : > { %v1982_v14 = vpop.f32.mrb[1].mxu1 }
 0x280   : > { %v1984_v45 = vpop.f32.mrb[2].mxu1 }
 0x281   : > { %v1986_v13 = vpop.f32.mrb[3].mxu1 }
 0x286   : > { %v1990_v40 = vpop.f32.mrb[4].mxu1 }
 0x287   : > { %v1992_v19 = vpop.f32.mrb[5].mxu1 }
 0x288   : > { %v1994_v16 = vpop.f32.mrb[6].mxu1 }
 0x289   : > { %v1996_v7 = vpop.f32.mrb[7].mxu1 }
 0x28e   : > { %v8631_v33 = vpop.f32.mrb[8].mxu1 }
 0x28f   : > { %v8633_v31 = vpop.f32.mrb[9].mxu1 }
 0x290   : > { %v8635_v42 = vpop.f32.mrb[10].mxu1 }
 0x291   : > { %v8637_v9 = vpop.f32.mrb[11].mxu1 }
 0x296   : > { %v8639_v24 = vpop.f32.mrb[12].mxu1 }
 0x297   : > { %v8641_v23 = vpop.f32.mrb[13].mxu1 }
 0x298   : > { %v8643_v34 = vpop.f32.mrb[14].mxu1 }
 0x299   : > { %v8645_v27 = vpop.f32.mrb[15].mxu1 }
 0x29e   : > { %v8647_v57 = vpop.f32.mrb[16].mxu1 }
 0x29f   : > { %v8649_v44 = vpop.f32.mrb[17].mxu1 }
 0x2a0   : > { %v8651_v41 = vpop.f32.mrb[18].mxu1 }
 0x2a1   : > { %v8653_v30 = vpop.f32.mrb[19].mxu1 }
 0x2a6   : > { %v8655_v52 = vpop.f32.mrb[20].mxu1 }
 0x2a7   : > { %v8657_v63 = vpop.f32.mrb[21].mxu1 }
 0x2a8   : > { %v8659_v2 = vpop.f32.mrb[22].mxu1 }
 0x2a9   : > { %v8661_v3 = vpop.f32.mrb[23].mxu1 }
 0x2ae   : > { %v8663_v4 = vpop.f32.mrb[24].mxu1 }
 0x2af   : > { %v8665_v25 = vpop.f32.mrb[25].mxu1 }
 0x2b0   : > { %v8667_v59 = vpop.f32.mrb[26].mxu1 }
 0x2b1   : > { %v8669_v11 = vpop.f32.mrb[27].mxu1 }
 0x2b6   : > { %v8671_v49 = vpop.f32.mrb[28].mxu1 }
 0x2b7   : > { %v8673_v5 = vpop.f32.mrb[29].mxu1 }
 0x2b8   : > { %v8675_v28 = vpop.f32.mrb[30].mxu1 }
 0x2b9   : > { %v8677_v47 = vpop.f32.mrb[31].mxu1 }
 0x2c1   : > { %v5091_v51 = vpop.f32.mrb[0].mxu0 }
 0x2c2   : > { %v6330_v20 = vadd.f32 %v5091_v51, %v1980_v53  ;;  %v5093_v18 = vpop.f32.mrb[1].mxu0 }
 0x2c3   : > { %v6331_v62 = vadd.f32 %v5093_v18, %v1982_v14  ;;  %v5095_v10 = vpop.f32.mrb[2].mxu0 }
 0x2c4   : > { %v5325_v6 = vadd.f32 %v6330_v20, %v8682_v32  ;;  %v6332_v17 = vadd.f32 %v5095_v10, %v1984_v45  ;;  %v5097_v21 = vpop.f32.mrb[3].mxu0 }
 0x2c5   : > { %v5326_v58 = vadd.f32 %v6331_v62, %v8685_v56  ;;  %v6333_v60 = vadd.f32 %v5097_v21, %v1986_v13 }
 0x2c6   : > { %v5327_v22 = vadd.f32 %v6332_v17, %v8682_v32 }
 0x2c7   : > { %v6295_v48 = vpack.c.bf16 %v5326_v58, %v5325_v6  ;;  %v5328_v37 = vadd.f32 %v6333_v60, %v8685_v56 }
 0x2c9   : > { %5581 = vst [vmem:[%s8693_s6] sm:$0xff] %v6295_v48  ;;  %v6296_v43 = vpack.c.bf16 %v5328_v37, %v5327_v22  ;;  %v5101_v0 = vpop.f32.mrb[4].mxu0 }
 0x2ca   : > { %v6334_v46 = vadd.f32 %v5101_v0, %v1990_v40  ;;  %v5103_v38 = vpop.f32.mrb[5].mxu0 }
 0x2cb   : > { %5582 = vst [vmem:[%s8693_s6 + $0x8] sm:$0xff] %v6296_v43  ;;  %v6335_v39 = vadd.f32 %v5103_v38, %v1992_v19  ;;  %v5105_v35 = vpop.f32.mrb[6].mxu0 }
 0x2cc   : > { %v5329_v1 = vadd.f32 %v6334_v46, %v8682_v32  ;;  %v6336_v15 = vadd.f32 %v5105_v35, %v1994_v16  ;;  %v5107_v61 = vpop.f32.mrb[7].mxu0 }
 0x2cd   : > { %v5330_v29 = vadd.f32 %v6335_v39, %v8685_v56  ;;  %v6337_v12 = vadd.f32 %v5107_v61, %v1996_v7 }
 0x2ce   : > { %v5331_v55 = vadd.f32 %v6336_v15, %v8682_v32 }
 0x2cf   : > { %v6297_v53 = vpack.c.bf16 %v5330_v29, %v5329_v1  ;;  %v5332_v14 = vadd.f32 %v6337_v12, %v8685_v56 }
 0x2d1   : > { %5583 = vst [vmem:[%s8693_s6 + $0x10] sm:$0xff] %v6297_v53  ;;  %v6298_v45 = vpack.c.bf16 %v5332_v14, %v5331_v55  ;;  %v5111_v13 = vpop.f32.mrb[8].mxu0 }
 0x2d2   : > { %v6338_v40 = vadd.f32 %v5111_v13, %v8631_v33  ;;  %v5113_v19 = vpop.f32.mrb[9].mxu0 }
 0x2d3   : > { %5584 = vst [vmem:[%s8693_s6 + $0x18] sm:$0xff] %v6298_v45  ;;  %v6339_v16 = vadd.f32 %v5113_v19, %v8633_v31  ;;  %v5115_v36 = vpop.f32.mrb[10].mxu0 }
 0x2d4   : > { %v5333_v26 = vadd.f32 %v6338_v40, %v8682_v32  ;;  %v6340_v7 = vadd.f32 %v5115_v36, %v8635_v42  ;;  %v5117_v54 = vpop.f32.mrb[11].mxu0 }
 0x2d5   : > { %v5334_v50 = vadd.f32 %v6339_v16, %v8685_v56  ;;  %v6341_v8 = vadd.f32 %v5117_v54, %v8637_v9 }
 0x2d6   : > { %v5335_v51 = vadd.f32 %v6340_v7, %v8682_v32 }
 0x2d7   : > { %v6299_v20 = vpack.c.bf16 %v5334_v50, %v5333_v26  ;;  %v5336_v33 = vadd.f32 %v6341_v8, %v8685_v56 }
 0x2d9   : > { %5585 = vst [vmem:[%s8693_s6 + $0x20] sm:$0xff] %v6299_v20  ;;  %v6300_v18 = vpack.c.bf16 %v5336_v33, %v5335_v51  ;;  %v5121_v62 = vpop.f32.mrb[12].mxu0 }
 0x2da   : > { %v6342_v31 = vadd.f32 %v5121_v62, %v8639_v24  ;;  %v5123_v10 = vpop.f32.mrb[13].mxu0 }
 0x2db   : > { %5586 = vst [vmem:[%s8693_s6 + $0x28] sm:$0xff] %v6300_v18  ;;  %v6343_v42 = vadd.f32 %v5123_v10, %v8641_v23  ;;  %v5125_v6 = vpop.f32.mrb[14].mxu0 }
 0x2dc   : > { %v5337_v17 = vadd.f32 %v6342_v31, %v8682_v32  ;;  %v6344_v9 = vadd.f32 %v5125_v6, %v8643_v34  ;;  %v5127_v21 = vpop.f32.mrb[15].mxu0 }
 0x2dd   : > { %v5338_v58 = vadd.f32 %v6343_v42, %v8685_v56  ;;  %v6345_v60 = vadd.f32 %v5127_v21, %v8645_v27 }
 0x2de   : > { %v5339_v22 = vadd.f32 %v6344_v9, %v8682_v32 }
 0x2df   : > { %v6301_v48 = vpack.c.bf16 %v5338_v58, %v5337_v17  ;;  %v5340_v24 = vadd.f32 %v6345_v60, %v8685_v56 }
 0x2e1   : > { %5587 = vst [vmem:[%s8693_s6 + $0x30] sm:$0xff] %v6301_v48  ;;  %v6302_v37 = vpack.c.bf16 %v5340_v24, %v5339_v22  ;;  %v5131_v43 = vpop.f32.mrb[16].mxu0 }
 0x2e2   : > { %v6346_v23 = vadd.f32 %v5131_v43, %v8647_v57  ;;  %v5133_v0 = vpop.f32.mrb[17].mxu0 }
 0x2e3   : > { %5588 = vst [vmem:[%s8693_s6 + $0x38] sm:$0xff] %v6302_v37  ;;  %v6347_v34 = vadd.f32 %v5133_v0, %v8649_v44  ;;  %v5135_v46 = vpop.f32.mrb[18].mxu0 }
 0x2e4   : > { %v5341_v38 = vadd.f32 %v6346_v23, %v8682_v32  ;;  %v6348_v27 = vadd.f32 %v5135_v46, %v8651_v41  ;;  %v5137_v39 = vpop.f32.mrb[19].mxu0 }
 0x2e5   : > { %v5342_v35 = vadd.f32 %v6347_v34, %v8685_v56  ;;  %v6349_v1 = vadd.f32 %v5137_v39, %v8653_v30 }
 0x2e6   : > { %v5343_v15 = vadd.f32 %v6348_v27, %v8682_v32 }
 0x2e7   : > { %v6303_v61 = vpack.c.bf16 %v5342_v35, %v5341_v38  ;;  %v5344_v57 = vadd.f32 %v6349_v1, %v8685_v56 }
 0x2e9   : > { %5589 = vst [vmem:[%s8693_s6 + $0x40] sm:$0xff] %v6303_v61  ;;  %v6304_v29 = vpack.c.bf16 %v5344_v57, %v5343_v15  ;;  %v5141_v12 = vpop.f32.mrb[20].mxu0 }
 0x2ea   : > { %v6350_v44 = vadd.f32 %v5141_v12, %v8655_v52  ;;  %v5143_v55 = vpop.f32.mrb[21].mxu0 }
 0x2eb   : > { %5590 = vst [vmem:[%s8693_s6 + $0x48] sm:$0xff] %v6304_v29  ;;  %v6351_v41 = vadd.f32 %v5143_v55, %v8657_v63  ;;  %v5145_v53 = vpop.f32.mrb[22].mxu0 }
 0x2ec   : > { %v5345_v14 = vadd.f32 %v6350_v44, %v8682_v32  ;;  %v6352_v30 = vadd.f32 %v5145_v53, %v8659_v2  ;;  %v5147_v45 = vpop.f32.mrb[23].mxu0 }
 0x2ed   : > { %v5346_v13 = vadd.f32 %v6351_v41, %v8685_v56  ;;  %v6353_v40 = vadd.f32 %v5147_v45, %v8661_v3 }
 0x2ee   : > { %v5347_v19 = vadd.f32 %v6352_v30, %v8682_v32 }
 0x2ef   : > { %v6305_v16 = vpack.c.bf16 %v5346_v13, %v5345_v14  ;;  %v5348_v52 = vadd.f32 %v6353_v40, %v8685_v56 }
 0x2f1   : > { %5591 = vst [vmem:[%s8693_s6 + $0x50] sm:$0xff] %v6305_v16  ;;  %v6306_v36 = vpack.c.bf16 %v5348_v52, %v5347_v19  ;;  %v5151_v26 = vpop.f32.mrb[24].mxu0 }
 0x2f2   : > { %v6354_v63 = vadd.f32 %v5151_v26, %v8663_v4  ;;  %v5153_v7 = vpop.f32.mrb[25].mxu0 }
 0x2f3   : > { %5592 = vst [vmem:[%s8693_s6 + $0x58] sm:$0xff] %v6306_v36  ;;  %v6355_v2 = vadd.f32 %v5153_v7, %v8665_v25  ;;  %v5155_v54 = vpop.f32.mrb[26].mxu0 }
 0x2f4   : > { %v5349_v50 = vadd.f32 %v6354_v63, %v8682_v32  ;;  %v6356_v3 = vadd.f32 %v5155_v54, %v8667_v59  ;;  %v5157_v8 = vpop.f32.mrb[27].mxu0 }
 0x2f5   : > { %v5350_v51 = vadd.f32 %v6355_v2, %v8685_v56  ;;  %v6357_v20 = vadd.f32 %v5157_v8, %v8669_v11 }
 0x2f6   : > { %v5351_v33 = vadd.f32 %v6356_v3, %v8682_v32 }
 0x2f7   : > { %v6307_v18 = vpack.c.bf16 %v5350_v51, %v5349_v50  ;;  %v5352_v4 = vadd.f32 %v6357_v20, %v8685_v56 }
 0x2f9   : > { %5593 = vst [vmem:[%s8693_s6 + $0x60] sm:$0xff] %v6307_v18  ;;  %v6308_v62 = vpack.c.bf16 %v5352_v4, %v5351_v33  ;;  %v5161_v31 = vpop.f32.mrb[28].mxu0 }
 0x2fa   : > { %v6358_v25 = vadd.f32 %v5161_v31, %v8671_v49  ;;  %v5163_v10 = vpop.f32.mrb[29].mxu0 }
 0x2fb   : > { %5594 = vst [vmem:[%s8693_s6 + $0x68] sm:$0xff] %v6308_v62  ;;  %v6359_v59 = vadd.f32 %v5163_v10, %v8673_v5  ;;  %v5165_v42 = vpop.f32.mrb[30].mxu0 }
 0x2fc   : > { %v5353_v6 = vadd.f32 %v6358_v25, %v8682_v32  ;;  %v6360_v11 = vadd.f32 %v5165_v42, %v8675_v28  ;;  %v5167_v17 = vpop.f32.mrb[31].mxu0 }
 0x2fd   : > { %v5354_v9 = vadd.f32 %v6359_v59, %v8685_v56  ;;  %v6361_v21 = vadd.f32 %v5167_v17, %v8677_v47 }
 0x2fe   : > { %v5355_v58 = vadd.f32 %v6360_v11, %v8682_v32  ;;  %v2858_v60 = vpop.f32.mrb[32].mxu1 }
 0x2ff   : > { %v6309_v49 = vpack.c.bf16 %v5354_v9, %v5353_v6  ;;  %v5356_v22 = vadd.f32 %v6361_v21, %v8685_v56  ;;  %v2860_v48 = vpop.f32.mrb[33].mxu1 }
 0x300   : > { %v2862_v24 = vpop.f32.mrb[34].mxu1 }
 0x301   : > { %5595 = vst [vmem:[%s8693_s6 + $0x70] sm:$0xff] %v6309_v49  ;;  %v6310_v5 = vpack.c.bf16 %v5356_v22, %v5355_v58  ;;  %v5171_v37 = vpop.f32.mrb[32].mxu0  ;;  %v2864_v43 = vpop.f32.mrb[35].mxu1 }
 0x302   : > { %v6362_v23 = vadd.f32 %v5171_v37, %v2858_v60  ;;  %v5173_v28 = vpop.f32.mrb[33].mxu0 }
 0x303   : > { %5596 = vst [vmem:[%s8693_s6 + $0x78] sm:$0xff] %v6310_v5  ;;  %v6363_v0 = vadd.f32 %v5173_v28, %v2860_v48  ;;  %v5175_v34 = vpop.f32.mrb[34].mxu0 }
 0x304   : > { %v5357_v47 = vadd.f32 %v6362_v23, %v8682_v32  ;;  %v6364_v46 = vadd.f32 %v5175_v34, %v2862_v24  ;;  %v5177_v38 = vpop.f32.mrb[35].mxu0 }
 0x305   : > { %v5358_v27 = vadd.f32 %v6363_v0, %v8685_v56  ;;  %v6365_v39 = vadd.f32 %v5177_v38, %v2864_v43 }
 0x306   : > { %v5359_v35 = vadd.f32 %v6364_v46, %v8682_v32  ;;  %v2868_v1 = vpop.f32.mrb[36].mxu1 }
 0x307   : > { %v6311_v15 = vpack.c.bf16 %v5358_v27, %v5357_v47  ;;  %v5360_v61 = vadd.f32 %v6365_v39, %v8685_v56  ;;  %v2870_v57 = vpop.f32.mrb[37].mxu1 }
 0x308   : > { %v2872_v29 = vpop.f32.mrb[38].mxu1 }
 0x309   : > { %5597 = vst [vmem:[%s8693_s6 + $0x80] sm:$0xff] %v6311_v15  ;;  %v6312_v12 = vpack.c.bf16 %v5360_v61, %v5359_v35  ;;  %v5181_v44 = vpop.f32.mrb[36].mxu0  ;;  %v2874_v55 = vpop.f32.mrb[39].mxu1 }
 0x30a   : > { %v6366_v41 = vadd.f32 %v5181_v44, %v2868_v1  ;;  %v5183_v53 = vpop.f32.mrb[37].mxu0 }
 0x30b   : > { %5598 = vst [vmem:[%s8693_s6 + $0x88] sm:$0xff] %v6312_v12  ;;  %v6367_v14 = vadd.f32 %v5183_v53, %v2870_v57  ;;  %v5185_v30 = vpop.f32.mrb[38].mxu0 }
 0x30c   : > { %v5361_v45 = vadd.f32 %v6366_v41, %v8682_v32  ;;  %v6368_v13 = vadd.f32 %v5185_v30, %v2872_v29  ;;  %v5187_v40 = vpop.f32.mrb[39].mxu0 }
 0x30d   : > { %v5362_v19 = vadd.f32 %v6367_v14, %v8685_v56  ;;  %v6369_v16 = vadd.f32 %v5187_v40, %v2874_v55 }
 0x30e   : > { %v5363_v52 = vadd.f32 %v6368_v13, %v8682_v32  ;;  %v2878_v36 = vpop.f32.mrb[40].mxu1 }
 0x30f   : > { %v6313_v26 = vpack.c.bf16 %v5362_v19, %v5361_v45  ;;  %v5364_v63 = vadd.f32 %v6369_v16, %v8685_v56  ;;  %v2880_v7 = vpop.f32.mrb[41].mxu1 }
 0x310   : > { %v2882_v2 = vpop.f32.mrb[42].mxu1 }
 0x311   : > { %5599 = vst [vmem:[%s8693_s6 + $0x90] sm:$0xff] %v6313_v26  ;;  %v6314_v54 = vpack.c.bf16 %v5364_v63, %v5363_v52  ;;  %v5191_v50 = vpop.f32.mrb[40].mxu0  ;;  %v2884_v3 = vpop.f32.mrb[43].mxu1 }
 0x312   : > { %v6370_v8 = vadd.f32 %v5191_v50, %v2878_v36  ;;  %v5193_v51 = vpop.f32.mrb[41].mxu0 }
 0x313   : > { %5600 = vst [vmem:[%s8693_s6 + $0x98] sm:$0xff] %v6314_v54  ;;  %v6371_v20 = vadd.f32 %v5193_v51, %v2880_v7  ;;  %v5195_v33 = vpop.f32.mrb[42].mxu0 }
 0x314   : > { %v5365_v18 = vadd.f32 %v6370_v8, %v8682_v32  ;;  %v6372_v4 = vadd.f32 %v5195_v33, %v2882_v2  ;;  %v5197_v62 = vpop.f32.mrb[43].mxu0 }
 0x315   : > { %v5366_v31 = vadd.f32 %v6371_v20, %v8685_v56  ;;  %v6373_v25 = vadd.f32 %v5197_v62, %v2884_v3 }
 0x316   : > { %v5367_v10 = vadd.f32 %v6372_v4, %v8682_v32  ;;  %v2888_v59 = vpop.f32.mrb[44].mxu1 }
 0x317   : > { %v6315_v42 = vpack.c.bf16 %v5366_v31, %v5365_v18  ;;  %v5368_v6 = vadd.f32 %v6373_v25, %v8685_v56  ;;  %v2890_v11 = vpop.f32.mrb[45].mxu1 }
 0x318   : > { %v2892_v17 = vpop.f32.mrb[46].mxu1 }
 0x319   : > { %5601 = vst [vmem:[%s8693_s6 + $0xa0] sm:$0xff] %v6315_v42  ;;  %v6316_v9 = vpack.c.bf16 %v5368_v6, %v5367_v10  ;;  %v5201_v21 = vpop.f32.mrb[44].mxu0  ;;  %v2894_v58 = vpop.f32.mrb[47].mxu1 }
 0x31a   : > { %v6374_v60 = vadd.f32 %v5201_v21, %v2888_v59  ;;  %v5203_v49 = vpop.f32.mrb[45].mxu0 }
 0x31b   : > { %5602 = vst [vmem:[%s8693_s6 + $0xa8] sm:$0xff] %v6316_v9  ;;  %v6375_v22 = vadd.f32 %v5203_v49, %v2890_v11  ;;  %v5205_v48 = vpop.f32.mrb[46].mxu0 }
 0x31c   : > { %v5369_v24 = vadd.f32 %v6374_v60, %v8682_v32  ;;  %v6376_v5 = vadd.f32 %v5205_v48, %v2892_v17  ;;  %v5207_v37 = vpop.f32.mrb[47].mxu0 }
 0x31d   : > { %v5370_v43 = vadd.f32 %v6375_v22, %v8685_v56  ;;  %v6377_v23 = vadd.f32 %v5207_v37, %v2894_v58 }
 0x31e   : > { %v5371_v28 = vadd.f32 %v6376_v5, %v8682_v32  ;;  %v2898_v0 = vpop.f32.mrb[48].mxu1 }
 0x31f   : > { %v6317_v34 = vpack.c.bf16 %v5370_v43, %v5369_v24  ;;  %v5372_v47 = vadd.f32 %v6377_v23, %v8685_v56  ;;  %v2900_v46 = vpop.f32.mrb[49].mxu1 }
 0x320   : > { %v2902_v38 = vpop.f32.mrb[50].mxu1 }
 0x321   : > { %5603 = vst [vmem:[%s8693_s6 + $0xb0] sm:$0xff] %v6317_v34  ;;  %v6318_v27 = vpack.c.bf16 %v5372_v47, %v5371_v28  ;;  %v5211_v39 = vpop.f32.mrb[48].mxu0  ;;  %v2904_v35 = vpop.f32.mrb[51].mxu1 }
 0x322   : > { %v6378_v1 = vadd.f32 %v5211_v39, %v2898_v0  ;;  %v5213_v15 = vpop.f32.mrb[49].mxu0 }
 0x323   : > { %5604 = vst [vmem:[%s8693_s6 + $0xb8] sm:$0xff] %v6318_v27  ;;  %v6379_v61 = vadd.f32 %v5213_v15, %v2900_v46  ;;  %v5215_v57 = vpop.f32.mrb[50].mxu0 }
 0x324   : > { %v5373_v29 = vadd.f32 %v6378_v1, %v8682_v32  ;;  %v6380_v12 = vadd.f32 %v5215_v57, %v2902_v38  ;;  %v5217_v44 = vpop.f32.mrb[51].mxu0 }
 0x325   : > { %v5374_v55 = vadd.f32 %v6379_v61, %v8685_v56  ;;  %v6381_v41 = vadd.f32 %v5217_v44, %v2904_v35 }
 0x326   : > { %v5375_v53 = vadd.f32 %v6380_v12, %v8682_v32  ;;  %v2908_v14 = vpop.f32.mrb[52].mxu1 }
 0x327   : > { %v6319_v30 = vpack.c.bf16 %v5374_v55, %v5373_v29  ;;  %v5376_v45 = vadd.f32 %v6381_v41, %v8685_v56  ;;  %v2910_v13 = vpop.f32.mrb[53].mxu1 }
 0x328   : > { %v2912_v40 = vpop.f32.mrb[54].mxu1 }
 0x329   : > { %5605 = vst [vmem:[%s8693_s6 + $0xc0] sm:$0xff] %v6319_v30  ;;  %v6320_v19 = vpack.c.bf16 %v5376_v45, %v5375_v53  ;;  %v5221_v16 = vpop.f32.mrb[52].mxu0  ;;  %v2914_v52 = vpop.f32.mrb[55].mxu1 }
 0x32a   : > { %v6382_v36 = vadd.f32 %v5221_v16, %v2908_v14  ;;  %v5223_v26 = vpop.f32.mrb[53].mxu0 }
 0x32b   : > { %5606 = vst [vmem:[%s8693_s6 + $0xc8] sm:$0xff] %v6320_v19  ;;  %v6383_v63 = vadd.f32 %v5223_v26, %v2910_v13  ;;  %v5225_v7 = vpop.f32.mrb[54].mxu0 }
 0x32c   : > { %v5377_v2 = vadd.f32 %v6382_v36, %v8682_v32  ;;  %v6384_v54 = vadd.f32 %v5225_v7, %v2912_v40  ;;  %v5227_v50 = vpop.f32.mrb[55].mxu0 }
 0x32d   : > { %v5378_v3 = vadd.f32 %v6383_v63, %v8685_v56  ;;  %v6385_v8 = vadd.f32 %v5227_v50, %v2914_v52 }
 0x32e   : > { %v5379_v51 = vadd.f32 %v6384_v54, %v8682_v32  ;;  %v2918_v20 = vpop.f32.mrb[56].mxu1 }
 0x32f   : > { %v6321_v33 = vpack.c.bf16 %v5378_v3, %v5377_v2  ;;  %v5380_v18 = vadd.f32 %v6385_v8, %v8685_v56  ;;  %v2920_v4 = vpop.f32.mrb[57].mxu1 }
 0x330   : > { %v2922_v62 = vpop.f32.mrb[58].mxu1 }
 0x331   : > { %5607 = vst [vmem:[%s8693_s6 + $0xd0] sm:$0xff] %v6321_v33  ;;  %v6322_v31 = vpack.c.bf16 %v5380_v18, %v5379_v51  ;;  %v5231_v25 = vpop.f32.mrb[56].mxu0  ;;  %v2924_v10 = vpop.f32.mrb[59].mxu1 }
 0x332   : > { %v6386_v59 = vadd.f32 %v5231_v25, %v2918_v20  ;;  %v5233_v42 = vpop.f32.mrb[57].mxu0 }
 0x333   : > { %5608 = vst [vmem:[%s8693_s6 + $0xd8] sm:$0xff] %v6322_v31  ;;  %v6387_v6 = vadd.f32 %v5233_v42, %v2920_v4  ;;  %v5235_v11 = vpop.f32.mrb[58].mxu0 }
 0x334   : > { %v5381_v17 = vadd.f32 %v6386_v59, %v8682_v32  ;;  %v6388_v9 = vadd.f32 %v5235_v11, %v2922_v62  ;;  %v5237_v21 = vpop.f32.mrb[59].mxu0 }
 0x335   : > { %v5382_v58 = vadd.f32 %v6387_v6, %v8685_v56  ;;  %v6389_v60 = vadd.f32 %v5237_v21, %v2924_v10 }
 0x336   : > { %v5383_v49 = vadd.f32 %v6388_v9, %v8682_v32  ;;  %v2928_v22 = vpop.f32.mrb[60].mxu1 }
 0x337   : > { %v6323_v48 = vpack.c.bf16 %v5382_v58, %v5381_v17  ;;  %v5384_v24 = vadd.f32 %v6389_v60, %v8685_v56  ;;  %v2930_v5 = vpop.f32.mrb[61].mxu1 }
 0x338   : > { %v2932_v37 = vpop.f32.mrb[62].mxu1 }
 0x339   : > { %5609 = vst [vmem:[%s8693_s6 + $0xe0] sm:$0xff] %v6323_v48  ;;  %v6324_v43 = vpack.c.bf16 %v5384_v24, %v5383_v49  ;;  %v5241_v23 = vpop.f32.mrb[60].mxu0  ;;  %v2934_v28 = vpop.f32.mrb[63].mxu1 }
 0x33a   : > { %v6390_v0 = vadd.f32 %v5241_v23, %v2928_v22  ;;  %v5243_v34 = vpop.f32.mrb[61].mxu0 }
 0x33b   : > { %5610 = vst [vmem:[%s8693_s6 + $0xe8] sm:$0xff] %v6324_v43  ;;  %v6391_v47 = vadd.f32 %v5243_v34, %v2930_v5  ;;  %v5245_v46 = vpop.f32.mrb[62].mxu0 }
 0x33c   : > { %v5385_v38 = vadd.f32 %v6390_v0, %v8682_v32  ;;  %v6392_v27 = vadd.f32 %v5245_v46, %v2932_v37  ;;  %v5247_v39 = vpop.f32.mrb[63].mxu0 }
 0x33d   : > { %v5386_v35 = vadd.f32 %v6391_v47, %v8685_v56  ;;  %v6393_v1 = vadd.f32 %v5247_v39, %v2934_v28 }
 0x33e   : > { %v5387_v15 = vadd.f32 %v6392_v27, %v8682_v32 }
 0x33f   : > { %v6325_v61 = vpack.c.bf16 %v5386_v35, %v5385_v38  ;;  %v5388_v57 = vadd.f32 %v6393_v1, %v8685_v56 }
 0x341   : > { %5611 = vst [vmem:[%s8693_s6 + $0xf0] sm:$0xff] %v6325_v61  ;;  %v6326_v29 = vpack.c.bf16 %v5388_v57, %v5387_v15 }
 0x343   : > { %5612 = vst [vmem:[%s8693_s6 + $0xf8] sm:$0xff] %v6326_v29 }
 0x344   : > { %7020 = shalt.err (!%p7017_p3)
}
 0x345   : > { %s7021_s25 = scalar_lea.hbm %s8814_s11, 4096  ;;  %s7025_s28 = scalar_lea.hbm %s8866_s3, 8192 }
 0x346   : > { %p7022_p4 = scmp.ne.s32.totalorder %s8814_s11, %s7021_s25  ;;  %p7026_p9 = scmp.lt.u32.totalorder %s8814_s11, %s8866_s3 }
 0x347   : > { %p7027_p10 = scmp.lt.u32.totalorder %s7025_s28, %s7021_s25  ;;  %p7029_p12 = scmp.lt.u32.totalorder %s7021_s25, %s8814_s11 }
 0x348   : > { %p7023_p7 = pnand %p7022_p4, %p7133_p5 }
 0x349   : > { %p7028_p11 = por %p7027_p10, %p7026_p9 }
 0x34a   : > { %p7024_p8 = pneg %p7023_p7 }
 0x34b   : > { %p7030_p13 = por %p7029_p12, %p7028_p11 }
 0x34d   : > { %p7031_p0 = pnand %p7030_p13, %p7024_p8 }
 0x34f   : > { %7034 = shalt.err (!%p7031_p0)
}
 0x350   : > { %s7073_s4 = smov 128   ;;  %s7074_s5 = smov 8  }
 0x351   : > { %6843 = dma.vmem_to_hbm [thread:$0]  (%p7133_p5), %s8816_s8, 4096, %s8814_s11, %s8822_s16, %s7073_s4, %s7073_s4, %s7074_s5  }
 0x352 PF: > { %p6849_p1 = scmp.ge.s32.totalorder %s7069_s15, 2  ;;  %s5642_s6 = sand.u32 1, %s7057_s12  }
 0x353   : > { %s5643_s7 = scalar_lea.sflag [#allocation3], %s5642_s6 }
 0x354   : > { %p6846_p2 = pnand %p6849_p1, %p7137_p6 }
 0x356   : > { %7052 = dma.done.wait (!%p6846_p2), %s5643_s7, 4096  }
 0x357   : > { %7054 = vsyncadd (!%p6846_p2), %s5643_s7, 4294963200  ;;  %p13_p3 = scmp.ge.s32.totalorder %s7120_s18, 4   ;;  %s8873_s12 = smov %s7061_s13 }
 0x358   : > { %s8874_s13 = smov %s7065_s14  ;;  %s8875_s14 = smov %s7131_s21 }
 0x359   : > { %s8876_s15 = smov %s7120_s18  ;;  %15 = sbr.rel (!%p13_p3) target bundleno = 3 (0x3), region = 77 }
 0x360   :  { %5648 = vsyncpa [#allocation3], 1 }
 0x361   :  { %5650 = vsyncpa [#allocation3 + $0x1], 1 }

</bundles_post_ra>
